<compile_context>
chip_gen: v7x
topology: tpu7x:2x2x1
jax: 0.10.0
libtpu: 0.0.40
codegen_flags: <defaults>
</compile_context>

<pallas_src>
import functools

import jax
import jax.numpy as jnp
from jax import lax
from jax.experimental import pallas as pl
from jax.experimental.pallas import tpu as pltpu

HIDDEN = 128
INPUT = 1
NUM_LAYERS = 2

BLK = 8   # time steps per unrolled inner block


def plc_rnn_kernel(x_ref,
                   w_ih0_ref, w_hh0_ref, b0_ref,
                   w_ih1_ref, w_hh1_ref, b1_ref,
                   w_fc_ref, b_fc_ref,
                   out_ref,
                   h0_scr, h1_scr):
    """One (batch-tile, time-chunk) grid step of the 2-layer tanh RNN + fc."""
    T, B = x_ref.shape
    f32, bf16 = jnp.float32, jnp.bfloat16

    # Hidden state lives in VMEM scratch across time chunks; reset it only at
    # the start of each sequence (first time chunk of each batch tile).
    @pl.when(pl.program_id(1) == 0)
    def _():
        h0_scr[...] = jnp.zeros_like(h0_scr)
        h1_scr[...] = jnp.zeros_like(h1_scr)

    def block_step(blk, carry):
        h0, h1 = carry                      # (H, B) bf16, carried in vregs
        t0 = pl.multiple_of(blk * BLK, BLK)

        # Loop-invariant reads are issued per block (not hoisted above the
        # fori_loop) so nothing is forced live across the whole scan; vld has
        # plenty of slack next to the serial matmul/tanh chain.
        w_ih0 = w_ih0_ref[...]              # (H, 1)  f32
        w_hh0 = w_hh0_ref[...]              # (H, H)  bf16
        b0    = b0_ref[...]                 # (H, 1)  f32   (b_ih_l0 + b_hh_l0)
        w_ih1 = w_ih1_ref[...]              # (H, H)  bf16
        w_hh1 = w_hh1_ref[...]              # (H, H)  bf16
        b1    = b1_ref[...]                 # (H, 1)  f32   (b_ih_l1 + b_hh_l1)
        w_fc  = w_fc_ref[...]               # (8, H)  bf16  (fc.weight row, x8)
        b_fc  = b_fc_ref[...]               # (1, 1)  f32

        for j in range(BLK):                # unrolled x BLK
            xt = x_ref[pl.ds(t0 + j, 1), :]                     # (1, B) f32
            # layer 0: h0 = tanh(W_hh0 @ h0 + w_ih0 * x_t + b0)
            pre0 = (jnp.dot(w_hh0, h0, preferred_element_type=f32)
                    + w_ih0 * xt + b0)
            h0 = jnp.tanh(pre0).astype(bf16)
            # layer 1: two accumulating K=128 matmuls (no concat on the VALU path)
            pre1 = (jnp.dot(w_ih1, h0, preferred_element_type=f32)
                    + jnp.dot(w_hh1, h1, preferred_element_type=f32)
                    + b1)
            h1 = jnp.tanh(pre1).astype(bf16)
            # fc head on the (idle) MXU: (8,H)@(H,B) with replicated rows,
            # keep row 0.  Direct lane-dense row store, no list staging.
            yb = jnp.dot(w_fc, h1, preferred_element_type=f32)  # (8, B) f32
            out_ref[pl.ds(t0 + j, 1), :] = yb[0:1, :] + b_fc
        return h0, h1

    h0_fin, h1_fin = lax.fori_loop(
        0, T // BLK, block_step, (h0_scr[...], h1_scr[...]))
    h0_scr[...] = h0_fin
    h1_scr[...] = h1_fin


@functools.partial(jax.jit, static_argnames=("time_chunk", "batch_tile"))
def plc_forward(x, params, time_chunk=1024, batch_tile=None):
    """x: (B, S, 1) float32 -> (B, S, 1) float32 (matches PyTorch PLCModel)."""
    (w_ih0, w_hh0, b_ih0, b_hh0,
     w_ih1, w_hh1, b_ih1, b_hh1, w_fc, b_fc) = params

    B, S, _ = x.shape
    f32, bf16 = jnp.float32, jnp.bfloat16

    # ---- batch tile: 128 lanes by default; 256 on the 256-wide-MXU chips when
    # there are enough batch columns to fill it (also gives nb>=2 on v7x sooner).
    if batch_tile is None:
        kind = jax.devices()[0].device_kind.lower()
        wide_mxu = ("v6" in kind) or ("v7" in kind)
        batch_tile = 256 if (wide_mxu and B > 128) else 128

    B_pad = ((B + batch_tile - 1) // batch_tile) * batch_tile

    # ---- time chunk (multiple of BLK); hidden state persists across chunks.
    tc = max(BLK, (time_chunk // BLK) * BLK)
    s_ceil = ((S + BLK - 1) // BLK) * BLK
    T = min(tc, s_ceil)
    S_pad = ((S + T - 1) // T) * T

    # time-major, batch-on-lanes input (padded time steps / batch columns are
    # zeros and only affect padded outputs, which are sliced away below).
    x_bs = jnp.pad(x[..., 0].astype(f32), ((0, B_pad - B), (0, S_pad - S)))
    x_sb = x_bs.T                                            # (S_pad, B_pad)

    # ---- resident weights: bf16 on the MXU, f32 biases / input column --------
    b0 = (b_ih0 + b_hh0).astype(f32)[:, None]                # (H, 1)
    b1 = (b_ih1 + b_hh1).astype(f32)[:, None]                # (H, 1)
    w_ih0_f  = w_ih0.astype(f32)                             # (H, 1)
    w_hh0_bf = w_hh0.astype(bf16)                            # (H, H)
    w_ih1_bf = w_ih1.astype(bf16)                            # (H, H)
    w_hh1_bf = w_hh1.astype(bf16)                            # (H, H)
    w_fc_rep = jnp.broadcast_to(w_fc.astype(bf16), (8, HIDDEN))  # (8, H)
    b_fc_2d  = b_fc.astype(f32).reshape(1, 1)                # (1, 1)

    nb = B_pad // batch_tile
    nt = S_pad // T

    resident = lambda shp: pl.BlockSpec(shp, lambda b, t: (0,) * len(shp))

    out_sb = pl.pallas_call(
        plc_rnn_kernel,
        out_shape=jax.ShapeDtypeStruct((S_pad, B_pad), f32),
        grid=(nb, nt),
        in_specs=[
            pl.BlockSpec((T, batch_tile), lambda b, t: (t, b)),   # x chunk
            resident((HIDDEN, 1)),                                # W_ih_l0 (f32)
            resident((HIDDEN, HIDDEN)),                           # W_hh_l0 (bf16)
            resident((HIDDEN, 1)),                                # b0
            resident((HIDDEN, HIDDEN)),                           # W_ih_l1 (bf16)
            resident((HIDDEN, HIDDEN)),                           # W_hh_l1 (bf16)
            resident((HIDDEN, 1)),                                # b1
            resident((8, HIDDEN)),                                # fc.weight (x8, bf16)
            resident((1, 1)),                                     # fc.bias
        ],
        out_specs=pl.BlockSpec((T, batch_tile), lambda b, t: (t, b)),
        scratch_shapes=[pltpu.VMEM((HIDDEN, batch_tile), bf16),
                        pltpu.VMEM((HIDDEN, batch_tile), bf16)],
        compiler_params=pltpu.CompilerParams(
            dimension_semantics=("parallel", "arbitrary")),
    )(x_sb, w_ih0_f, w_hh0_bf, b0, w_ih1_bf, w_hh1_bf, b1, w_fc_rep, b_fc_2d)

    return out_sb[:S, :B].T[..., None]                        # (B, S, 1)


def init_params(key):
    """Deterministic init matching PyTorch nn.RNN / nn.Linear parameter shapes."""
    k = 1.0 / jnp.sqrt(jnp.float32(HIDDEN))
    keys = jax.random.split(key, 10)
    u = lambda kk, shp: jax.random.uniform(kk, shp, jnp.float32, -k, k)
    return (u(keys[0], (HIDDEN, INPUT)),      # rnn.weight_ih_l0
            u(keys[1], (HIDDEN, HIDDEN)),     # rnn.weight_hh_l0
            u(keys[2], (HIDDEN,)),            # rnn.bias_ih_l0
            u(keys[3], (HIDDEN,)),            # rnn.bias_hh_l0
            u(keys[4], (HIDDEN, HIDDEN)),     # rnn.weight_ih_l1
            u(keys[5], (HIDDEN, HIDDEN)),     # rnn.weight_hh_l1
            u(keys[6], (HIDDEN,)),            # rnn.bias_ih_l1
            u(keys[7], (HIDDEN,)),            # rnn.bias_hh_l1
            u(keys[8], (INPUT, HIDDEN)),      # fc.weight
            u(keys[9], (INPUT,)))             # fc.bias


def ref_forward(x, params):
    """Pure-JAX reference matching torch semantics, using the same bf16 weight /
    hidden-state precision on the matmuls as the kernel (f32 accumulate / tanh)."""
    (w_ih0, w_hh0, b_ih0, b_hh0,
     w_ih1, w_hh1, b_ih1, b_hh1, w_fc, b_fc) = params
    f32, bf16 = jnp.float32, jnp.bfloat16
    B, S, _ = x.shape
    w_hh0_b = w_hh0.astype(bf16)
    w_ih1_b = w_ih1.astype(bf16)
    w_hh1_b = w_hh1.astype(bf16)
    w_fc_b  = w_fc.astype(bf16)
    h0 = jnp.zeros((B, HIDDEN), f32)
    h1 = jnp.zeros((B, HIDDEN), f32)
    outs = []
    for t in range(S):
        xt = x[:, t, :].astype(f32)                           # (B, 1)
        pre0 = (xt @ w_ih0.T
                + jnp.dot(h0.astype(bf16), w_hh0_b.T, preferred_element_type=f32)
                + b_ih0 + b_hh0)
        h0 = jnp.tanh(pre0)
        pre1 = (jnp.dot(h0.astype(bf16), w_ih1_b.T, preferred_element_type=f32)
                + jnp.dot(h1.astype(bf16), w_hh1_b.T, preferred_element_type=f32)
                + b_ih1 + b_hh1)
        h1 = jnp.tanh(pre1)
        outs.append(jnp.dot(h1.astype(bf16), w_fc_b.T,
                            preferred_element_type=f32) + b_fc)   # (B, 1)
    return jnp.stack(outs, axis=1)                            # (B, S, 1)


if __name__ == "__main__":
    key = jax.random.PRNGKey(0)
    k_x1, k_x2, k_p = jax.random.split(key, 3)
    params = init_params(k_p)

    # Small single-chunk case (matches the PyTorch module: input_size=1, hidden=128).
    B1, S1 = 2, 8
    x1 = jax.random.normal(k_x1, (B1, S1, INPUT), jnp.float32)
    out1 = jax.block_until_ready(plc_forward(x1, params))
    ref1 = jax.block_until_ready(ref_forward(x1, params))
    assert out1.shape == (B1, S1, INPUT)
    assert jnp.allclose(out1, ref1, atol=5e-3, rtol=5e-3), (
        f"max abs err {jnp.max(jnp.abs(out1 - ref1))}")

    # Multi-time-chunk case: exercises hidden-state persistence across grid steps.
    B2, S2 = 3, 24
    x2 = jax.random.normal(k_x2, (B2, S2, INPUT), jnp.float32)
    out2 = jax.block_until_ready(plc_forward(x2, params, time_chunk=8))
    ref2 = jax.block_until_ready(ref_forward(x2, params))
    assert out2.shape == (B2, S2, INPUT)
    assert jnp.allclose(out2, ref2, atol=5e-3, rtol=5e-3), (
        f"max abs err {jnp.max(jnp.abs(out2 - ref2))}")

    print("KERNEL_OK")
</pallas_src>

<mosaic_0001>
module attributes {stable_mosaic.version = 11 : i64} {
  func.func @plc_rnn_kernel(%arg0: i32, %arg1: i32, %arg2: memref<8x128xf32, #tpu.memory_space<vmem>>, %arg3: memref<128x1xf32, #tpu.memory_space<vmem>>, %arg4: memref<128x128xbf16, #tpu.memory_space<vmem>>, %arg5: memref<128x1xf32, #tpu.memory_space<vmem>>, %arg6: memref<128x128xbf16, #tpu.memory_space<vmem>>, %arg7: memref<128x128xbf16, #tpu.memory_space<vmem>>, %arg8: memref<128x1xf32, #tpu.memory_space<vmem>>, %arg9: memref<8x128xbf16, #tpu.memory_space<vmem>>, %arg10: memref<1x1xf32, #tpu.memory_space<vmem>>, %arg11: memref<8x128xf32, #tpu.memory_space<vmem>>, %arg12: memref<128x128xbf16, #tpu.memory_space<vmem>>, %arg13: memref<128x128xbf16, #tpu.memory_space<vmem>>) attributes {dimension_semantics = [#tpu.dimension_semantics<parallel>, #tpu.dimension_semantics<arbitrary>], iteration_bounds = array<i64: 1, 1>, scalar_prefetch = 0 : i64, scratch_operands = 2 : i64, tpu.core_type = #tpu.core_type<tc>, window_params = [{transform_indices = @transform_0, window_bounds = array<i64: 8, 128>}, {pipeline_mode = #tpu.pipeline_mode<synchronous>, transform_indices = @transform_1, window_bounds = array<i64: 128, 1>}, {pipeline_mode = #tpu.pipeline_mode<synchronous>, transform_indices = @transform_2, window_bounds = array<i64: 128, 128>}, {pipeline_mode = #tpu.pipeline_mode<synchronous>, transform_indices = @transform_3, window_bounds = array<i64: 128, 1>}, {pipeline_mode = #tpu.pipeline_mode<synchronous>, transform_indices = @transform_4, window_bounds = array<i64: 128, 128>}, {pipeline_mode = #tpu.pipeline_mode<synchronous>, transform_indices = @transform_5, window_bounds = array<i64: 128, 128>}, {pipeline_mode = #tpu.pipeline_mode<synchronous>, transform_indices = @transform_6, window_bounds = array<i64: 128, 1>}, {pipeline_mode = #tpu.pipeline_mode<synchronous>, transform_indices = @transform_7, window_bounds = array<i64: 8, 128>}, {pipeline_mode = #tpu.pipeline_mode<synchronous>, transform_indices = @transform_8, window_bounds = array<i64: 1, 1>}, {transform_indices = @transform_9, window_bounds = array<i64: 8, 128>}]} {
    %c0_i32 = arith.constant 0 : i32
    %0 = arith.cmpi eq, %arg1, %c0_i32 : i32
    %1 = arith.extui %0 : i1 to i32
    %c0_i32_0 = arith.constant 0 : i32
    %2 = arith.cmpi ne, %1, %c0_i32_0 : i32
    scf.if %2 {
      %cst_82 = arith.constant 0.000000e+00 : bf16
      %225 = vector.broadcast %cst_82 : bf16 to vector<128x128xbf16>
      %c0_83 = arith.constant 0 : index
      %c0_84 = arith.constant 0 : index
      %226 = vector.load %arg12[%c0_83, %c0_84] : memref<128x128xbf16, #tpu.memory_space<vmem>>, vector<128x128xbf16>
      tpu.vector_store %arg12[%c0_83, %c0_84], %225 {strides = array<i32>} : memref<128x128xbf16, #tpu.memory_space<vmem>>, vector<128x128xbf16>,
      %cst_85 = arith.constant 0.000000e+00 : bf16
      %227 = vector.broadcast %cst_85 : bf16 to vector<128x128xbf16>
      %c0_86 = arith.constant 0 : index
      %c0_87 = arith.constant 0 : index
      %228 = vector.load %arg13[%c0_86, %c0_87] : memref<128x128xbf16, #tpu.memory_space<vmem>>, vector<128x128xbf16>
      tpu.vector_store %arg13[%c0_86, %c0_87], %227 {strides = array<i32>} : memref<128x128xbf16, #tpu.memory_space<vmem>>, vector<128x128xbf16>,
    } else {
    }
    %c0 = arith.constant 0 : index
    %c0_1 = arith.constant 0 : index
    %3 = vector.load %arg12[%c0, %c0_1] : memref<128x128xbf16, #tpu.memory_space<vmem>>, vector<128x128xbf16>
    %c0_2 = arith.constant 0 : index
    %c0_3 = arith.constant 0 : index
    %4 = vector.load %arg13[%c0_2, %c0_3] : memref<128x128xbf16, #tpu.memory_space<vmem>>, vector<128x128xbf16>
    %c0_i32_4 = arith.constant 0 : i32
    %c8_i32 = arith.constant 8 : i32
    %5 = arith.muli %c0_i32_4, %c8_i32 : i32
    %6 = tpu.assume_multiple %5, 8 : i32
    %c0_5 = arith.constant 0 : index
    %c0_6 = arith.constant 0 : index
    %7 = vector.load %arg3[%c0_5, %c0_6] : memref<128x1xf32, #tpu.memory_space<vmem>>, vector<128x1xf32>
    %c0_7 = arith.constant 0 : index
    %c0_8 = arith.constant 0 : index
    %8 = vector.load %arg4[%c0_7, %c0_8] : memref<128x128xbf16, #tpu.memory_space<vmem>>, vector<128x128xbf16>
    %c0_9 = arith.constant 0 : index
    %c0_10 = arith.constant 0 : index
    %9 = vector.load %arg5[%c0_9, %c0_10] : memref<128x1xf32, #tpu.memory_space<vmem>>, vector<128x1xf32>
    %c0_11 = arith.constant 0 : index
    %c0_12 = arith.constant 0 : index
    %10 = vector.load %arg6[%c0_11, %c0_12] : memref<128x128xbf16, #tpu.memory_space<vmem>>, vector<128x128xbf16>
    %c0_13 = arith.constant 0 : index
    %c0_14 = arith.constant 0 : index
    %11 = vector.load %arg7[%c0_13, %c0_14] : memref<128x128xbf16, #tpu.memory_space<vmem>>, vector<128x128xbf16>
    %c0_15 = arith.constant 0 : index
    %c0_16 = arith.constant 0 : index
    %12 = vector.load %arg8[%c0_15, %c0_16] : memref<128x1xf32, #tpu.memory_space<vmem>>, vector<128x1xf32>
    %c0_17 = arith.constant 0 : index
    %c0_18 = arith.constant 0 : index
    %13 = vector.load %arg9[%c0_17, %c0_18] : memref<8x128xbf16, #tpu.memory_space<vmem>>, vector<8x128xbf16>
    %c0_19 = arith.constant 0 : index
    %c0_20 = arith.constant 0 : index
    %14 = vector.load %arg10[%c0_19, %c0_20] : memref<1x1xf32, #tpu.memory_space<vmem>>, vector<1x1xf32>
    %c0_i32_21 = arith.constant 0 : i32
    %15 = arith.addi %6, %c0_i32_21 : i32
    %16 = arith.index_cast %15 : i32 to index
    %c0_22 = arith.constant 0 : index
    %17 = vector.load %arg2[%16, %c0_22] : memref<8x128xf32, #tpu.memory_space<vmem>>, vector<1x128xf32>
    %cst = arith.constant dense<0.000000e+00> : vector<128x128xf32>
    %18 = tpu.matmul %8, %3, %cst {dimension_numbers = #tpu.dot_dimension_numbers<[1], [0], [0], [1], [0, 0, 1, 1], [], []>} : vector<128x128xbf16>, vector<128x128xbf16>, vector<128x128xf32> -> vector<128x128xf32>
    %19 = vector.broadcast %7 : vector<128x1xf32> to vector<128x128xf32>
    %20 = vector.broadcast %17 : vector<1x128xf32> to vector<128x128xf32>
    %21 = arith.mulf %19, %20 : vector<128x128xf32>
    %22 = arith.addf %18, %21 : vector<128x128xf32>
    %23 = vector.broadcast %9 : vector<128x1xf32> to vector<128x128xf32>
    %24 = arith.addf %22, %23 : vector<128x128xf32>
    %25 = math.tanh %24 : vector<128x128xf32>
    %26 = arith.truncf %25 : vector<128x128xf32> to vector<128x128xbf16>
    %cst_23 = arith.constant dense<0.000000e+00> : vector<128x128xf32>
    %27 = tpu.matmul %10, %26, %cst_23 {dimension_numbers = #tpu.dot_dimension_numbers<[1], [0], [0], [1], [0, 0, 1, 1], [], []>} : vector<128x128xbf16>, vector<128x128xbf16>, vector<128x128xf32> -> vector<128x128xf32>
    %cst_24 = arith.constant dense<0.000000e+00> : vector<128x128xf32>
    %28 = tpu.matmul %11, %4, %cst_24 {dimension_numbers = #tpu.dot_dimension_numbers<[1], [0], [0], [1], [0, 0, 1, 1], [], []>} : vector<128x128xbf16>, vector<128x128xbf16>, vector<128x128xf32> -> vector<128x128xf32>
    %29 = arith.addf %27, %28 : vector<128x128xf32>
    %30 = vector.broadcast %12 : vector<128x1xf32> to vector<128x128xf32>
    %31 = arith.addf %29, %30 : vector<128x128xf32>
    %32 = math.tanh %31 : vector<128x128xf32>
    %33 = arith.truncf %32 : vector<128x128xf32> to vector<128x128xbf16>
    %cst_25 = arith.constant dense<0.000000e+00> : vector<8x128xf32>
    %34 = tpu.matmul %13, %33, %cst_25 {dimension_numbers = #tpu.dot_dimension_numbers<[1], [0], [0], [1], [0, 0, 1, 1], [], []>} : vector<8x128xbf16>, vector<128x128xbf16>, vector<8x128xf32> -> vector<8x128xf32>
    %35 = vector.extract_strided_slice %34 {offsets = [0, 0], sizes = [1, 128], strides = [1, 1]} : vector<8x128xf32> to vector<1x128xf32>
    %36 = vector.broadcast %14 : vector<1x1xf32> to vector<1x128xf32>
    %37 = arith.addf %35, %36 : vector<1x128xf32>
    %c0_i32_26 = arith.constant 0 : i32
    %38 = arith.addi %6, %c0_i32_26 : i32
    %39 = arith.index_cast %38 : i32 to index
    %c0_27 = arith.constant 0 : index
    %40 = vector.load %arg11[%39, %c0_27] : memref<8x128xf32, #tpu.memory_space<vmem>>, vector<1x128xf32>
    tpu.vector_store %arg11[%39, %c0_27], %37 {strides = array<i32>} : memref<8x128xf32, #tpu.memory_space<vmem>>, vector<1x128xf32>,
    %c1_i32 = arith.constant 1 : i32
    %41 = arith.addi %6, %c1_i32 : i32
    %42 = arith.index_cast %41 : i32 to index
    %c0_28 = arith.constant 0 : index
    %43 = vector.load %arg2[%42, %c0_28] : memref<8x128xf32, #tpu.memory_space<vmem>>, vector<1x128xf32>
    %cst_29 = arith.constant dense<0.000000e+00> : vector<128x128xf32>
    %44 = tpu.matmul %8, %26, %cst_29 {dimension_numbers = #tpu.dot_dimension_numbers<[1], [0], [0], [1], [0, 0, 1, 1], [], []>} : vector<128x128xbf16>, vector<128x128xbf16>, vector<128x128xf32> -> vector<128x128xf32>
    %45 = vector.broadcast %7 : vector<128x1xf32> to vector<128x128xf32>
    %46 = vector.broadcast %43 : vector<1x128xf32> to vector<128x128xf32>
    %47 = arith.mulf %45, %46 : vector<128x128xf32>
    %48 = arith.addf %44, %47 : vector<128x128xf32>
    %49 = vector.broadcast %9 : vector<128x1xf32> to vector<128x128xf32>
    %50 = arith.addf %48, %49 : vector<128x128xf32>
    %51 = math.tanh %50 : vector<128x128xf32>
    %52 = arith.truncf %51 : vector<128x128xf32> to vector<128x128xbf16>
    %cst_30 = arith.constant dense<0.000000e+00> : vector<128x128xf32>
    %53 = tpu.matmul %10, %52, %cst_30 {dimension_numbers = #tpu.dot_dimension_numbers<[1], [0], [0], [1], [0, 0, 1, 1], [], []>} : vector<128x128xbf16>, vector<128x128xbf16>, vector<128x128xf32> -> vector<128x128xf32>
    %cst_31 = arith.constant dense<0.000000e+00> : vector<128x128xf32>
    %54 = tpu.matmul %11, %33, %cst_31 {dimension_numbers = #tpu.dot_dimension_numbers<[1], [0], [0], [1], [0, 0, 1, 1], [], []>} : vector<128x128xbf16>, vector<128x128xbf16>, vector<128x128xf32> -> vector<128x128xf32>
    %55 = arith.addf %53, %54 : vector<128x128xf32>
    %56 = vector.broadcast %12 : vector<128x1xf32> to vector<128x128xf32>
    %57 = arith.addf %55, %56 : vector<128x128xf32>
    %58 = math.tanh %57 : vector<128x128xf32>
    %59 = arith.truncf %58 : vector<128x128xf32> to vector<128x128xbf16>
    %cst_32 = arith.constant dense<0.000000e+00> : vector<8x128xf32>
    %60 = tpu.matmul %13, %59, %cst_32 {dimension_numbers = #tpu.dot_dimension_numbers<[1], [0], [0], [1], [0, 0, 1, 1], [], []>} : vector<8x128xbf16>, vector<128x128xbf16>, vector<8x128xf32> -> vector<8x128xf32>
    %61 = vector.extract_strided_slice %60 {offsets = [0, 0], sizes = [1, 128], strides = [1, 1]} : vector<8x128xf32> to vector<1x128xf32>
    %62 = vector.broadcast %14 : vector<1x1xf32> to vector<1x128xf32>
    %63 = arith.addf %61, %62 : vector<1x128xf32>
    %c1_i32_33 = arith.constant 1 : i32
    %64 = arith.addi %6, %c1_i32_33 : i32
    %65 = arith.index_cast %64 : i32 to index
    %c0_34 = arith.constant 0 : index
    %66 = vector.load %arg11[%65, %c0_34] : memref<8x128xf32, #tpu.memory_space<vmem>>, vector<1x128xf32>
    tpu.vector_store %arg11[%65, %c0_34], %63 {strides = array<i32>} : memref<8x128xf32, #tpu.memory_space<vmem>>, vector<1x128xf32>,
    %c2_i32 = arith.constant 2 : i32
    %67 = arith.addi %6, %c2_i32 : i32
    %68 = arith.index_cast %67 : i32 to index
    %c0_35 = arith.constant 0 : index
    %69 = vector.load %arg2[%68, %c0_35] : memref<8x128xf32, #tpu.memory_space<vmem>>, vector<1x128xf32>
    %cst_36 = arith.constant dense<0.000000e+00> : vector<128x128xf32>
    %70 = tpu.matmul %8, %52, %cst_36 {dimension_numbers = #tpu.dot_dimension_numbers<[1], [0], [0], [1], [0, 0, 1, 1], [], []>} : vector<128x128xbf16>, vector<128x128xbf16>, vector<128x128xf32> -> vector<128x128xf32>
    %71 = vector.broadcast %7 : vector<128x1xf32> to vector<128x128xf32>
    %72 = vector.broadcast %69 : vector<1x128xf32> to vector<128x128xf32>
    %73 = arith.mulf %71, %72 : vector<128x128xf32>
    %74 = arith.addf %70, %73 : vector<128x128xf32>
    %75 = vector.broadcast %9 : vector<128x1xf32> to vector<128x128xf32>
    %76 = arith.addf %74, %75 : vector<128x128xf32>
    %77 = math.tanh %76 : vector<128x128xf32>
    %78 = arith.truncf %77 : vector<128x128xf32> to vector<128x128xbf16>
    %cst_37 = arith.constant dense<0.000000e+00> : vector<128x128xf32>
    %79 = tpu.matmul %10, %78, %cst_37 {dimension_numbers = #tpu.dot_dimension_numbers<[1], [0], [0], [1], [0, 0, 1, 1], [], []>} : vector<128x128xbf16>, vector<128x128xbf16>, vector<128x128xf32> -> vector<128x128xf32>
    %cst_38 = arith.constant dense<0.000000e+00> : vector<128x128xf32>
    %80 = tpu.matmul %11, %59, %cst_38 {dimension_numbers = #tpu.dot_dimension_numbers<[1], [0], [0], [1], [0, 0, 1, 1], [], []>} : vector<128x128xbf16>, vector<128x128xbf16>, vector<128x128xf32> -> vector<128x128xf32>
    %81 = arith.addf %79, %80 : vector<128x128xf32>
    %82 = vector.broadcast %12 : vector<128x1xf32> to vector<128x128xf32>
    %83 = arith.addf %81, %82 : vector<128x128xf32>
    %84 = math.tanh %83 : vector<128x128xf32>
    %85 = arith.truncf %84 : vector<128x128xf32> to vector<128x128xbf16>
    %cst_39 = arith.constant dense<0.000000e+00> : vector<8x128xf32>
    %86 = tpu.matmul %13, %85, %cst_39 {dimension_numbers = #tpu.dot_dimension_numbers<[1], [0], [0], [1], [0, 0, 1, 1], [], []>} : vector<8x128xbf16>, vector<128x128xbf16>, vector<8x128xf32> -> vector<8x128xf32>
    %87 = vector.extract_strided_slice %86 {offsets = [0, 0], sizes = [1, 128], strides = [1, 1]} : vector<8x128xf32> to vector<1x128xf32>
    %88 = vector.broadcast %14 : vector<1x1xf32> to vector<1x128xf32>
    %89 = arith.addf %87, %88 : vector<1x128xf32>
    %c2_i32_40 = arith.constant 2 : i32
    %90 = arith.addi %6, %c2_i32_40 : i32
    %91 = arith.index_cast %90 : i32 to index
    %c0_41 = arith.constant 0 : index
    %92 = vector.load %arg11[%91, %c0_41] : memref<8x128xf32, #tpu.memory_space<vmem>>, vector<1x128xf32>
    tpu.vector_store %arg11[%91, %c0_41], %89 {strides = array<i32>} : memref<8x128xf32, #tpu.memory_space<vmem>>, vector<1x128xf32>,
    %c3_i32 = arith.constant 3 : i32
    %93 = arith.addi %6, %c3_i32 : i32
    %94 = arith.index_cast %93 : i32 to index
    %c0_42 = arith.constant 0 : index
    %95 = vector.load %arg2[%94, %c0_42] : memref<8x128xf32, #tpu.memory_space<vmem>>, vector<1x128xf32>
    %cst_43 = arith.constant dense<0.000000e+00> : vector<128x128xf32>
    %96 = tpu.matmul %8, %78, %cst_43 {dimension_numbers = #tpu.dot_dimension_numbers<[1], [0], [0], [1], [0, 0, 1, 1], [], []>} : vector<128x128xbf16>, vector<128x128xbf16>, vector<128x128xf32> -> vector<128x128xf32>
    %97 = vector.broadcast %7 : vector<128x1xf32> to vector<128x128xf32>
    %98 = vector.broadcast %95 : vector<1x128xf32> to vector<128x128xf32>
    %99 = arith.mulf %97, %98 : vector<128x128xf32>
    %100 = arith.addf %96, %99 : vector<128x128xf32>
    %101 = vector.broadcast %9 : vector<128x1xf32> to vector<128x128xf32>
    %102 = arith.addf %100, %101 : vector<128x128xf32>
    %103 = math.tanh %102 : vector<128x128xf32>
    %104 = arith.truncf %103 : vector<128x128xf32> to vector<128x128xbf16>
    %cst_44 = arith.constant dense<0.000000e+00> : vector<128x128xf32>
    %105 = tpu.matmul %10, %104, %cst_44 {dimension_numbers = #tpu.dot_dimension_numbers<[1], [0], [0], [1], [0, 0, 1, 1], [], []>} : vector<128x128xbf16>, vector<128x128xbf16>, vector<128x128xf32> -> vector<128x128xf32>
    %cst_45 = arith.constant dense<0.000000e+00> : vector<128x128xf32>
    %106 = tpu.matmul %11, %85, %cst_45 {dimension_numbers = #tpu.dot_dimension_numbers<[1], [0], [0], [1], [0, 0, 1, 1], [], []>} : vector<128x128xbf16>, vector<128x128xbf16>, vector<128x128xf32> -> vector<128x128xf32>
    %107 = arith.addf %105, %106 : vector<128x128xf32>
    %108 = vector.broadcast %12 : vector<128x1xf32> to vector<128x128xf32>
    %109 = arith.addf %107, %108 : vector<128x128xf32>
    %110 = math.tanh %109 : vector<128x128xf32>
    %111 = arith.truncf %110 : vector<128x128xf32> to vector<128x128xbf16>
    %cst_46 = arith.constant dense<0.000000e+00> : vector<8x128xf32>
    %112 = tpu.matmul %13, %111, %cst_46 {dimension_numbers = #tpu.dot_dimension_numbers<[1], [0], [0], [1], [0, 0, 1, 1], [], []>} : vector<8x128xbf16>, vector<128x128xbf16>, vector<8x128xf32> -> vector<8x128xf32>
    %113 = vector.extract_strided_slice %112 {offsets = [0, 0], sizes = [1, 128], strides = [1, 1]} : vector<8x128xf32> to vector<1x128xf32>
    %114 = vector.broadcast %14 : vector<1x1xf32> to vector<1x128xf32>
    %115 = arith.addf %113, %114 : vector<1x128xf32>
    %c3_i32_47 = arith.constant 3 : i32
    %116 = arith.addi %6, %c3_i32_47 : i32
    %117 = arith.index_cast %116 : i32 to index
    %c0_48 = arith.constant 0 : index
    %118 = vector.load %arg11[%117, %c0_48] : memref<8x128xf32, #tpu.memory_space<vmem>>, vector<1x128xf32>
    tpu.vector_store %arg11[%117, %c0_48], %115 {strides = array<i32>} : memref<8x128xf32, #tpu.memory_space<vmem>>, vector<1x128xf32>,
    %c4_i32 = arith.constant 4 : i32
    %119 = arith.addi %6, %c4_i32 : i32
    %120 = arith.index_cast %119 : i32 to index
    %c0_49 = arith.constant 0 : index
    %121 = vector.load %arg2[%120, %c0_49] : memref<8x128xf32, #tpu.memory_space<vmem>>, vector<1x128xf32>
    %cst_50 = arith.constant dense<0.000000e+00> : vector<128x128xf32>
    %122 = tpu.matmul %8, %104, %cst_50 {dimension_numbers = #tpu.dot_dimension_numbers<[1], [0], [0], [1], [0, 0, 1, 1], [], []>} : vector<128x128xbf16>, vector<128x128xbf16>, vector<128x128xf32> -> vector<128x128xf32>
    %123 = vector.broadcast %7 : vector<128x1xf32> to vector<128x128xf32>
    %124 = vector.broadcast %121 : vector<1x128xf32> to vector<128x128xf32>
    %125 = arith.mulf %123, %124 : vector<128x128xf32>
    %126 = arith.addf %122, %125 : vector<128x128xf32>
    %127 = vector.broadcast %9 : vector<128x1xf32> to vector<128x128xf32>
    %128 = arith.addf %126, %127 : vector<128x128xf32>
    %129 = math.tanh %128 : vector<128x128xf32>
    %130 = arith.truncf %129 : vector<128x128xf32> to vector<128x128xbf16>
    %cst_51 = arith.constant dense<0.000000e+00> : vector<128x128xf32>
    %131 = tpu.matmul %10, %130, %cst_51 {dimension_numbers = #tpu.dot_dimension_numbers<[1], [0], [0], [1], [0, 0, 1, 1], [], []>} : vector<128x128xbf16>, vector<128x128xbf16>, vector<128x128xf32> -> vector<128x128xf32>
    %cst_52 = arith.constant dense<0.000000e+00> : vector<128x128xf32>
    %132 = tpu.matmul %11, %111, %cst_52 {dimension_numbers = #tpu.dot_dimension_numbers<[1], [0], [0], [1], [0, 0, 1, 1], [], []>} : vector<128x128xbf16>, vector<128x128xbf16>, vector<128x128xf32> -> vector<128x128xf32>
    %133 = arith.addf %131, %132 : vector<128x128xf32>
    %134 = vector.broadcast %12 : vector<128x1xf32> to vector<128x128xf32>
    %135 = arith.addf %133, %134 : vector<128x128xf32>
    %136 = math.tanh %135 : vector<128x128xf32>
    %137 = arith.truncf %136 : vector<128x128xf32> to vector<128x128xbf16>
    %cst_53 = arith.constant dense<0.000000e+00> : vector<8x128xf32>
    %138 = tpu.matmul %13, %137, %cst_53 {dimension_numbers = #tpu.dot_dimension_numbers<[1], [0], [0], [1], [0, 0, 1, 1], [], []>} : vector<8x128xbf16>, vector<128x128xbf16>, vector<8x128xf32> -> vector<8x128xf32>
    %139 = vector.extract_strided_slice %138 {offsets = [0, 0], sizes = [1, 128], strides = [1, 1]} : vector<8x128xf32> to vector<1x128xf32>
    %140 = vector.broadcast %14 : vector<1x1xf32> to vector<1x128xf32>
    %141 = arith.addf %139, %140 : vector<1x128xf32>
    %c4_i32_54 = arith.constant 4 : i32
    %142 = arith.addi %6, %c4_i32_54 : i32
    %143 = arith.index_cast %142 : i32 to index
    %c0_55 = arith.constant 0 : index
    %144 = vector.load %arg11[%143, %c0_55] : memref<8x128xf32, #tpu.memory_space<vmem>>, vector<1x128xf32>
    tpu.vector_store %arg11[%143, %c0_55], %141 {strides = array<i32>} : memref<8x128xf32, #tpu.memory_space<vmem>>, vector<1x128xf32>,
    %c5_i32 = arith.constant 5 : i32
    %145 = arith.addi %6, %c5_i32 : i32
    %146 = arith.index_cast %145 : i32 to index
    %c0_56 = arith.constant 0 : index
    %147 = vector.load %arg2[%146, %c0_56] : memref<8x128xf32, #tpu.memory_space<vmem>>, vector<1x128xf32>
    %cst_57 = arith.constant dense<0.000000e+00> : vector<128x128xf32>
    %148 = tpu.matmul %8, %130, %cst_57 {dimension_numbers = #tpu.dot_dimension_numbers<[1], [0], [0], [1], [0, 0, 1, 1], [], []>} : vector<128x128xbf16>, vector<128x128xbf16>, vector<128x128xf32> -> vector<128x128xf32>
    %149 = vector.broadcast %7 : vector<128x1xf32> to vector<128x128xf32>
    %150 = vector.broadcast %147 : vector<1x128xf32> to vector<128x128xf32>
    %151 = arith.mulf %149, %150 : vector<128x128xf32>
    %152 = arith.addf %148, %151 : vector<128x128xf32>
    %153 = vector.broadcast %9 : vector<128x1xf32> to vector<128x128xf32>
    %154 = arith.addf %152, %153 : vector<128x128xf32>
    %155 = math.tanh %154 : vector<128x128xf32>
    %156 = arith.truncf %155 : vector<128x128xf32> to vector<128x128xbf16>
    %cst_58 = arith.constant dense<0.000000e+00> : vector<128x128xf32>
    %157 = tpu.matmul %10, %156, %cst_58 {dimension_numbers = #tpu.dot_dimension_numbers<[1], [0], [0], [1], [0, 0, 1, 1], [], []>} : vector<128x128xbf16>, vector<128x128xbf16>, vector<128x128xf32> -> vector<128x128xf32>
    %cst_59 = arith.constant dense<0.000000e+00> : vector<128x128xf32>
    %158 = tpu.matmul %11, %137, %cst_59 {dimension_numbers = #tpu.dot_dimension_numbers<[1], [0], [0], [1], [0, 0, 1, 1], [], []>} : vector<128x128xbf16>, vector<128x128xbf16>, vector<128x128xf32> -> vector<128x128xf32>
    %159 = arith.addf %157, %158 : vector<128x128xf32>
    %160 = vector.broadcast %12 : vector<128x1xf32> to vector<128x128xf32>
    %161 = arith.addf %159, %160 : vector<128x128xf32>
    %162 = math.tanh %161 : vector<128x128xf32>
    %163 = arith.truncf %162 : vector<128x128xf32> to vector<128x128xbf16>
    %cst_60 = arith.constant dense<0.000000e+00> : vector<8x128xf32>
    %164 = tpu.matmul %13, %163, %cst_60 {dimension_numbers = #tpu.dot_dimension_numbers<[1], [0], [0], [1], [0, 0, 1, 1], [], []>} : vector<8x128xbf16>, vector<128x128xbf16>, vector<8x128xf32> -> vector<8x128xf32>
    %165 = vector.extract_strided_slice %164 {offsets = [0, 0], sizes = [1, 128], strides = [1, 1]} : vector<8x128xf32> to vector<1x128xf32>
    %166 = vector.broadcast %14 : vector<1x1xf32> to vector<1x128xf32>
    %167 = arith.addf %165, %166 : vector<1x128xf32>
    %c5_i32_61 = arith.constant 5 : i32
    %168 = arith.addi %6, %c5_i32_61 : i32
    %169 = arith.index_cast %168 : i32 to index
    %c0_62 = arith.constant 0 : index
    %170 = vector.load %arg11[%169, %c0_62] : memref<8x128xf32, #tpu.memory_space<vmem>>, vector<1x128xf32>
    tpu.vector_store %arg11[%169, %c0_62], %167 {strides = array<i32>} : memref<8x128xf32, #tpu.memory_space<vmem>>, vector<1x128xf32>,
    %c6_i32 = arith.constant 6 : i32
    %171 = arith.addi %6, %c6_i32 : i32
    %172 = arith.index_cast %171 : i32 to index
    %c0_63 = arith.constant 0 : index
    %173 = vector.load %arg2[%172, %c0_63] : memref<8x128xf32, #tpu.memory_space<vmem>>, vector<1x128xf32>
    %cst_64 = arith.constant dense<0.000000e+00> : vector<128x128xf32>
    %174 = tpu.matmul %8, %156, %cst_64 {dimension_numbers = #tpu.dot_dimension_numbers<[1], [0], [0], [1], [0, 0, 1, 1], [], []>} : vector<128x128xbf16>, vector<128x128xbf16>, vector<128x128xf32> -> vector<128x128xf32>
    %175 = vector.broadcast %7 : vector<128x1xf32> to vector<128x128xf32>
    %176 = vector.broadcast %173 : vector<1x128xf32> to vector<128x128xf32>
    %177 = arith.mulf %175, %176 : vector<128x128xf32>
    %178 = arith.addf %174, %177 : vector<128x128xf32>
    %179 = vector.broadcast %9 : vector<128x1xf32> to vector<128x128xf32>
    %180 = arith.addf %178, %179 : vector<128x128xf32>
    %181 = math.tanh %180 : vector<128x128xf32>
    %182 = arith.truncf %181 : vector<128x128xf32> to vector<128x128xbf16>
    %cst_65 = arith.constant dense<0.000000e+00> : vector<128x128xf32>
    %183 = tpu.matmul %10, %182, %cst_65 {dimension_numbers = #tpu.dot_dimension_numbers<[1], [0], [0], [1], [0, 0, 1, 1], [], []>} : vector<128x128xbf16>, vector<128x128xbf16>, vector<128x128xf32> -> vector<128x128xf32>
    %cst_66 = arith.constant dense<0.000000e+00> : vector<128x128xf32>
    %184 = tpu.matmul %11, %163, %cst_66 {dimension_numbers = #tpu.dot_dimension_numbers<[1], [0], [0], [1], [0, 0, 1, 1], [], []>} : vector<128x128xbf16>, vector<128x128xbf16>, vector<128x128xf32> -> vector<128x128xf32>
    %185 = arith.addf %183, %184 : vector<128x128xf32>
    %186 = vector.broadcast %12 : vector<128x1xf32> to vector<128x128xf32>
    %187 = arith.addf %185, %186 : vector<128x128xf32>
    %188 = math.tanh %187 : vector<128x128xf32>
    %189 = arith.truncf %188 : vector<128x128xf32> to vector<128x128xbf16>
    %cst_67 = arith.constant dense<0.000000e+00> : vector<8x128xf32>
    %190 = tpu.matmul %13, %189, %cst_67 {dimension_numbers = #tpu.dot_dimension_numbers<[1], [0], [0], [1], [0, 0, 1, 1], [], []>} : vector<8x128xbf16>, vector<128x128xbf16>, vector<8x128xf32> -> vector<8x128xf32>
    %191 = vector.extract_strided_slice %190 {offsets = [0, 0], sizes = [1, 128], strides = [1, 1]} : vector<8x128xf32> to vector<1x128xf32>
    %192 = vector.broadcast %14 : vector<1x1xf32> to vector<1x128xf32>
    %193 = arith.addf %191, %192 : vector<1x128xf32>
    %c6_i32_68 = arith.constant 6 : i32
    %194 = arith.addi %6, %c6_i32_68 : i32
    %195 = arith.index_cast %194 : i32 to index
    %c0_69 = arith.constant 0 : index
    %196 = vector.load %arg11[%195, %c0_69] : memref<8x128xf32, #tpu.memory_space<vmem>>, vector<1x128xf32>
    tpu.vector_store %arg11[%195, %c0_69], %193 {strides = array<i32>} : memref<8x128xf32, #tpu.memory_space<vmem>>, vector<1x128xf32>,
    %c7_i32 = arith.constant 7 : i32
    %197 = arith.addi %6, %c7_i32 : i32
    %198 = arith.index_cast %197 : i32 to index
    %c0_70 = arith.constant 0 : index
    %199 = vector.load %arg2[%198, %c0_70] : memref<8x128xf32, #tpu.memory_space<vmem>>, vector<1x128xf32>
    %cst_71 = arith.constant dense<0.000000e+00> : vector<128x128xf32>
    %200 = tpu.matmul %8, %182, %cst_71 {dimension_numbers = #tpu.dot_dimension_numbers<[1], [0], [0], [1], [0, 0, 1, 1], [], []>} : vector<128x128xbf16>, vector<128x128xbf16>, vector<128x128xf32> -> vector<128x128xf32>
    %201 = vector.broadcast %7 : vector<128x1xf32> to vector<128x128xf32>
    %202 = vector.broadcast %199 : vector<1x128xf32> to vector<128x128xf32>
    %203 = arith.mulf %201, %202 : vector<128x128xf32>
    %204 = arith.addf %200, %203 : vector<128x128xf32>
    %205 = vector.broadcast %9 : vector<128x1xf32> to vector<128x128xf32>
    %206 = arith.addf %204, %205 : vector<128x128xf32>
    %207 = math.tanh %206 : vector<128x128xf32>
    %208 = arith.truncf %207 : vector<128x128xf32> to vector<128x128xbf16>
    %cst_72 = arith.constant dense<0.000000e+00> : vector<128x128xf32>
    %209 = tpu.matmul %10, %208, %cst_72 {dimension_numbers = #tpu.dot_dimension_numbers<[1], [0], [0], [1], [0, 0, 1, 1], [], []>} : vector<128x128xbf16>, vector<128x128xbf16>, vector<128x128xf32> -> vector<128x128xf32>
    %cst_73 = arith.constant dense<0.000000e+00> : vector<128x128xf32>
    %210 = tpu.matmul %11, %189, %cst_73 {dimension_numbers = #tpu.dot_dimension_numbers<[1], [0], [0], [1], [0, 0, 1, 1], [], []>} : vector<128x128xbf16>, vector<128x128xbf16>, vector<128x128xf32> -> vector<128x128xf32>
    %211 = arith.addf %209, %210 : vector<128x128xf32>
    %212 = vector.broadcast %12 : vector<128x1xf32> to vector<128x128xf32>
    %213 = arith.addf %211, %212 : vector<128x128xf32>
    %214 = math.tanh %213 : vector<128x128xf32>
    %215 = arith.truncf %214 : vector<128x128xf32> to vector<128x128xbf16>
    %cst_74 = arith.constant dense<0.000000e+00> : vector<8x128xf32>
    %216 = tpu.matmul %13, %215, %cst_74 {dimension_numbers = #tpu.dot_dimension_numbers<[1], [0], [0], [1], [0, 0, 1, 1], [], []>} : vector<8x128xbf16>, vector<128x128xbf16>, vector<8x128xf32> -> vector<8x128xf32>
    %217 = vector.extract_strided_slice %216 {offsets = [0, 0], sizes = [1, 128], strides = [1, 1]} : vector<8x128xf32> to vector<1x128xf32>
    %218 = vector.broadcast %14 : vector<1x1xf32> to vector<1x128xf32>
    %219 = arith.addf %217, %218 : vector<1x128xf32>
    %c7_i32_75 = arith.constant 7 : i32
    %220 = arith.addi %6, %c7_i32_75 : i32
    %221 = arith.index_cast %220 : i32 to index
    %c0_76 = arith.constant 0 : index
    %222 = vector.load %arg11[%221, %c0_76] : memref<8x128xf32, #tpu.memory_space<vmem>>, vector<1x128xf32>
    tpu.vector_store %arg11[%221, %c0_76], %219 {strides = array<i32>} : memref<8x128xf32, #tpu.memory_space<vmem>>, vector<1x128xf32>,
    %c1_i32_77 = arith.constant 1 : i32
    %c0_78 = arith.constant 0 : index
    %c0_79 = arith.constant 0 : index
    %223 = vector.load %arg12[%c0_78, %c0_79] : memref<128x128xbf16, #tpu.memory_space<vmem>>, vector<128x128xbf16>
    tpu.vector_store %arg12[%c0_78, %c0_79], %208 {strides = array<i32>} : memref<128x128xbf16, #tpu.memory_space<vmem>>, vector<128x128xbf16>,
    %c0_80 = arith.constant 0 : index
    %c0_81 = arith.constant 0 : index
    %224 = vector.load %arg13[%c0_80, %c0_81] : memref<128x128xbf16, #tpu.memory_space<vmem>>, vector<128x128xbf16>
    tpu.vector_store %arg13[%c0_80, %c0_81], %215 {strides = array<i32>} : memref<128x128xbf16, #tpu.memory_space<vmem>>, vector<128x128xbf16>,
    return
  }
  func.func @transform_0(%arg0: i32, %arg1: i32) -> (i32, i32) {
    %c0_i32 = arith.constant 0 : i32
    return %arg1, %arg0 : i32, i32
  }
  func.func @transform_1(%arg0: i32, %arg1: i32) -> (i32, i32) {
    %c0_i32 = arith.constant 0 : i32
    %c0_i32_0 = arith.constant 0 : i32
    %c0_i32_1 = arith.constant 0 : i32
    return %c0_i32, %c0_i32_0 : i32, i32
  }
  func.func @transform_2(%arg0: i32, %arg1: i32) -> (i32, i32) {
    %c0_i32 = arith.constant 0 : i32
    %c0_i32_0 = arith.constant 0 : i32
    %c0_i32_1 = arith.constant 0 : i32
    return %c0_i32, %c0_i32_0 : i32, i32
  }
  func.func @transform_3(%arg0: i32, %arg1: i32) -> (i32, i32) {
    %c0_i32 = arith.constant 0 : i32
    %c0_i32_0 = arith.constant 0 : i32
    %c0_i32_1 = arith.constant 0 : i32
    return %c0_i32, %c0_i32_0 : i32, i32
  }
  func.func @transform_4(%arg0: i32, %arg1: i32) -> (i32, i32) {
    %c0_i32 = arith.constant 0 : i32
    %c0_i32_0 = arith.constant 0 : i32
    %c0_i32_1 = arith.constant 0 : i32
    return %c0_i32, %c0_i32_0 : i32, i32
  }
  func.func @transform_5(%arg0: i32, %arg1: i32) -> (i32, i32) {
    %c0_i32 = arith.constant 0 : i32
    %c0_i32_0 = arith.constant 0 : i32
    %c0_i32_1 = arith.constant 0 : i32
    return %c0_i32, %c0_i32_0 : i32, i32
  }
  func.func @transform_6(%arg0: i32, %arg1: i32) -> (i32, i32) {
    %c0_i32 = arith.constant 0 : i32
    %c0_i32_0 = arith.constant 0 : i32
    %c0_i32_1 = arith.constant 0 : i32
    return %c0_i32, %c0_i32_0 : i32, i32
  }
  func.func @transform_7(%arg0: i32, %arg1: i32) -> (i32, i32) {
    %c0_i32 = arith.constant 0 : i32
    %c0_i32_0 = arith.constant 0 : i32
    %c0_i32_1 = arith.constant 0 : i32
    return %c0_i32, %c0_i32_0 : i32, i32
  }
  func.func @transform_8(%arg0: i32, %arg1: i32) -> (i32, i32) {
    %c0_i32 = arith.constant 0 : i32
    %c0_i32_0 = arith.constant 0 : i32
    %c0_i32_1 = arith.constant 0 : i32
    return %c0_i32, %c0_i32_0 : i32, i32
  }
  func.func @transform_9(%arg0: i32, %arg1: i32) -> (i32, i32) {
    %c0_i32 = arith.constant 0 : i32
    return %arg1, %arg0 : i32, i32
  }
}

</mosaic_0001>

<bundles_post_ra>
// kernel: plc_forward.1
= control target key start
LH: loop header
LB: loop body
LE: loop exit
PB: predicated region body
PF: predicated region fallthrough
CT: control target
= control target key end

     0   :  { %v6229_v0 = vmov 0   ;;  %vm6231_vm0 = vmmov 0   ;;  %s8555_s1 = inlined_call_operand.vmem [shape: f32[128,1], index: 1, kind: input, shape index: {}]   ;;  %s8556_s2 = inlined_call_operand.vmem [shape: bf16[128,128], index: 2, kind: input, shape index: {}]   ;;  %s8557_s8 = inlined_call_operand.<no memory space> [shape: f32[1,1], index: 8, kind: input, shape index: {}]   ;;  %s8558_s3 = inlined_call_operand.vmem [shape: f32[128,1], index: 3, kind: input, shape index: {}]   ;;  %s8559_s6 = inlined_call_operand.vmem [shape: f32[128,1], index: 6, kind: input, shape index: {}]   ;;  %s8560_s5 = inlined_call_operand.vmem [shape: bf16[128,128], index: 5, kind: input, shape index: {}]   ;;  %s8561_s0 = inlined_call_operand.vmem [shape: f32[8,128], index: 0, kind: input, shape index: {}]   ;;  %s8562_s4 = inlined_call_operand.vmem [shape: bf16[128,128], index: 4, kind: input, shape index: {}]   ;;  %s8563_s7 = inlined_call_operand.vmem [shape: bf16[8,128], index: 7, kind: input, shape index: {}]   ;;  %s8564_s9 = inlined_call_operand.vmem [shape: f32[8,128], index: 9, kind: output, shape index: {}]  }
   0x1   :  { %5609 = vset.pattern.permute.xlu1 %v6229_v0  ;;  %5608 = vset.pattern.permute.xlu0 %v6229_v0  ;;  %v73_v1 = vld [vmem:[%s8555_s1 + $0x10] sm:$0xff]  ;;  %v71_v2 = vld [vmem:[%s8555_s1] sm:$0xff]  ;;  %v14_v3 = vstv %s8557_s8  ;;  %v5611_v5 = vld [vmem:[%s8556_s2 + $0x8] sm:$0xff]  }
   0x2   :  { %4577 = vmatprep.subr.bf16.mxu0 %v6229_v0  ;;  %182 = vperm.xlu1 %5609, %v73_v1   ;;  %v5610_v4 = vld [vmem:[%s8556_s2] sm:$0xff]   ;;  %15 = vst [vmem:[#allocation4] sm:$0x1] %v14_v3  ;;  %v74_v6 = vld [vmem:[%s8555_s1 + $0x18] sm:$0xff]  ;;  %v72_v7 = vld [vmem:[%s8555_s1 + $0x8] sm:$0xff] }
   0x3   :  { %4578 = vmatpush3.bf16.msra.mxu0 %v6229_v0  ;;  %172 = vperm.xlu0 %5608, %v71_v2   ;;  %v5612_v8 = vld [vmem:[%s8556_s2 + $0x10] sm:$0xff]   ;;  %v104_v9 = vld [vmem:[%s8558_s3 + $0x8] sm:$0xff]  ;;  %v103_v10 = vld [vmem:[%s8558_s3] sm:$0xff] }
   0x4   :  { %4579 = vmatprep.mubr.bf16.mxu0 %v5610_v4  ;;  %4595 = vmatprep.subr.bf16.mxu1 %v6229_v0  ;;  %v5613_v11 = vld [vmem:[%s8556_s2 + $0x18] sm:$0xff]   ;;  %v76_v12 = vld [vmem:[%s8555_s1 + $0x28] sm:$0xff]  ;;  %v5614_v13 = vld [vmem:[%s8556_s2 + $0x20] sm:$0xff]  }
   0x5   :  { %4596 = vmatpush3.bf16.msra.mxu1 %v6229_v0  ;;  %v75_v14 = vld [vmem:[%s8555_s1 + $0x20] sm:$0xff]  ;;  %v106_v15 = vld [vmem:[%s8558_s3 + $0x18] sm:$0xff]  ;;  %v105_v16 = vld [vmem:[%s8558_s3 + $0x10] sm:$0xff] }
   0x6   :  { %4580 = vmatmul.mubr.bf16.vlgmr.msra.gmra.mrb[0].mxu0 %v5611_v5  ;;  %187 = vperm.xlu1 %5609, %v74_v6   ;;  %v5615_v17 = vld [vmem:[%s8556_s2 + $0x28] sm:$0xff]   ;;  %v78_v18 = vld [vmem:[%s8555_s1 + $0x38] sm:$0xff]  ;;  %v5616_v19 = vld [vmem:[%s8556_s2 + $0x30] sm:$0xff]  }
   0x7   :  { %177 = vperm.xlu0 %5608, %v72_v7   ;;  %4583 = vmatprep.mubr.bf16.mxu0 %v5612_v8  ;;  %v77_v20 = vld [vmem:[%s8555_s1 + $0x30] sm:$0xff]  ;;  %v108_v21 = vld [vmem:[%s8558_s3 + $0x28] sm:$0xff]  ;;  %v107_v22 = vld [vmem:[%s8558_s3 + $0x20] sm:$0xff] }
   0x8   :  { %v5617_v23 = vld [vmem:[%s8556_s2 + $0x38] sm:$0xff]   ;;  %v80_v24 = vld [vmem:[%s8555_s1 + $0x48] sm:$0xff]  ;;  %v79_v25 = vld [vmem:[%s8555_s1 + $0x40] sm:$0xff] }
   0x9   :  { %v110_v26 = vld [vmem:[%s8558_s3 + $0x38] sm:$0xff]  ;;  %v109_v27 = vld [vmem:[%s8558_s3 + $0x30] sm:$0xff]  ;;  %v112_v30 = vld [vmem:[%s8558_s3 + $0x48] sm:$0xff] }
   0xa   :  { %422 = vperm.xlu1 %5609, %v104_v9   ;;  %v82_v28 = vld [vmem:[%s8555_s1 + $0x58] sm:$0xff]  ;;  %v81_v29 = vld [vmem:[%s8555_s1 + $0x50] sm:$0xff]  ;;  %v111_v31 = vld [vmem:[%s8558_s3 + $0x40] sm:$0xff] }
   0xb   :  { %417 = vperm.xlu0 %5608, %v103_v10   ;;  %v84_v32 = vld [vmem:[%s8555_s1 + $0x68] sm:$0xff]  ;;  %v83_v33 = vld [vmem:[%s8555_s1 + $0x60] sm:$0xff]  ;;  %v114_v34 = vld [vmem:[%s8558_s3 + $0x58] sm:$0xff] }
   0xc   :  { %v113_v35 = vld [vmem:[%s8558_s3 + $0x50] sm:$0xff]  ;;  %v86_v36 = vld [vmem:[%s8555_s1 + $0x78] sm:$0xff]  ;;  %v116_v38 = vld [vmem:[%s8558_s3 + $0x68] sm:$0xff] }
   0xd   :  { %v85_v37 = vld [vmem:[%s8555_s1 + $0x70] sm:$0xff]  ;;  %v115_v39 = vld [vmem:[%s8558_s3 + $0x60] sm:$0xff]  ;;  %v118_v40 = vld [vmem:[%s8558_s3 + $0x78] sm:$0xff] }
   0xe   :  { %4584 = vmatmul.mubr.bf16.gmra.mrb[4].mxu0 %v5613_v11  ;;  %197 = vperm.xlu1 %5609, %v76_v12   ;;  %v117_v41 = vld [vmem:[%s8558_s3 + $0x70] sm:$0xff]  ;;  %v152_v42 = vld [vmem:[%s8559_s6 + $0x8] sm:$0xff]  ;;  %v151_v43 = vld [vmem:[%s8559_s6] sm:$0xff] }
   0xf   :  { %192 = vperm.xlu0 %5608, %v75_v14   ;;  %4587 = vmatprep.mubr.bf16.mxu0 %v5614_v13  ;;  %v154_v44 = vld [vmem:[%s8559_s6 + $0x18] sm:$0xff]  ;;  %v153_v45 = vld [vmem:[%s8559_s6 + $0x10] sm:$0xff]  ;;  %v156_v46 = vld [vmem:[%s8559_s6 + $0x28] sm:$0xff] }
  0x10   :  { %v155_v47 = vld [vmem:[%s8559_s6 + $0x20] sm:$0xff]  ;;  %v158_v48 = vld [vmem:[%s8559_s6 + $0x38] sm:$0xff]  ;;  %v157_v49 = vld [vmem:[%s8559_s6 + $0x30] sm:$0xff] }
  0x11   :  { %v160_v50 = vld [vmem:[%s8559_s6 + $0x48] sm:$0xff]  ;;  %v159_v51 = vld [vmem:[%s8559_s6 + $0x40] sm:$0xff]  ;;  %v162_v52 = vld [vmem:[%s8559_s6 + $0x58] sm:$0xff] }
  0x12   :  { %432 = vperm.xlu1 %5609, %v106_v15   ;;  %v161_v53 = vld [vmem:[%s8559_s6 + $0x50] sm:$0xff]  ;;  %v164_v54 = vld [vmem:[%s8559_s6 + $0x68] sm:$0xff]  ;;  %v163_v55 = vld [vmem:[%s8559_s6 + $0x60] sm:$0xff] }
  0x13   :  { %427 = vperm.xlu0 %5608, %v105_v16   ;;  %v166_v56 = vld [vmem:[%s8559_s6 + $0x78] sm:$0xff]  ;;  %v165_v57 = vld [vmem:[%s8559_s6 + $0x70] sm:$0xff]  ;;  %v168_v58 = vld [vmem:[#allocation4] sm:$0x1] }
  0x14   :  { %v6456_v59 = vld [vmem:[%s8560_s5] sm:$0xff]   ;;  %v6461_v60 = vld [vmem:[%s8560_s5 + $0x8] sm:$0xff]   ;;  %v6468_v61 = vld [vmem:[%s8560_s5 + $0x10] sm:$0xff]  }
  0x15   :  { %4597 = vmatprep.mubr.bf16.mxu1 %v6456_v59  ;;  %v6473_v62 = vld [vmem:[%s8560_s5 + $0x18] sm:$0xff]   ;;  %v6480_v63 = vld [vmem:[%s8560_s5 + $0x20] sm:$0xff]   ;;  %v6485_v0 = vld [vmem:[%s8560_s5 + $0x28] sm:$0xff]  }
  0x16   :  { %4588 = vmatmul.mubr.bf16.gmra.mrb[8].mxu0 %v5615_v17  ;;  %207 = vperm.xlu1 %5609, %v78_v18   ;;  %v6492_v1 = vld [vmem:[%s8561_s0 + $0x1] ss:$0 sm:$0xff]  ;;  %v6497_v2 = vld [vmem:[%s8561_s0 + $0x2] ss:$0 sm:$0xff]  ;;  %v6502_v3 = vld [vmem:[%s8561_s0 + $0x3] ss:$0 sm:$0xff] }
  0x17   :  { %202 = vperm.xlu0 %5608, %v77_v20   ;;  %4591 = vmatprep.mubr.bf16.mxu0 %v5616_v19  ;;  %v6509_v5 = vld [vmem:[%s8561_s0 + $0x4] ss:$0 sm:$0xff]  ;;  %v6514_v6 = vld [vmem:[%s8561_s0 + $0x5] ss:$0 sm:$0xff]  ;;  %v6533_v11 = vld [vmem:[%s8561_s0 + $0x6] ss:$0 sm:$0xff] }
  0x18   :  { %4598 = vmatmul.mubr.bf16.vlgmr.msra.gmra.mrb[0].mxu1 %v6461_v60  ;;  %v6538_v12 = vld [vmem:[%s8561_s0 + $0x7] ss:$0 sm:$0xff]  ;;  %v6543_v13 = vld [vmem:[%s8560_s5 + $0x30] sm:$0xff]   ;;  %v6548_v14 = vld [vmem:[%s8560_s5 + $0x38] sm:$0xff]  }
  0x19   :  { %4601 = vmatprep.mubr.bf16.mxu1 %v6468_v61 }
  0x1a   :  { %442 = vperm.xlu1 %5609, %v108_v21  }
  0x1b   :  { %437 = vperm.xlu0 %5608, %v107_v22  }
  0x1e   :  { %4592 = vmatmul.mubr.bf16.gmra.mrb[12].mxu0 %v5617_v23  ;;  %217 = vperm.xlu1 %5609, %v80_v24  }
  0x1f   :  { %212 = vperm.xlu0 %5608, %v79_v25  }
  0x20   :  { %4602 = vmatmul.mubr.bf16.gmra.mrb[4].mxu1 %v6473_v62 }
  0x21   :  { %4605 = vmatprep.mubr.bf16.mxu1 %v6480_v63 }
  0x22   :  { %452 = vperm.xlu1 %5609, %v110_v26  }
  0x23   :  { %447 = vperm.xlu0 %5608, %v109_v27  }
  0x26   :  { %227 = vperm.xlu1 %5609, %v82_v28  }
  0x27   :  { %222 = vperm.xlu0 %5608, %v81_v29  }
  0x28   :  { %4606 = vmatmul.mubr.bf16.gmra.mrb[8].mxu1 %v6485_v0 }
  0x29   :  { %4609 = vmatprep.mubr.bf16.mxu1 %v6543_v13 }
  0x2a   :  { %462 = vperm.xlu1 %5609, %v112_v30  }
  0x2b   :  { %457 = vperm.xlu0 %5608, %v111_v31  }
  0x2e   :  { %237 = vperm.xlu1 %5609, %v84_v32  }
  0x2f   :  { %232 = vperm.xlu0 %5608, %v83_v33  }
  0x30   :  { %4610 = vmatmul.mubr.bf16.gmra.mrb[12].mxu1 %v6548_v14 }
  0x32   :  { %472 = vperm.xlu1 %5609, %v114_v34  }
  0x33   :  { %467 = vperm.xlu0 %5608, %v113_v35  }
  0x36   :  { %247 = vperm.xlu1 %5609, %v86_v36  }
  0x37   :  { %242 = vperm.xlu0 %5608, %v85_v37  }
  0x3a   :  { %482 = vperm.xlu1 %5609, %v116_v38  }
  0x3b   :  { %477 = vperm.xlu0 %5608, %v115_v39  }
  0x3e   :  { %492 = vperm.xlu1 %5609, %v118_v40  }
  0x3f   :  { %487 = vperm.xlu0 %5608, %v117_v41  }
  0x42   :  { %832 = vperm.xlu1 %5609, %v152_v42  }
  0x43   :  { %827 = vperm.xlu0 %5608, %v151_v43  }
  0x46   :  { %842 = vperm.xlu1 %5609, %v154_v44   ;;  %v6663_v44 = vld [vmem:[%s8562_s4] sm:$0xff]  }
  0x47   :  { %837 = vperm.xlu0 %5608, %v153_v45   ;;  %4629 = vmatprep.mubr.bf16.mxu1 %v6663_v44 }
  0x4a   :  { %852 = vperm.xlu1 %5609, %v156_v46  }
  0x4b   :  { %847 = vperm.xlu0 %5608, %v155_v47  }
  0x4e   :  { %862 = vperm.xlu1 %5609, %v158_v48  }
  0x4f   :  { %857 = vperm.xlu0 %5608, %v157_v49  }
  0x52   :  { %872 = vperm.xlu1 %5609, %v160_v50  }
  0x53   :  { %867 = vperm.xlu0 %5608, %v159_v51  }
  0x56   :  { %882 = vperm.xlu1 %5609, %v162_v52  }
  0x57   :  { %877 = vperm.xlu0 %5608, %v161_v53  }
  0x5a   :  { %892 = vperm.xlu1 %5609, %v164_v54  }
  0x5b   :  { %887 = vperm.xlu0 %5608, %v163_v55  }
  0x5e   :  { %902 = vperm.xlu1 %5609, %v166_v56  }
  0x5f   :  { %897 = vperm.xlu0 %5608, %v165_v57  }
  0x63   :  { %987 = vperm.xlu0 %5608, %v168_v58  }
  0x81   :  { %v6504_v4 = vpop.permute.xlu1 %182 }
  0x82   :  { %v6516_v7 = vpop.permute.xlu0 %172  ;;  %v6520_v8 = vmul.f32 %v6492_v1, %v6504_v4  ;;  %v6524_v9 = vmul.f32 %v6497_v2, %v6504_v4  ;;  %v6528_v10 = vmul.f32 %v6502_v3, %v6504_v4  ;;  %v6564_v18 = vmul.f32 %v6509_v5, %v6504_v4 }
  0x83   :  { %v6552_v15 = vmul.f32 %v6492_v1, %v6516_v7  ;;  %v6556_v16 = vmul.f32 %v6497_v2, %v6516_v7  ;;  %v6560_v17 = vmul.f32 %v6502_v3, %v6516_v7  ;;  %v6568_v19 = vmul.f32 %v6509_v5, %v6516_v7 }
  0x84   :  { %8615 = vst [vmem:[#allocation5_spill] sm:$0xff] %v6524_v9  ;;  %8616 = vst [vmem:[#allocation6_spill] sm:$0xff] %v6528_v10  ;;  %v6572_v20 = vmul.f32 %v6514_v6, %v6504_v4  ;;  %v6576_v21 = vmul.f32 %v6514_v6, %v6516_v7  ;;  %v6583_v23 = vmul.f32 %v6533_v11, %v6504_v4 }
  0x85   :  { %8617 = vst [vmem:[#allocation7_spill] sm:$0xff] %v6556_v16  ;;  %8618 = vst [vmem:[#allocation8_spill] sm:$0xff] %v6560_v17  ;;  %v6578_v22 = vpop.permute.xlu1 %187  ;;  %v6587_v24 = vmul.f32 %v6533_v11, %v6516_v7  ;;  %v6591_v25 = vmul.f32 %v6538_v12, %v6504_v4  ;;  %v6595_v26 = vmul.f32 %v6538_v12, %v6516_v7 }
  0x86   :  { %8619 = vst [vmem:[#allocation9_spill] sm:$0xff] %v6564_v18  ;;  %8620 = vst [vmem:[#allocation10_spill] sm:$0xff] %v6568_v19  ;;  %v6597_v27 = vpop.permute.xlu0 %177  ;;  %v6602_v28 = vmul.f32 %v6492_v1, %v6578_v22  ;;  %v6606_v29 = vmul.f32 %v6497_v2, %v6578_v22  ;;  %v6610_v30 = vmul.f32 %v6502_v3, %v6578_v22 }
  0x87   :  { %8621 = vst [vmem:[#allocation11_spill] sm:$0xff] %v6572_v20  ;;  %8622 = vst [vmem:[#allocation12_spill] sm:$0xff] %v6576_v21  ;;  %v6614_v31 = vmul.f32 %v6492_v1, %v6597_v27  ;;  %v6618_v32 = vmul.f32 %v6497_v2, %v6597_v27  ;;  %v6622_v33 = vmul.f32 %v6502_v3, %v6597_v27 }
  0x88   :  { %8623 = vst [vmem:[#allocation13_spill] sm:$0xff] %v6583_v23  ;;  %8624 = vst [vmem:[#allocation14_spill] sm:$0xff] %v6587_v24  ;;  %v6626_v34 = vmul.f32 %v6509_v5, %v6578_v22  ;;  %v6630_v35 = vmul.f32 %v6509_v5, %v6597_v27  ;;  %v6634_v36 = vmul.f32 %v6514_v6, %v6578_v22 }
  0x89   :  { %8625 = vst [vmem:[#allocation15_spill] sm:$0xff] %v6591_v25  ;;  %8626 = vst [vmem:[#allocation16_spill] sm:$0xff] %v6595_v26  ;;  %v6638_v37 = vmul.f32 %v6514_v6, %v6597_v27  ;;  %v6640_v38 = vpop.permute.xlu1 %422  ;;  %v6644_v39 = vmul.f32 %v6533_v11, %v6578_v22  ;;  %v6648_v40 = vmul.f32 %v6533_v11, %v6597_v27 }
  0x8a   :  { %8627 = vst [vmem:[#allocation17_spill] sm:$0xff] %v6606_v29  ;;  %8628 = vst [vmem:[#allocation18_spill] sm:$0xff] %v6610_v30  ;;  %v6652_v41 = vmul.f32 %v6538_v12, %v6578_v22  ;;  %v6656_v42 = vmul.f32 %v6538_v12, %v6597_v27  ;;  %v6658_v43 = vpop.permute.xlu0 %417 }
  0x8b   :  { %8629 = vst [vmem:[#allocation19_spill] sm:$0xff] %v6618_v32  ;;  %8630 = vst [vmem:[#allocation20_spill] sm:$0xff] %v6622_v33 }
  0x8c   :  { %8631 = vst [vmem:[#allocation21_spill] sm:$0xff] %v6626_v34  ;;  %8632 = vst [vmem:[#allocation22_spill] sm:$0xff] %v6630_v35 }
  0x8d   :  { %8633 = vst [vmem:[#allocation23_spill] sm:$0xff] %v6634_v36  ;;  %8634 = vst [vmem:[#allocation24_spill] sm:$0xff] %v6638_v37  ;;  %v6665_v45 = vpop.permute.xlu1 %197 }
  0x8e   :  { %8635 = vst [vmem:[#allocation25_spill] sm:$0xff] %v6644_v39  ;;  %8636 = vst [vmem:[#allocation26_spill] sm:$0xff] %v6648_v40  ;;  %v6668_v46 = vpop.permute.xlu0 %192  ;;  %v6672_v47 = vmul.f32 %v6492_v1, %v6665_v45  ;;  %v6676_v48 = vmul.f32 %v6497_v2, %v6665_v45  ;;  %v6680_v49 = vmul.f32 %v6502_v3, %v6665_v45 }
  0x8f   :  { %8637 = vst [vmem:[#allocation27_spill] sm:$0xff] %v6652_v41  ;;  %8638 = vst [vmem:[#allocation28_spill] sm:$0xff] %v6656_v42  ;;  %v6684_v50 = vmul.f32 %v6492_v1, %v6668_v46  ;;  %v6688_v51 = vmul.f32 %v6497_v2, %v6668_v46  ;;  %v6692_v52 = vmul.f32 %v6502_v3, %v6668_v46 }
  0x90   :  { %8639 = vst [vmem:[#allocation29_spill] sm:$0xff] %v6676_v48  ;;  %8640 = vst [vmem:[#allocation30_spill] sm:$0xff] %v6680_v49  ;;  %v6696_v53 = vmul.f32 %v6509_v5, %v6668_v46  ;;  %v6700_v54 = vmul.f32 %v6509_v5, %v6665_v45  ;;  %v6704_v55 = vmul.f32 %v6514_v6, %v6668_v46 }
  0x91   :  { %8641 = vst [vmem:[#allocation31_spill] sm:$0xff] %v6688_v51  ;;  %8642 = vst [vmem:[#allocation32_spill] sm:$0xff] %v6692_v52  ;;  %v6708_v56 = vmul.f32 %v6514_v6, %v6665_v45  ;;  %v6710_v57 = vpop.permute.xlu1 %432  ;;  %v6714_v58 = vmul.f32 %v6533_v11, %v6668_v46  ;;  %v6718_v42 = vmul.f32 %v6533_v11, %v6665_v45 }
  0x92   :  { %8643 = vst [vmem:[#allocation33_spill] sm:$0xff] %v6696_v53  ;;  %8644 = vst [vmem:[#allocation34_spill] sm:$0xff] %v6700_v54  ;;  %v6722_v41 = vmul.f32 %v6538_v12, %v6668_v46  ;;  %v6726_v26 = vmul.f32 %v6538_v12, %v6665_v45  ;;  %v6728_v25 = vpop.permute.xlu0 %427 }
  0x93   :  { %8645 = vst [vmem:[#allocation35_spill] sm:$0xff] %v6704_v55  ;;  %8646 = vst [vmem:[#allocation36_spill] sm:$0xff] %v6708_v56 }
  0x94   :  { %8647 = vst [vmem:[#allocation37_spill] sm:$0xff] %v6714_v58  ;;  %8648 = vst [vmem:[#allocation38_spill] sm:$0xff] %v6718_v42 }
  0x95   :  { %8649 = vst [vmem:[#allocation39_spill] sm:$0xff] %v6722_v41  ;;  %8650 = vst [vmem:[#allocation40_spill] sm:$0xff] %v6726_v26  ;;  %v6730_v40 = vpop.permute.xlu1 %207 }
  0x96   :  { %v6732_v39 = vpop.permute.xlu0 %202  ;;  %v6736_v58 = vmul.f32 %v6492_v1, %v6730_v40  ;;  %v6740_v42 = vmul.f32 %v6497_v2, %v6730_v40  ;;  %v6744_v41 = vmul.f32 %v6502_v3, %v6730_v40  ;;  %v6764_v55 = vmul.f32 %v6509_v5, %v6730_v40 }
  0x97   :  { %v6748_v26 = vmul.f32 %v6492_v1, %v6732_v39  ;;  %v6752_v24 = vmul.f32 %v6497_v2, %v6732_v39  ;;  %v6756_v23 = vmul.f32 %v6502_v3, %v6732_v39  ;;  %v6760_v56 = vmul.f32 %v6509_v5, %v6732_v39 }
  0x98   :  { %8651 = vst [vmem:[#allocation41_spill] sm:$0xff] %v6740_v42  ;;  %8652 = vst [vmem:[#allocation42_spill] sm:$0xff] %v6744_v41  ;;  %v6768_v37 = vmul.f32 %v6514_v6, %v6732_v39  ;;  %v6772_v36 = vmul.f32 %v6514_v6, %v6730_v40  ;;  %v6778_v20 = vmul.f32 %v6533_v11, %v6732_v39 }
  0x99   :  { %8653 = vst [vmem:[#allocation43_spill] sm:$0xff] %v6752_v24  ;;  %8654 = vst [vmem:[#allocation44_spill] sm:$0xff] %v6756_v23  ;;  %v6774_v21 = vpop.permute.xlu1 %442  ;;  %v6782_v54 = vmul.f32 %v6533_v11, %v6730_v40 }
  0x9a   :  { %8655 = vst [vmem:[#allocation45_spill] sm:$0xff] %v6760_v56  ;;  %8656 = vst [vmem:[#allocation46_spill] sm:$0xff] %v6764_v55  ;;  %v6786_v55 = vmul.f32 %v6538_v12, %v6732_v39  ;;  %v6792_v53 = vpop.permute.xlu0 %437 }
  0x9b   :  { %8657 = vst [vmem:[#allocation47_spill] sm:$0xff] %v6768_v37  ;;  %8658 = vst [vmem:[#allocation48_spill] sm:$0xff] %v6772_v36  ;;  %v6790_v37 = vmul.f32 %v6538_v12, %v6730_v40 }
  0x9c   :  { %8659 = vst [vmem:[#allocation49_spill] sm:$0xff] %v6778_v20  ;;  %8660 = vst [vmem:[#allocation50_spill] sm:$0xff] %v6782_v54 }
  0x9d   :  { %8661 = vst [vmem:[#allocation51_spill] sm:$0xff] %v6786_v55  ;;  %8662 = vst [vmem:[#allocation52_spill] sm:$0xff] %v6790_v37  ;;  %v6794_v36 = vpop.permute.xlu1 %217 }
  0x9e   :  { %v6796_v56 = vpop.permute.xlu0 %212  ;;  %v6800_v20 = vmul.f32 %v6492_v1, %v6794_v36  ;;  %v6804_v54 = vmul.f32 %v6497_v2, %v6794_v36  ;;  %v6808_v55 = vmul.f32 %v6502_v3, %v6794_v36  ;;  %v6828_v18 = vmul.f32 %v6509_v5, %v6794_v36 }
  0x9f   :  { %v6812_v37 = vmul.f32 %v6492_v1, %v6796_v56  ;;  %v6816_v35 = vmul.f32 %v6497_v2, %v6796_v56  ;;  %v6820_v34 = vmul.f32 %v6502_v3, %v6796_v56  ;;  %v6824_v19 = vmul.f32 %v6509_v5, %v6796_v56 }
  0xa0   :  { %8663 = vst [vmem:[#allocation53_spill] sm:$0xff] %v6804_v54  ;;  %8664 = vst [vmem:[#allocation54_spill] sm:$0xff] %v6808_v55  ;;  %v6832_v55 = vmul.f32 %v6514_v6, %v6796_v56  ;;  %v6836_v49 = vmul.f32 %v6514_v6, %v6794_v36 }
  0xa1   :  { %8665 = vst [vmem:[#allocation55_spill] sm:$0xff] %v6816_v35  ;;  %8666 = vst [vmem:[#allocation56_spill] sm:$0xff] %v6820_v34  ;;  %v6838_v41 = vpop.permute.xlu1 %452  ;;  %v6842_v34 = vmul.f32 %v6533_v11, %v6796_v56 }
  0xa2   :  { %8667 = vst [vmem:[#allocation57_spill] sm:$0xff] %v6824_v19  ;;  %8668 = vst [vmem:[#allocation58_spill] sm:$0xff] %v6828_v18  ;;  %v6846_v19 = vmul.f32 %v6533_v11, %v6794_v36  ;;  %v6850_v18 = vmul.f32 %v6538_v12, %v6796_v56  ;;  %v6856_v52 = vpop.permute.xlu0 %447 }
  0xa3   :  { %8669 = vst [vmem:[#allocation59_spill] sm:$0xff] %v6832_v55  ;;  %8670 = vst [vmem:[#allocation60_spill] sm:$0xff] %v6836_v49  ;;  %v6854_v55 = vmul.f32 %v6538_v12, %v6794_v36 }
  0xa4   :  { %8671 = vst [vmem:[#allocation61_spill] sm:$0xff] %v6842_v34  ;;  %8672 = vst [vmem:[#allocation62_spill] sm:$0xff] %v6846_v19 }
  0xa5   :  { %8673 = vst [vmem:[#allocation63_spill] sm:$0xff] %v6850_v18  ;;  %8674 = vst [vmem:[#allocation64_spill] sm:$0xff] %v6854_v55  ;;  %v6858_v49 = vpop.permute.xlu1 %227 }
  0xa6   :  { %v6860_v23 = vpop.permute.xlu0 %222  ;;  %v6864_v34 = vmul.f32 %v6492_v1, %v6858_v49  ;;  %v6868_v19 = vmul.f32 %v6497_v2, %v6858_v49  ;;  %v6872_v18 = vmul.f32 %v6502_v3, %v6858_v49  ;;  %v6892_v10 = vmul.f32 %v6509_v5, %v6858_v49 }
  0xa7   :  { %v6876_v55 = vmul.f32 %v6492_v1, %v6860_v23  ;;  %v6880_v33 = vmul.f32 %v6497_v2, %v6860_v23  ;;  %v6884_v30 = vmul.f32 %v6502_v3, %v6860_v23  ;;  %v6888_v17 = vmul.f32 %v6509_v5, %v6860_v23 }
  0xa8   :  { %8675 = vst [vmem:[#allocation65_spill] sm:$0xff] %v6868_v19  ;;  %8676 = vst [vmem:[#allocation66_spill] sm:$0xff] %v6872_v18  ;;  %v6896_v18 = vmul.f32 %v6514_v6, %v6860_v23  ;;  %v6900_v54 = vmul.f32 %v6514_v6, %v6858_v49 }
  0xa9   :  { %8677 = vst [vmem:[#allocation67_spill] sm:$0xff] %v6880_v33  ;;  %8678 = vst [vmem:[#allocation68_spill] sm:$0xff] %v6884_v30  ;;  %v6902_v19 = vpop.permute.xlu1 %462  ;;  %v6906_v30 = vmul.f32 %v6533_v11, %v6860_v23 }
  0xaa   :  { %8679 = vst [vmem:[#allocation69_spill] sm:$0xff] %v6888_v17  ;;  %8680 = vst [vmem:[#allocation70_spill] sm:$0xff] %v6892_v10  ;;  %v6910_v17 = vmul.f32 %v6533_v11, %v6858_v49  ;;  %v6914_v10 = vmul.f32 %v6538_v12, %v6860_v23  ;;  %v6920_v35 = vpop.permute.xlu0 %457 }
  0xab   :  { %8681 = vst [vmem:[#allocation71_spill] sm:$0xff] %v6896_v18  ;;  %8682 = vst [vmem:[#allocation72_spill] sm:$0xff] %v6900_v54  ;;  %v6918_v18 = vmul.f32 %v6538_v12, %v6858_v49 }
  0xac   :  { %8683 = vst [vmem:[#allocation73_spill] sm:$0xff] %v6906_v30  ;;  %8684 = vst [vmem:[#allocation74_spill] sm:$0xff] %v6910_v17 }
  0xad   :  { %8685 = vst [vmem:[#allocation75_spill] sm:$0xff] %v6914_v10  ;;  %8686 = vst [vmem:[#allocation76_spill] sm:$0xff] %v6918_v18  ;;  %v6922_v54 = vpop.permute.xlu1 %237 }
  0xae   :  { %v6924_v33 = vpop.permute.xlu0 %232  ;;  %v6928_v30 = vmul.f32 %v6492_v1, %v6922_v54  ;;  %v6932_v17 = vmul.f32 %v6497_v2, %v6922_v54  ;;  %v6936_v10 = vmul.f32 %v6502_v3, %v6922_v54  ;;  %v6964_v24 = vmul.f32 %v6514_v6, %v6922_v54 }
  0xaf   :  { %v6940_v18 = vmul.f32 %v6492_v1, %v6924_v33  ;;  %v6944_v48 = vmul.f32 %v6497_v2, %v6924_v33  ;;  %v6948_v42 = vmul.f32 %v6502_v3, %v6924_v33  ;;  %v6952_v51 = vmul.f32 %v6509_v5, %v6924_v33 }
  0xb0   :  { %8687 = vst [vmem:[#allocation77_spill] sm:$0xff] %v6928_v30  ;;  %8688 = vst [vmem:[#allocation78_spill] sm:$0xff] %v6932_v17  ;;  %v6956_v17 = vmul.f32 %v6509_v5, %v6922_v54 }
  0xb1   :  { %8689 = vst [vmem:[#allocation79_spill] sm:$0xff] %v6936_v10  ;;  %8690 = vst [vmem:[#allocation80_spill] sm:$0xff] %v6940_v18  ;;  %v6960_v10 = vmul.f32 %v6514_v6, %v6924_v33 }
  0xb2   :  { %8691 = vst [vmem:[#allocation81_spill] sm:$0xff] %v6944_v48  ;;  %8692 = vst [vmem:[#allocation82_spill] sm:$0xff] %v6948_v42  ;;  %v6966_v48 = vpop.permute.xlu1 %472  ;;  %v6970_v42 = vmul.f32 %v6533_v11, %v6924_v33  ;;  %v6984_v32 = vpop.permute.xlu0 %467 }
  0xb3   :  { %8693 = vst [vmem:[#allocation83_spill] sm:$0xff] %v6952_v51  ;;  %8694 = vst [vmem:[#allocation84_spill] sm:$0xff] %v6956_v17  ;;  %v6974_v51 = vmul.f32 %v6533_v11, %v6922_v54  ;;  %v6978_v17 = vmul.f32 %v6538_v12, %v6924_v33 }
  0xb4   :  { %8695 = vst [vmem:[#allocation85_spill] sm:$0xff] %v6960_v10  ;;  %8696 = vst [vmem:[#allocation86_spill] sm:$0xff] %v6964_v24  ;;  %v6982_v10 = vmul.f32 %v6538_v12, %v6922_v54 }
  0xb5   :  { %8697 = vst [vmem:[#allocation87_spill] sm:$0xff] %v6970_v42  ;;  %8698 = vst [vmem:[#allocation88_spill] sm:$0xff] %v6974_v51 }
  0xb6   :  { %8699 = vst [vmem:[#allocation89_spill] sm:$0xff] %v6978_v17  ;;  %8700 = vst [vmem:[#allocation90_spill] sm:$0xff] %v6982_v10  ;;  %v6986_v24 = vpop.permute.xlu1 %247  ;;  %v6988_v29 = vpop.permute.xlu0 %242 }
  0xb7   :  { %v6992_v42 = vmul.f32 %v6492_v1, %v6986_v24  ;;  %v6996_v51 = vmul.f32 %v6497_v2, %v6986_v24  ;;  %v7000_v17 = vmul.f32 %v6502_v3, %v6986_v24  ;;  %v7004_v10 = vmul.f32 %v6492_v1, %v6988_v29 }
  0xb8   :  { %v7008_v16 = vmul.f32 %v6497_v2, %v6988_v29  ;;  %v7012_v9 = vmul.f32 %v6502_v3, %v6988_v29  ;;  %v7016_v30 = vmul.f32 %v6509_v5, %v6988_v29  ;;  %v7024_v1 = vmul.f32 %v6514_v6, %v6988_v29 }
  0xb9   :  { %8701 = vst [vmem:[#allocation91_spill] sm:$0xff] %v6992_v42  ;;  %8702 = vst [vmem:[#allocation92_spill] sm:$0xff] %v6996_v51  ;;  %v7020_v51 = vmul.f32 %v6509_v5, %v6986_v24  ;;  %v7028_v2 = vmul.f32 %v6514_v6, %v6986_v24  ;;  %v7032_v3 = vmul.f32 %v6533_v11, %v6988_v29  ;;  %v7049_v6 = vld [vmem:[%s8561_s0] ss:$0 sm:$0xff] }
  0xba   :  { %8703 = vst [vmem:[#allocation93_spill] sm:$0xff] %v7000_v17  ;;  %8704 = vst [vmem:[#allocation94_spill] sm:$0xff] %v7008_v16  ;;  %v7036_v17 = vmul.f32 %v6533_v11, %v6986_v24  ;;  %v7040_v5 = vmul.f32 %v6538_v12, %v6988_v29  ;;  %v254_v11 = vmul.f32 %v7049_v6, %v6516_v7 }
  0xbb   :  { %8705 = vst [vmem:[#allocation95_spill] sm:$0xff] %v7012_v9  ;;  %8706 = vst [vmem:[#allocation96_spill] sm:$0xff] %v7016_v30 }
  0xbc   :  { %8707 = vst [vmem:[#allocation97_spill] sm:$0xff] %v7020_v51  ;;  %8708 = vst [vmem:[#allocation98_spill] sm:$0xff] %v7024_v1  ;;  %v7044_v51 = vmul.f32 %v6538_v12, %v6986_v24 }
  0xbd   :  { %8709 = vst [vmem:[#allocation99_spill] sm:$0xff] %v7028_v2  ;;  %8710 = vst [vmem:[#allocation100_spill] sm:$0xff] %v7032_v3  ;;  %v256_v3 = vmul.f32 %v7049_v6, %v6504_v4 }
  0xbe   :  { %8711 = vst [vmem:[#allocation101_spill] sm:$0xff] %v7036_v17  ;;  %8712 = vst [vmem:[#allocation102_spill] sm:$0xff] %v7040_v5  ;;  %v257_v5 = vmul.f32 %v7049_v6, %v6578_v22  ;;  %v260_v22 = vmul.f32 %v7049_v6, %v6732_v39 }
  0xbf   :  { %8713 = vst [vmem:[#allocation103_spill] sm:$0xff] %v7044_v51  ;;  %v255_v51 = vmul.f32 %v7049_v6, %v6597_v27 }
  0xd9   :  { %v4581_v2 = vpop.f32.mrb[0].mxu0 }
  0xda   :  { %v361_v17 = vadd.f32 %v4581_v2, %v256_v3  ;;  %v352_v1 = vpop.f32.mrb[1].mxu0 }
  0xdb   :  { %v353_v30 = vadd.f32 %v352_v1, %v254_v11  ;;  %v4582_v12 = vpop.f32.mrb[2].mxu0 }
  0xdc   :  { %v497_v9 = vadd.f32 %v6728_v25, %v361_v17  ;;  %v364_v16 = vadd.f32 %v4582_v12, %v257_v5  ;;  %v355_v42 = vpop.f32.mrb[3].mxu0  ;;  %v258_v17 = vmul.f32 %v7049_v6, %v6668_v46 }
  0xdd   :  { %v495_v4 = vadd.f32 %v6658_v43, %v353_v30  ;;  %v356_v18 = vadd.f32 %v355_v42, %v255_v51  ;;  %v261_v30 = vmul.f32 %v7049_v6, %v6730_v40  ;;  %v264_v40 = vmul.f32 %v7049_v6, %v6860_v23 }
  0xde   :  { %5634 = vtanh.f32 %v497_v9  ;;  %v498_v7 = vadd.f32 %v6710_v57, %v364_v16  ;;  %v259_v16 = vmul.f32 %v7049_v6, %v6665_v45 }
  0xdf   :  { %5636 = vtanh.f32 %v495_v4  ;;  %v496_v2 = vadd.f32 %v6640_v38, %v356_v18 }
  0xe0   :  { %5638 = vtanh.f32 %v498_v7 }
  0xe1   :  { %5640 = vtanh.f32 %v496_v2  ;;  %v4585_v1 = vpop.f32.mrb[4].mxu0  ;;  %v262_v2 = vmul.f32 %v7049_v6, %v6796_v56  ;;  %v7088_v56 = vpop.permute.xlu0 %477 }
  0xe2   :  { %v377_v27 = vadd.f32 %v4585_v1, %v260_v22  ;;  %v368_v3 = vpop.f32.mrb[5].mxu0 }
  0xe3   :  { %v369_v9 = vadd.f32 %v368_v3, %v258_v17  ;;  %v4586_v42 = vpop.f32.mrb[6].mxu0 }
  0xe4   :  { %v501_v18 = vadd.f32 %v6856_v52, %v377_v27  ;;  %v380_v51 = vadd.f32 %v4586_v42, %v261_v30  ;;  %v371_v5 = vpop.f32.mrb[7].mxu0  ;;  %v265_v27 = vmul.f32 %v7049_v6, %v6858_v49  ;;  %v263_v42 = vmul.f32 %v7049_v6, %v6794_v36 }
  0xe5   :  { %v499_v39 = vadd.f32 %v6792_v53, %v369_v9  ;;  %v372_v11 = vadd.f32 %v371_v5, %v259_v16 }
  0xe6   :  { %5642 = vtanh.f32 %v501_v18  ;;  %v502_v46 = vadd.f32 %v6838_v41, %v380_v51 }
  0xe7   :  { %5644 = vtanh.f32 %v499_v39  ;;  %v500_v12 = vadd.f32 %v6774_v21, %v372_v11 }
  0xe8   :  { %v5635_v4 = vpop.eup %5634  ;;  %5646 = vtanh.f32 %v502_v46  ;;  %v7093_v46 = vpop.permute.xlu1 %482 }
  0xe9   :  { %v5637_v7 = vpop.eup %5636  ;;  %5648 = vtanh.f32 %v500_v12  ;;  %v4589_v45 = vpop.f32.mrb[8].mxu0  ;;  %8714 = vst [vmem:[#allocation104_spill] sm:$0xff] %v7093_v46 }
  0xea   :  { %v5639_v22 = vpop.eup %5638  ;;  %v393_v1 = vadd.f32 %v4589_v45, %v264_v40  ;;  %v384_v17 = vpop.f32.mrb[9].mxu0  ;;  %v266_v45 = vmul.f32 %v7049_v6, %v6924_v33 }
  0xeb   :  { %v5641_v3 = vpop.eup %5640  ;;  %v385_v30 = vadd.f32 %v384_v17, %v262_v2  ;;  %v4590_v9 = vpop.f32.mrb[10].mxu0  ;;  %v7083_v16 = vpack.c.bf16 %v5639_v22, %v5635_v4  ;;  %v268_v4 = vmul.f32 %v7049_v6, %v6988_v29  ;;  %v269_v17 = vmul.f32 %v7049_v6, %v6986_v24 }
  0xec   :  { %v505_v23 = vadd.f32 %v6984_v32, %v393_v1  ;;  %v396_v18 = vadd.f32 %v4590_v9, %v265_v27  ;;  %v387_v51 = vpop.f32.mrb[11].mxu0  ;;  %v7086_v5 = vpack.c.bf16 %v5641_v3, %v5637_v7  ;;  %v7104_v3 = vpop.permute.xlu0 %487  ;;  %v267_v29 = vmul.f32 %v7049_v6, %v6922_v54 }
  0xed   :  { %v503_v39 = vadd.f32 %v6920_v35, %v385_v30  ;;  %v388_v11 = vadd.f32 %v387_v51, %v263_v42 }
  0xee   :  { %5650 = vtanh.f32 %v505_v23  ;;  %v506_v49 = vadd.f32 %v6966_v48, %v396_v18  ;;  %4613 = vmatprep.subr.bf16.mxu1 %v7086_v5 }
  0xef   :  { %5652 = vtanh.f32 %v503_v39  ;;  %v504_v36 = vadd.f32 %v6902_v19, %v388_v11  ;;  %4614 = vmatpush3.bf16.msra.mxu1 %v7086_v5  ;;  %v7114_v39 = vpop.permute.xlu1 %492 }
  0xf0   :  { %v5643_v12 = vpop.eup %5642  ;;  %5654 = vtanh.f32 %v506_v49  ;;  %4615 = vmatprep.subr.bf16.mxu1 %v7083_v16 }
  0xf1   :  { %v5645_v40 = vpop.eup %5644  ;;  %5656 = vtanh.f32 %v504_v36  ;;  %v4593_v7 = vpop.f32.mrb[12].mxu0 }
  0xf2   :  { %v5647_v2 = vpop.eup %5646  ;;  %v409_v22 = vadd.f32 %v4593_v7, %v268_v4  ;;  %v400_v1 = vpop.f32.mrb[13].mxu0 }
  0xf3   :  { %v5649_v27 = vpop.eup %5648  ;;  %v401_v30 = vadd.f32 %v400_v1, %v266_v45  ;;  %v4594_v9 = vpop.f32.mrb[14].mxu0  ;;  %4616 = vmatpush3.bf16.msra.mxu1 %v7083_v16  ;;  %v7109_v42 = vpack.c.bf16 %v5647_v2, %v5643_v12 }
  0xf4   :  { %v509_v33 = vadd.f32 %v7104_v3, %v409_v22  ;;  %v412_v23 = vadd.f32 %v4594_v9, %v269_v17  ;;  %v403_v18 = vpop.f32.mrb[15].mxu0  ;;  %v7112_v51 = vpack.c.bf16 %v5649_v27, %v5645_v40  ;;  %v7147_v9 = vld [vmem:[%s8562_s4 + $0x10] sm:$0xff]  }
  0xf5   :  { %v507_v24 = vadd.f32 %v7088_v56, %v401_v30  ;;  %v404_v11 = vadd.f32 %v403_v18, %v267_v29  ;;  %v7141_v30 = vld [vmem:[%s8562_s4 + $0x8] sm:$0xff]   ;;  %8716 = vst [vmem:[#allocation106_spill] sm:$0xff] %v7147_v9  ;;  %v7154_v29 = vld [vmem:[%s8562_s4 + $0x18] sm:$0xff]   ;;  %v7171_v18 = vld [vmem:[%s8562_s4 + $0x30] sm:$0xff]  }
  0xf6   :  { %5658 = vtanh.f32 %v509_v33  ;;  %v510_v49 = vadd.f32 %v7114_v39, %v412_v23  ;;  %4617 = vmatprep.subr.bf16.mxu1 %v7112_v51  ;;  %8715 = vst [vmem:[#allocation105_spill] sm:$0xff] %v7141_v30  ;;  %8717 = vst [vmem:[#allocation107_spill] sm:$0xff] %v7154_v29  ;;  %v7159_v33 = vld [vmem:[%s8562_s4 + $0x20] sm:$0xff]   ;;  %v7166_v23 = vld [vmem:[%s8562_s4 + $0x28] sm:$0xff]  }
  0xf7   :  { %5660 = vtanh.f32 %v507_v24  ;;  %v508_v54 = vadd.f32 %v7093_v46, %v404_v11  ;;  %4618 = vmatpush3.bf16.msra.mxu1 %v7112_v51  ;;  %8718 = vst [vmem:[#allocation108_spill] sm:$0xff] %v7159_v33  ;;  %8719 = vst [vmem:[#allocation109_spill] sm:$0xff] %v7166_v23  ;;  %v7178_v24 = vld [vmem:[%s8562_s4 + $0x38] sm:$0xff]   ;;  %v8565_v11 = vmov 0.0  }
  0xf8   :  { %v5651_v6 = vpop.eup %5650  ;;  %5662 = vtanh.f32 %v510_v49  ;;  %4619 = vmatprep.subr.bf16.mxu1 %v7109_v42  ;;  %8720 = vst [vmem:[#allocation110_spill] sm:$0xff] %v7171_v18  ;;  %8721 = vst [vmem:[#allocation111_spill] sm:$0xff] %v7178_v24  ;;  %4645 = vmatprep.subr.bf16.mxu0 %v8565_v11  ;;  %v7185_v49 = vpop.permute.xlu0 %827 }
  0xf9   :  { %v5653_v36 = vpop.eup %5652  ;;  %5664 = vtanh.f32 %v508_v54  ;;  %4661 = vmatprep.mubr.msk.bf16.mxu0 %vm6231_vm0, %v8565_v11  ;;  %8722 = vst [vmem:[#allocation112_spill] sm:$0xff] %v7185_v49  ;;  %v7187_v54 = vpop.permute.xlu1 %832 }
  0xfa   :  { %v5655_v12 = vpop.eup %5654  ;;  %8723 = vst [vmem:[#allocation113_spill] sm:$0xff] %v7187_v54 }
  0xfb   :  { %v5657_v4 = vpop.eup %5656  ;;  %4620 = vmatpush3.bf16.msra.mxu1 %v7109_v42  ;;  %v7123_v40 = vpack.c.bf16 %v5655_v12, %v5651_v6 }
  0xfc   :  { %v7125_v7 = vpack.c.bf16 %v5657_v4, %v5653_v36  ;;  %v7189_v6 = vpop.permute.xlu0 %837 }
  0xfd   :  { %8724 = vst [vmem:[#allocation114_spill] sm:$0xff] %v7189_v6  ;;  %v7191_v36 = vpop.permute.xlu1 %842 }
  0xfe   :  { %4621 = vmatprep.subr.bf16.mxu1 %v7125_v7  ;;  %8725 = vst [vmem:[#allocation115_spill] sm:$0xff] %v7191_v36 }
  0xff   :  { %4622 = vmatpush3.bf16.msra.mxu1 %v7125_v7 }
 0x100   :  { %v5659_v45 = vpop.eup %5658  ;;  %4623 = vmatprep.subr.bf16.mxu1 %v7123_v40  ;;  %v7193_v12 = vpop.permute.xlu0 %847 }
 0x101   :  { %v5661_v2 = vpop.eup %5660  ;;  %8726 = vst [vmem:[#allocation116_spill] sm:$0xff] %v7193_v12  ;;  %v7195_v4 = vpop.permute.xlu1 %852 }
 0x102   :  { %v5663_v22 = vpop.eup %5662 }
 0x103   :  { %v5665_v1 = vpop.eup %5664  ;;  %4624 = vmatpush3.bf16.msra.mxu1 %v7123_v40  ;;  %v7131_v17 = vpack.c.bf16 %v5663_v22, %v5659_v45 }
 0x104   :  { %v7133_v27 = vpack.c.bf16 %v5665_v1, %v5661_v2 }
 0x105   :  { %v7200_v1 = vpop.permute.xlu1 %862 }
 0x106   :  { %4625 = vmatprep.subr.bf16.mxu1 %v7133_v27  ;;  %8728 = vst [vmem:[#allocation118_spill] sm:$0xff] %v7200_v1 }
 0x107   :  { %4626 = vmatpush3.bf16.msra.mxu1 %v7133_v27 }
 0x108   :  { %4627 = vmatprep.subr.bf16.mxu1 %v7131_v17 }
 0x10b   :  { %4628 = vmatpush3.bf16.msra.mxu1 %v7131_v17 }
 0x10e   :  { %4630 = vmatmul.mubr.bf16.vlgmr.msra.gmra.mrb[0].mxu1 %v7141_v30 }
 0x10f   :  { %4633 = vmatprep.mubr.bf16.mxu1 %v7147_v9  ;;  %v7207_v9 = vpop.permute.xlu1 %872 }
 0x110   :  { %8730 = vst [vmem:[#allocation120_spill] sm:$0xff] %v7207_v9 }
 0x116   :  { %4634 = vmatmul.mubr.bf16.gmra.mrb[4].mxu1 %v7154_v29 }
 0x117   :  { %4637 = vmatprep.mubr.bf16.mxu1 %v7159_v33 }
 0x11e   :  { %4638 = vmatmul.mubr.bf16.gmra.mrb[8].mxu1 %v7166_v23 }
 0x11f   :  { %4641 = vmatprep.mubr.bf16.mxu1 %v7171_v18 }
 0x126   :  { %4642 = vmatmul.mubr.bf16.gmra.mrb[12].mxu1 %v7178_v24 }
 0x127   :  { %4713 = vmatprep.mubr.bf16.mxu1 %v6456_v59  ;;  %v7197_v59 = vpop.permute.xlu0 %857 }
 0x128   :  { %8727 = vst [vmem:[#allocation117_spill] sm:$0xff] %v7197_v59 }
 0x12b   :  { %v7205_v29 = vpop.permute.xlu0 %867 }
 0x12c   :  { %8729 = vst [vmem:[#allocation119_spill] sm:$0xff] %v7205_v29 }
 0x1e1   :  { %v4631_v45 = vpop.f32.mrb[0].mxu1 }
 0x1e2   :  { %v907_v2 = vadd.f32 %v4631_v45, %v7189_v6  ;;  %v762_v22 = vpop.f32.mrb[1].mxu1 }
 0x1e3   :  { %v905_v11 = vadd.f32 %v7185_v49, %v762_v22  ;;  %v4632_v24 = vpop.f32.mrb[2].mxu1 }
 0x1e4   :  { %5666 = vtanh.f32 %v907_v2  ;;  %v908_v18 = vadd.f32 %v4632_v24, %v7191_v36  ;;  %v765_v23 = vpop.f32.mrb[3].mxu1 }
 0x1e5   :  { %5668 = vtanh.f32 %v905_v11  ;;  %v906_v33 = vadd.f32 %v7187_v54, %v765_v23  ;;  %v7212_v11 = vpop.permute.xlu0 %877  ;;  %v7215_v54 = vpop.permute.xlu1 %882 }
 0x1e6   :  { %5670 = vtanh.f32 %v908_v18  ;;  %8731 = vst [vmem:[#allocation121_spill] sm:$0xff] %v7212_v11  ;;  %8732 = vst [vmem:[#allocation122_spill] sm:$0xff] %v7215_v54 }
 0x1e7   :  { %5672 = vtanh.f32 %v906_v33 }
 0x1e9   :  { %v4635_v45 = vpop.f32.mrb[4].mxu1 }
 0x1ea   :  { %v911_v6 = vadd.f32 %v4635_v45, %v7197_v59  ;;  %v778_v30 = vpop.f32.mrb[5].mxu1 }
 0x1eb   :  { %v909_v22 = vadd.f32 %v7193_v12, %v778_v30  ;;  %v4636_v49 = vpop.f32.mrb[6].mxu1 }
 0x1ec   :  { %5674 = vtanh.f32 %v911_v6  ;;  %v912_v24 = vadd.f32 %v4636_v49, %v7200_v1  ;;  %v781_v2 = vpop.f32.mrb[7].mxu1  ;;  %v7218_v1 = vpop.permute.xlu0 %887 }
 0x1ed   :  { %5676 = vtanh.f32 %v909_v22  ;;  %v910_v23 = vadd.f32 %v7195_v4, %v781_v2 }
 0x1ee   :  { %v5667_v18 = vpop.eup %5666  ;;  %5678 = vtanh.f32 %v912_v24 }
 0x1ef   :  { %v5669_v33 = vpop.eup %5668  ;;  %5680 = vtanh.f32 %v910_v23  ;;  %v7222_v23 = vpop.permute.xlu1 %892 }
 0x1f0   :  { %v5671_v45 = vpop.eup %5670 }
 0x1f1   :  { %v5673_v59 = vpop.eup %5672  ;;  %v4639_v36 = vpop.f32.mrb[8].mxu1  ;;  %v938_v30 = vpack.c.bf16 %v5671_v45, %v5667_v18 }
 0x1f2   :  { %v915_v6 = vadd.f32 %v4639_v36, %v7212_v11  ;;  %v794_v12 = vpop.f32.mrb[9].mxu1  ;;  %v937_v49 = vpack.c.bf16 %v5673_v59, %v5669_v33  ;;  %v8733_v36 = vmov 0.0  }
 0x1f3   :  { %v913_v22 = vadd.f32 %v7205_v29, %v794_v12  ;;  %v4640_v46 = vpop.f32.mrb[10].mxu1 }
 0x1f4   :  { %5682 = vtanh.f32 %v915_v6  ;;  %v916_v24 = vadd.f32 %v4640_v46, %v7215_v54  ;;  %v797_v2 = vpop.f32.mrb[11].mxu1  ;;  %4646 = vmatpush3.bf16.msra.mxu0 %v937_v49  ;;  %4697 = vmatprep.subr.bf16.mxu1 %v937_v49  ;;  %v7226_v46 = vpop.permute.xlu0 %897 }
 0x1f5   :  { %5684 = vtanh.f32 %v913_v22  ;;  %v914_v18 = vadd.f32 %v7207_v9, %v797_v2  ;;  %4698 = vmatpush3.bf16.msra.mxu1 %v937_v49  ;;  %4647 = vmatprep.subr.bf16.mxu0 %v8733_v36  ;;  %v7230_v54 = vpop.permute.xlu1 %902 }
 0x1f6   :  { %v5675_v59 = vpop.eup %5674  ;;  %5686 = vtanh.f32 %v916_v24  ;;  %4699 = vmatprep.subr.bf16.mxu1 %v938_v30 }
 0x1f7   :  { %v5677_v33 = vpop.eup %5676  ;;  %5688 = vtanh.f32 %v914_v18 }
 0x1f8   :  { %v5679_v12 = vpop.eup %5678  ;;  %4648 = vmatpush3.bf16.msra.mxu0 %v938_v30 }
 0x1f9   :  { %v5681_v45 = vpop.eup %5680  ;;  %v4643_v6 = vpop.f32.mrb[12].mxu1  ;;  %4700 = vmatpush3.bf16.msra.mxu1 %v938_v30  ;;  %4649 = vmatprep.subr.bf16.mxu0 %v8733_v36  ;;  %v940_v22 = vpack.c.bf16 %v5679_v12, %v5675_v59 }
 0x1fa   :  { %v919_v2 = vadd.f32 %v4643_v6, %v7226_v46  ;;  %v810_v49 = vpop.f32.mrb[13].mxu1  ;;  %v939_v9 = vpack.c.bf16 %v5681_v45, %v5677_v33 }
 0x1fb   :  { %v917_v24 = vadd.f32 %v7218_v1, %v810_v49  ;;  %v4644_v29 = vpop.f32.mrb[14].mxu1 }
 0x1fc   :  { %5690 = vtanh.f32 %v919_v2  ;;  %v920_v18 = vadd.f32 %v4644_v29, %v7230_v54  ;;  %v813_v11 = vpop.f32.mrb[15].mxu1  ;;  %4650 = vmatpush3.bf16.msra.mxu0 %v939_v9  ;;  %4701 = vmatprep.subr.bf16.mxu1 %v939_v9 }
 0x1fd   :  { %5692 = vtanh.f32 %v917_v24  ;;  %v918_v30 = vadd.f32 %v7222_v23, %v813_v11  ;;  %4702 = vmatpush3.bf16.msra.mxu1 %v939_v9  ;;  %4651 = vmatprep.subr.bf16.mxu0 %v8733_v36 }
 0x1fe   :  { %v5683_v59 = vpop.eup %5682  ;;  %5694 = vtanh.f32 %v920_v18  ;;  %4703 = vmatprep.subr.bf16.mxu1 %v940_v22  ;;  %v7243_v18 = vld [vmem:[%s8563_s7] sm:$0xf] }
 0x1ff   :  { %v5685_v33 = vpop.eup %5684  ;;  %5696 = vtanh.f32 %v918_v30  ;;  %v7251_v30 = vld [vmem:[%s8556_s2] sm:$0xff]  }
 0x200   :  { %v5687_v12 = vpop.eup %5686  ;;  %4652 = vmatpush3.bf16.msra.mxu0 %v940_v22 }
 0x201   :  { %v5689_v45 = vpop.eup %5688  ;;  %4704 = vmatpush3.bf16.msra.mxu1 %v940_v22  ;;  %4653 = vmatprep.subr.bf16.mxu0 %v8733_v36  ;;  %v942_v29 = vpack.c.bf16 %v5687_v12, %v5683_v59 }
 0x202   :  { %v941_v6 = vpack.c.bf16 %v5689_v45, %v5685_v33 }
 0x204   :  { %4654 = vmatpush3.bf16.msra.mxu0 %v941_v6  ;;  %4705 = vmatprep.subr.bf16.mxu1 %v941_v6 }
 0x205   :  { %4706 = vmatpush3.bf16.msra.mxu1 %v941_v6  ;;  %4655 = vmatprep.subr.bf16.mxu0 %v8733_v36 }
 0x206   :  { %v5691_v9 = vpop.eup %5690  ;;  %4707 = vmatprep.subr.bf16.mxu1 %v942_v29 }
 0x207   :  { %v5693_v11 = vpop.eup %5692 }
 0x208   :  { %v5695_v2 = vpop.eup %5694  ;;  %4656 = vmatpush3.bf16.msra.mxu0 %v942_v29 }
 0x209   :  { %v5697_v49 = vpop.eup %5696  ;;  %4708 = vmatpush3.bf16.msra.mxu1 %v942_v29  ;;  %4657 = vmatprep.subr.bf16.mxu0 %v8733_v36  ;;  %v944_v24 = vpack.c.bf16 %v5695_v2, %v5691_v9 }
 0x20a   :  { %v943_v22 = vpack.c.bf16 %v5697_v49, %v5693_v11 }
 0x20c   :  { %4658 = vmatpush3.bf16.msra.mxu0 %v943_v22  ;;  %4709 = vmatprep.subr.bf16.mxu1 %v943_v22 }
 0x20d   :  { %4710 = vmatpush3.bf16.msra.mxu1 %v943_v22  ;;  %4659 = vmatprep.subr.bf16.mxu0 %v8733_v36 }
 0x20e   :  { %4711 = vmatprep.subr.bf16.mxu1 %v944_v24 }
 0x210   :  { %4660 = vmatpush3.bf16.msra.mxu0 %v944_v24 }
 0x211   :  { %4665 = vmatprep.subr.bf16.mxu0 %v7086_v5  ;;  %4712 = vmatpush3.bf16.msra.mxu1 %v944_v24 }
 0x213   :  { %4662 = vmatmul.mubr.bf16.vlgmr.msra.gmra.mrb[16].mxu0 %v7243_v18 }
 0x214   :  { %4666 = vmatpush3.bf16.msra.mxu0 %v7086_v5  ;;  %4681 = vmatprep.mubr.bf16.mxu0 %v7251_v30 }
 0x215   :  { %4667 = vmatprep.subr.bf16.mxu0 %v7083_v16  ;;  %4714 = vmatmul.mubr.bf16.vlgmr.msra.gmra.mrb[16].mxu1 %v6461_v60  ;;  %v7280_v60 = vld [vmem:[%s8556_s2 + $0x8] sm:$0xff]  }
 0x216   :  { %4717 = vmatprep.mubr.bf16.mxu1 %v6468_v61  ;;  %v7286_v61 = vld [vmem:[%s8556_s2 + $0x10] sm:$0xff]  }
 0x218   :  { %4668 = vmatpush3.bf16.msra.mxu0 %v7083_v16 }
 0x219   :  { %4669 = vmatprep.subr.bf16.mxu0 %v7112_v51 }
 0x21c   :  { %4670 = vmatpush3.bf16.msra.mxu0 %v7112_v51 }
 0x21d   :  { %4671 = vmatprep.subr.bf16.mxu0 %v7109_v42  ;;  %4718 = vmatmul.mubr.bf16.gmra.mrb[20].mxu1 %v6473_v62  ;;  %v7292_v62 = vld [vmem:[%s8556_s2 + $0x18] sm:$0xff]  }
 0x21e   :  { %4721 = vmatprep.mubr.bf16.mxu1 %v6480_v63  ;;  %v7298_v63 = vld [vmem:[%s8556_s2 + $0x20] sm:$0xff]  }
 0x220   :  { %4672 = vmatpush3.bf16.msra.mxu0 %v7109_v42  ;;  %v988_v42 = vpop.permute.xlu0 %987 }
 0x221   :  { %4673 = vmatprep.subr.bf16.mxu0 %v7125_v7 }
 0x224   :  { %4674 = vmatpush3.bf16.msra.mxu0 %v7125_v7 }
 0x225   :  { %4675 = vmatprep.subr.bf16.mxu0 %v7123_v40  ;;  %4722 = vmatmul.mubr.bf16.gmra.mrb[24].mxu1 %v6485_v0  ;;  %v7304_v0 = vld [vmem:[%s8556_s2 + $0x28] sm:$0xff]  }
 0x226   :  { %4725 = vmatprep.mubr.bf16.mxu1 %v6543_v13  ;;  %v7310_v13 = vld [vmem:[%s8556_s2 + $0x30] sm:$0xff]  }
 0x228   :  { %4676 = vmatpush3.bf16.msra.mxu0 %v7123_v40 }
 0x229   :  { %4677 = vmatprep.subr.bf16.mxu0 %v7133_v27 }
 0x22c   :  { %4678 = vmatpush3.bf16.msra.mxu0 %v7133_v27 }
 0x22d   :  { %4679 = vmatprep.subr.bf16.mxu0 %v7131_v17  ;;  %4726 = vmatmul.mubr.bf16.gmra.mrb[28].mxu1 %v6548_v14  ;;  %v7316_v14 = vld [vmem:[%s8556_s2 + $0x38] sm:$0xff]  }
 0x22e   :  { %4745 = vmatprep.mubr.bf16.mxu1 %v6663_v44  ;;  %v990_v44 = vlaneseq }
 0x230   :  { %4680 = vmatpush3.bf16.msra.mxu0 %v7131_v17  ;;  %v991_v16 = vshrl.u32 %v990_v44, 7 }
 0x231   :  { %4761 = vmatprep.subr.bf16.mxu0 %v8733_v36 }
 0x232   :  { %v992_v5 = vsub.s32 0, %v991_v16 }
 0x233   :  { %4682 = vmatmul.mubr.bf16.vlgmr.msra.gmra.mrb[20].mxu0 %v7280_v60 }
 0x234   :  { %4685 = vmatprep.mubr.bf16.mxu0 %v7286_v61  ;;  %v7321_v51 = vrot.slane %v988_v42, %v992_v5 }
 0x23b   :  { %4686 = vmatmul.mubr.bf16.gmra.mrb[24].mxu0 %v7292_v62 }
 0x23c   :  { %4689 = vmatprep.mubr.bf16.mxu0 %v7298_v63 }
 0x243   :  { %4690 = vmatmul.mubr.bf16.gmra.mrb[28].mxu0 %v7304_v0 }
 0x244   :  { %4693 = vmatprep.mubr.bf16.mxu0 %v7310_v13 }
 0x24b   :  { %4694 = vmatmul.mubr.bf16.gmra.mrb[32].mxu0 %v7316_v14 }
 0x24c   :  { %4777 = vmatprep.mubr.msk.bf16.mxu0 %vm6231_vm0, %v8733_v36 }
 0x2e6   :  { %v979_v40 = vpop.f32.mrb[16].mxu0 }
 0x2e7   :  { %v994_v7 = vadd.f32 %v7321_v51, %v979_v40  ;;  %v4663_v17 = vpop.f32.mrb[17].mxu0 }
 0x2e8   :  { %v982_v27 = vpop.f32.mrb[18].mxu0 }
 0x2e9   :  { %995 = vst [vmem:[%s8564_s9] sm:$0x1] %v994_v7  ;;  %v4664_v59 = vpop.f32.mrb[19].mxu0 }
 0x306   :  { %v4683_v33 = vpop.f32.mrb[20].mxu0 }
 0x307   :  { %v1062_v12 = vadd.f32 %v4683_v33, %v6520_v8  ;;  %v1053_v45 = vpop.f32.mrb[21].mxu0 }
 0x308   :  { %v1054_v29 = vadd.f32 %v1053_v45, %v6552_v15  ;;  %v4684_v6 = vpop.f32.mrb[22].mxu0 }
 0x309   :  { %v1118_v9 = vadd.f32 %v1062_v12, %v6728_v25  ;;  %v1065_v11 = vadd.f32 %v4684_v6, %v6602_v28  ;;  %v1056_v2 = vpop.f32.mrb[23].mxu0 }
 0x30a   :  { %v1116_v49 = vadd.f32 %v1054_v29, %v6658_v43  ;;  %v1057_v24 = vadd.f32 %v1056_v2, %v6614_v31 }
 0x30b   :  { %5698 = vtanh.f32 %v1118_v9  ;;  %v1119_v22 = vadd.f32 %v1065_v11, %v6710_v57 }
 0x30c   :  { %5700 = vtanh.f32 %v1116_v49  ;;  %v1117_v44 = vadd.f32 %v1057_v24, %v6640_v38 }
 0x30d   :  { %5702 = vtanh.f32 %v1119_v22 }
 0x30e   :  { %5704 = vtanh.f32 %v1117_v44  ;;  %v4687_v8 = vpop.f32.mrb[24].mxu0 }
 0x30f   :  { %v1078_v15 = vadd.f32 %v4687_v8, %v6748_v26  ;;  %v1069_v16 = vpop.f32.mrb[25].mxu0 }
 0x310   :  { %v1070_v5 = vadd.f32 %v1069_v16, %v6684_v50  ;;  %v4688_v28 = vpop.f32.mrb[26].mxu0 }
 0x311   :  { %v1122_v42 = vadd.f32 %v1078_v15, %v6856_v52  ;;  %v1081_v40 = vadd.f32 %v4688_v28, %v6736_v58  ;;  %v1072_v31 = vpop.f32.mrb[27].mxu0 }
 0x312   :  { %v1120_v7 = vadd.f32 %v1070_v5, %v6792_v53  ;;  %v1073_v17 = vadd.f32 %v1072_v31, %v6672_v47 }
 0x313   :  { %5706 = vtanh.f32 %v1122_v42  ;;  %v1123_v27 = vadd.f32 %v1081_v40, %v6838_v41  ;;  %v8734_v42 = vld [vmem:[#allocation80_spill] sm:$0xff] }
 0x314   :  { %5708 = vtanh.f32 %v1120_v7  ;;  %v1121_v59 = vadd.f32 %v1073_v17, %v6774_v21 }
 0x315   :  { %v5699_v26 = vpop.eup %5698  ;;  %5710 = vtanh.f32 %v1123_v27  ;;  %v8735_v27 = vld [vmem:[#allocation91_spill] sm:$0xff] }
 0x316   :  { %v5701_v33 = vpop.eup %5700  ;;  %5712 = vtanh.f32 %v1121_v59  ;;  %v4691_v50 = vpop.f32.mrb[28].mxu0 }
 0x317   :  { %v5703_v12 = vpop.eup %5702  ;;  %v1094_v45 = vadd.f32 %v4691_v50, %v6876_v55  ;;  %v1085_v58 = vpop.f32.mrb[29].mxu0 }
 0x318   :  { %v5705_v29 = vpop.eup %5704  ;;  %v1086_v6 = vadd.f32 %v1085_v58, %v6812_v37  ;;  %v4692_v9 = vpop.f32.mrb[30].mxu0  ;;  %v7345_v47 = vpack.c.bf16 %v5703_v12, %v5699_v26  ;;  %v8736_v12 = vld [vmem:[#allocation77_spill] sm:$0xff]  ;;  %v8737_v58 = vld [vmem:[#allocation104_spill] sm:$0xff] }
 0x319   :  { %v1126_v11 = vadd.f32 %v1094_v45, %v6984_v32  ;;  %v1097_v2 = vadd.f32 %v4692_v9, %v6864_v34  ;;  %v1088_v49 = vpop.f32.mrb[31].mxu0  ;;  %v7349_v24 = vpack.c.bf16 %v5705_v29, %v5701_v33 }
 0x31a   :  { %v1124_v22 = vadd.f32 %v1086_v6, %v6920_v35  ;;  %v1089_v44 = vadd.f32 %v1088_v49, %v6800_v20 }
 0x31b   :  { %5714 = vtanh.f32 %v1126_v11  ;;  %v1127_v55 = vadd.f32 %v1097_v2, %v6966_v48  ;;  %4729 = vmatprep.subr.bf16.mxu1 %v7349_v24 }
 0x31c   :  { %5716 = vtanh.f32 %v1124_v22  ;;  %v1125_v37 = vadd.f32 %v1089_v44, %v6902_v19  ;;  %4730 = vmatpush3.bf16.msra.mxu1 %v7349_v24 }
 0x31d   :  { %v5707_v8 = vpop.eup %5706  ;;  %5718 = vtanh.f32 %v1127_v55  ;;  %4731 = vmatprep.subr.bf16.mxu1 %v7345_v47 }
 0x31e   :  { %v5709_v34 = vpop.eup %5708  ;;  %5720 = vtanh.f32 %v1125_v37  ;;  %v4695_v15 = vpop.f32.mrb[32].mxu0 }
 0x31f   :  { %v5711_v16 = vpop.eup %5710  ;;  %v1110_v20 = vadd.f32 %v4695_v15, %v7004_v10  ;;  %v1101_v5 = vpop.f32.mrb[33].mxu0 }
 0x320   :  { %v5713_v28 = vpop.eup %5712  ;;  %v1102_v40 = vadd.f32 %v1101_v5, %v8734_v42  ;;  %v4696_v31 = vpop.f32.mrb[34].mxu0  ;;  %4732 = vmatpush3.bf16.msra.mxu1 %v7345_v47  ;;  %v7361_v7 = vpack.c.bf16 %v5711_v16, %v5707_v8  ;;  %v8738_v16 = vld [vmem:[#allocation105_spill] sm:$0xff]  ;;  %v8740_v5 = vld [vmem:[#allocation107_spill] sm:$0xff] }
 0x321   :  { %v1130_v17 = vadd.f32 %v1110_v20, %v7104_v3  ;;  %v1113_v59 = vadd.f32 %v4696_v31, %v8735_v27  ;;  %v1104_v26 = vpop.f32.mrb[35].mxu0  ;;  %v7365_v33 = vpack.c.bf16 %v5713_v28, %v5709_v34  ;;  %v8739_v20 = vld [vmem:[#allocation106_spill] sm:$0xff]  ;;  %v8741_v28 = vld [vmem:[#allocation108_spill] sm:$0xff]  ;;  %v8742_v42 = vld [vmem:[#allocation109_spill] sm:$0xff] }
 0x322   :  { %v1128_v50 = vadd.f32 %v1102_v40, %v7088_v56  ;;  %v1105_v10 = vadd.f32 %v1104_v26, %v8736_v12  ;;  %v8743_v40 = vld [vmem:[#allocation110_spill] sm:$0xff]  ;;  %v8744_v31 = vld [vmem:[#allocation111_spill] sm:$0xff]  ;;  %v8746_v12 = vld [vmem:[#allocation112_spill] sm:$0xff] }
 0x323   :  { %5722 = vtanh.f32 %v1130_v17  ;;  %v1131_v45 = vadd.f32 %v1113_v59, %v7114_v39  ;;  %4733 = vmatprep.subr.bf16.mxu1 %v7365_v33  ;;  %v7401_v17 = vld [vmem:[%s8560_s5] sm:$0xff]   ;;  %v8745_v59 = vld [vmem:[#allocation114_spill] sm:$0xff] }
 0x324   :  { %5724 = vtanh.f32 %v1128_v50  ;;  %v1129_v29 = vadd.f32 %v1105_v10, %v8737_v58  ;;  %4734 = vmatpush3.bf16.msra.mxu1 %v7365_v33 }
 0x325   :  { %v5715_v6 = vpop.eup %5714  ;;  %5726 = vtanh.f32 %v1131_v45  ;;  %4735 = vmatprep.subr.bf16.mxu1 %v7361_v7 }
 0x326   :  { %v5717_v9 = vpop.eup %5716  ;;  %5728 = vtanh.f32 %v1129_v29  ;;  %v8747_v29 = vld [vmem:[#allocation115_spill] sm:$0xff] }
 0x327   :  { %v5719_v11 = vpop.eup %5718 }
 0x328   :  { %v5721_v2 = vpop.eup %5720  ;;  %4736 = vmatpush3.bf16.msra.mxu1 %v7361_v7  ;;  %v7375_v49 = vpack.c.bf16 %v5719_v11, %v5715_v6  ;;  %v8748_v11 = vld [vmem:[#allocation113_spill] sm:$0xff] }
 0x329   :  { %v7377_v22 = vpack.c.bf16 %v5721_v2, %v5717_v9 }
 0x32b   :  { %4737 = vmatprep.subr.bf16.mxu1 %v7377_v22 }
 0x32c   :  { %4738 = vmatpush3.bf16.msra.mxu1 %v7377_v22 }
 0x32d   :  { %v5723_v44 = vpop.eup %5722  ;;  %4739 = vmatprep.subr.bf16.mxu1 %v7375_v49 }
 0x32e   :  { %v5725_v55 = vpop.eup %5724 }
 0x32f   :  { %v5727_v37 = vpop.eup %5726 }
 0x330   :  { %v5729_v8 = vpop.eup %5728  ;;  %4740 = vmatpush3.bf16.msra.mxu1 %v7375_v49  ;;  %v7383_v34 = vpack.c.bf16 %v5727_v37, %v5723_v44 }
 0x331   :  { %v7385_v15 = vpack.c.bf16 %v5729_v8, %v5725_v55  ;;  %v8749_v55 = vld [vmem:[#allocation117_spill] sm:$0xff] }
 0x333   :  { %4741 = vmatprep.subr.bf16.mxu1 %v7385_v15 }
 0x334   :  { %4742 = vmatpush3.bf16.msra.mxu1 %v7385_v15 }
 0x335   :  { %4743 = vmatprep.subr.bf16.mxu1 %v7383_v34 }
 0x338   :  { %4744 = vmatpush3.bf16.msra.mxu1 %v7383_v34 }
 0x33b   :  { %4746 = vmatmul.mubr.bf16.vlgmr.msra.gmra.mrb[16].mxu1 %v8738_v16  ;;  %v8750_v16 = vld [vmem:[#allocation116_spill] sm:$0xff] }
 0x33c   :  { %4749 = vmatprep.mubr.bf16.mxu1 %v8739_v20 }
 0x343   :  { %4750 = vmatmul.mubr.bf16.gmra.mrb[20].mxu1 %v8740_v5 }
 0x344   :  { %4753 = vmatprep.mubr.bf16.mxu1 %v8741_v28  ;;  %v8751_v28 = vld [vmem:[#allocation118_spill] sm:$0xff] }
 0x34b   :  { %4754 = vmatmul.mubr.bf16.gmra.mrb[24].mxu1 %v8742_v42 }
 0x34c   :  { %4757 = vmatprep.mubr.bf16.mxu1 %v8743_v40 }
 0x353   :  { %4758 = vmatmul.mubr.bf16.gmra.mrb[28].mxu1 %v8744_v31 }
 0x354   :  { %4829 = vmatprep.mubr.bf16.mxu1 %v7401_v17 }
 0x40e   :  { %v4747_v27 = vpop.f32.mrb[16].mxu1 }
 0x40f   :  { %v1352_v26 = vadd.f32 %v4747_v27, %v8745_v59  ;;  %v1287_v50 = vpop.f32.mrb[17].mxu1 }
 0x410   :  { %v1350_v10 = vadd.f32 %v1287_v50, %v8746_v12  ;;  %v4748_v45 = vpop.f32.mrb[18].mxu1 }
 0x411   :  { %5730 = vtanh.f32 %v1352_v26  ;;  %v1353_v6 = vadd.f32 %v4748_v45, %v8747_v29  ;;  %v1290_v9 = vpop.f32.mrb[19].mxu1 }
 0x412   :  { %5732 = vtanh.f32 %v1350_v10  ;;  %v1351_v2 = vadd.f32 %v1290_v9, %v8748_v11  ;;  %v8752_v9 = vld [vmem:[#allocation121_spill] sm:$0xff] }
 0x413   :  { %5734 = vtanh.f32 %v1353_v6 }
 0x414   :  { %5736 = vtanh.f32 %v1351_v2 }
 0x416   :  { %v4751_v44 = vpop.f32.mrb[20].mxu1 }
 0x417   :  { %v1356_v37 = vadd.f32 %v4751_v44, %v8749_v55  ;;  %v1303_v8 = vpop.f32.mrb[21].mxu1 }
 0x418   :  { %v1354_v20 = vadd.f32 %v1303_v8, %v8750_v16  ;;  %v4752_v5 = vpop.f32.mrb[22].mxu1  ;;  %v8753_v16 = vld [vmem:[#allocation119_spill] sm:$0xff] }
 0x419   :  { %5738 = vtanh.f32 %v1356_v37  ;;  %v1357_v42 = vadd.f32 %v4752_v5, %v8751_v28  ;;  %v1306_v40 = vpop.f32.mrb[23].mxu1  ;;  %v8754_v5 = vld [vmem:[#allocation122_spill] sm:$0xff] }
 0x41a   :  { %5740 = vtanh.f32 %v1354_v20  ;;  %v1355_v31 = vadd.f32 %v1306_v40, %v7195_v4 }
 0x41b   :  { %v5731_v27 = vpop.eup %5730  ;;  %5742 = vtanh.f32 %v1357_v42  ;;  %v8755_v42 = vld [vmem:[#allocation120_spill] sm:$0xff] }
 0x41c   :  { %v5733_v26 = vpop.eup %5732  ;;  %5744 = vtanh.f32 %v1355_v31 }
 0x41d   :  { %v5735_v50 = vpop.eup %5734 }
 0x41e   :  { %v5737_v10 = vpop.eup %5736  ;;  %v4755_v45 = vpop.f32.mrb[24].mxu1  ;;  %v1383_v6 = vpack.c.bf16 %v5735_v50, %v5731_v27 }
 0x41f   :  { %v1360_v2 = vadd.f32 %v4755_v45, %v8752_v9  ;;  %v1319_v44 = vpop.f32.mrb[25].mxu1  ;;  %v1382_v8 = vpack.c.bf16 %v5737_v10, %v5733_v26 }
 0x420   :  { %v1358_v37 = vadd.f32 %v1319_v44, %v8753_v16  ;;  %v4756_v55 = vpop.f32.mrb[26].mxu1 }
 0x421   :  { %5746 = vtanh.f32 %v1360_v2  ;;  %v1361_v20 = vadd.f32 %v4756_v55, %v8754_v5  ;;  %v1322_v28 = vpop.f32.mrb[27].mxu1  ;;  %4762 = vmatpush3.bf16.msra.mxu0 %v1382_v8  ;;  %4813 = vmatprep.subr.bf16.mxu1 %v1382_v8 }
 0x422   :  { %5748 = vtanh.f32 %v1358_v37  ;;  %v1359_v40 = vadd.f32 %v1322_v28, %v8755_v42  ;;  %4814 = vmatpush3.bf16.msra.mxu1 %v1382_v8  ;;  %4763 = vmatprep.subr.bf16.mxu0 %v8733_v36 }
 0x423   :  { %v5739_v31 = vpop.eup %5738  ;;  %5750 = vtanh.f32 %v1361_v20  ;;  %4815 = vmatprep.subr.bf16.mxu1 %v1383_v6 }
 0x424   :  { %v5741_v27 = vpop.eup %5740  ;;  %5752 = vtanh.f32 %v1359_v40 }
 0x425   :  { %v5743_v26 = vpop.eup %5742  ;;  %4764 = vmatpush3.bf16.msra.mxu0 %v1383_v6 }
 0x426   :  { %v5745_v50 = vpop.eup %5744  ;;  %v4759_v10 = vpop.f32.mrb[28].mxu1  ;;  %4816 = vmatpush3.bf16.msra.mxu1 %v1383_v6  ;;  %4765 = vmatprep.subr.bf16.mxu0 %v8733_v36  ;;  %v1385_v55 = vpack.c.bf16 %v5743_v26, %v5739_v31 }
 0x427   :  { %v1364_v45 = vadd.f32 %v4759_v10, %v7226_v46  ;;  %v1335_v2 = vpop.f32.mrb[29].mxu1  ;;  %v1384_v28 = vpack.c.bf16 %v5745_v50, %v5741_v27 }
 0x428   :  { %v1362_v44 = vadd.f32 %v1335_v2, %v7218_v1  ;;  %v4760_v8 = vpop.f32.mrb[30].mxu1 }
 0x429   :  { %5754 = vtanh.f32 %v1364_v45  ;;  %v1365_v37 = vadd.f32 %v4760_v8, %v7230_v54  ;;  %v1338_v20 = vpop.f32.mrb[31].mxu1  ;;  %4766 = vmatpush3.bf16.msra.mxu0 %v1384_v28  ;;  %4817 = vmatprep.subr.bf16.mxu1 %v1384_v28 }
 0x42a   :  { %5756 = vtanh.f32 %v1362_v44  ;;  %v1363_v40 = vadd.f32 %v1338_v20, %v7222_v23  ;;  %4818 = vmatpush3.bf16.msra.mxu1 %v1384_v28  ;;  %4767 = vmatprep.subr.bf16.mxu0 %v8733_v36  ;;  %v7441_v20 = vld [vmem:[%s8560_s5 + $0x10] sm:$0xff]  }
 0x42b   :  { %v5747_v6 = vpop.eup %5746  ;;  %5758 = vtanh.f32 %v1365_v37  ;;  %4819 = vmatprep.subr.bf16.mxu1 %v1385_v55  ;;  %v7435_v37 = vld [vmem:[%s8560_s5 + $0x8] sm:$0xff]  }
 0x42c   :  { %v5749_v31 = vpop.eup %5748  ;;  %5760 = vtanh.f32 %v1363_v40 }
 0x42d   :  { %v5751_v27 = vpop.eup %5750  ;;  %4768 = vmatpush3.bf16.msra.mxu0 %v1385_v55 }
 0x42e   :  { %v5753_v26 = vpop.eup %5752  ;;  %4820 = vmatpush3.bf16.msra.mxu1 %v1385_v55  ;;  %4769 = vmatprep.subr.bf16.mxu0 %v8733_v36  ;;  %v1387_v50 = vpack.c.bf16 %v5751_v27, %v5747_v6 }
 0x42f   :  { %v1386_v10 = vpack.c.bf16 %v5753_v26, %v5749_v31  ;;  %v8758_v31 = vld [vmem:[#allocation17_spill] sm:$0xff] }
 0x431   :  { %4770 = vmatpush3.bf16.msra.mxu0 %v1386_v10  ;;  %4821 = vmatprep.subr.bf16.mxu1 %v1386_v10 }
 0x432   :  { %4822 = vmatpush3.bf16.msra.mxu1 %v1386_v10  ;;  %4771 = vmatprep.subr.bf16.mxu0 %v8733_v36  ;;  %v8759_v10 = vld [vmem:[#allocation19_spill] sm:$0xff] }
 0x433   :  { %v5755_v45 = vpop.eup %5754  ;;  %4823 = vmatprep.subr.bf16.mxu1 %v1387_v50 }
 0x434   :  { %v5757_v2 = vpop.eup %5756 }
 0x435   :  { %v5759_v28 = vpop.eup %5758  ;;  %4772 = vmatpush3.bf16.msra.mxu0 %v1387_v50 }
 0x436   :  { %v5761_v44 = vpop.eup %5760  ;;  %4824 = vmatpush3.bf16.msra.mxu1 %v1387_v50  ;;  %4773 = vmatprep.subr.bf16.mxu0 %v8733_v36  ;;  %v1389_v8 = vpack.c.bf16 %v5759_v28, %v5755_v45 }
 0x437   :  { %v1388_v55 = vpack.c.bf16 %v5761_v44, %v5757_v2 }
 0x439   :  { %4774 = vmatpush3.bf16.msra.mxu0 %v1388_v55  ;;  %4825 = vmatprep.subr.bf16.mxu1 %v1388_v55 }
 0x43a   :  { %4826 = vmatpush3.bf16.msra.mxu1 %v1388_v55  ;;  %4775 = vmatprep.subr.bf16.mxu0 %v8733_v36 }
 0x43b   :  { %4827 = vmatprep.subr.bf16.mxu1 %v1389_v8 }
 0x43d   :  { %4776 = vmatpush3.bf16.msra.mxu0 %v1389_v8 }
 0x43e   :  { %4781 = vmatprep.subr.bf16.mxu0 %v7349_v24  ;;  %4828 = vmatpush3.bf16.msra.mxu1 %v1389_v8  ;;  %v8760_v8 = vld [vmem:[#allocation43_spill] sm:$0xff] }
 0x440   :  { %4778 = vmatmul.mubr.bf16.vlgmr.msra.gmra.mrb[36].mxu0 %v7243_v18  ;;  %v7451_v18 = vld [vmem:[%s8560_s5 + $0x18] sm:$0xff]  }
 0x441   :  { %4782 = vmatpush3.bf16.msra.mxu0 %v7349_v24  ;;  %4797 = vmatprep.mubr.bf16.mxu0 %v7251_v30  ;;  %v7457_v30 = vld [vmem:[%s8560_s5 + $0x20] sm:$0xff]   ;;  %v7473_v24 = vld [vmem:[%s8560_s5 + $0x30] sm:$0xff]  }
 0x442   :  { %4783 = vmatprep.subr.bf16.mxu0 %v7345_v47  ;;  %4830 = vmatmul.mubr.bf16.vlgmr.msra.gmra.mrb[32].mxu1 %v7435_v37 }
 0x443   :  { %4833 = vmatprep.mubr.bf16.mxu1 %v7441_v20 }
 0x445   :  { %4784 = vmatpush3.bf16.msra.mxu0 %v7345_v47  ;;  %v7467_v47 = vld [vmem:[%s8560_s5 + $0x28] sm:$0xff]  }
 0x446   :  { %4785 = vmatprep.subr.bf16.mxu0 %v7365_v33 }
 0x449   :  { %4786 = vmatpush3.bf16.msra.mxu0 %v7365_v33  ;;  %v7489_v33 = vld [vmem:[%s8562_s4] sm:$0xff]  }
 0x44a   :  { %4787 = vmatprep.subr.bf16.mxu0 %v7361_v7  ;;  %4834 = vmatmul.mubr.bf16.gmra.mrb[36].mxu1 %v7451_v18 }
 0x44b   :  { %4837 = vmatprep.mubr.bf16.mxu1 %v7457_v30 }
 0x44d   :  { %4788 = vmatpush3.bf16.msra.mxu0 %v7361_v7  ;;  %v7483_v7 = vld [vmem:[%s8560_s5 + $0x38] sm:$0xff]  }
 0x44e   :  { %4789 = vmatprep.subr.bf16.mxu0 %v7377_v22 }
 0x451   :  { %4790 = vmatpush3.bf16.msra.mxu0 %v7377_v22 }
 0x452   :  { %4791 = vmatprep.subr.bf16.mxu0 %v7375_v49  ;;  %4838 = vmatmul.mubr.bf16.gmra.mrb[40].mxu1 %v7467_v47 }
 0x453   :  { %4841 = vmatprep.mubr.bf16.mxu1 %v7473_v24 }
 0x455   :  { %4792 = vmatpush3.bf16.msra.mxu0 %v7375_v49 }
 0x456   :  { %4793 = vmatprep.subr.bf16.mxu0 %v7385_v15 }
 0x459   :  { %4794 = vmatpush3.bf16.msra.mxu0 %v7385_v15 }
 0x45a   :  { %4795 = vmatprep.subr.bf16.mxu0 %v7383_v34  ;;  %4842 = vmatmul.mubr.bf16.gmra.mrb[44].mxu1 %v7483_v7 }
 0x45b   :  { %4861 = vmatprep.mubr.bf16.mxu1 %v7489_v33 }
 0x45d   :  { %4796 = vmatpush3.bf16.msra.mxu0 %v7383_v34 }
 0x45e   :  { %4877 = vmatprep.subr.bf16.mxu0 %v8733_v36 }
 0x460   :  { %4798 = vmatmul.mubr.bf16.vlgmr.msra.gmra.mrb[40].mxu0 %v7280_v60 }
 0x461   :  { %4801 = vmatprep.mubr.bf16.mxu0 %v7286_v61 }
 0x468   :  { %4802 = vmatmul.mubr.bf16.gmra.mrb[44].mxu0 %v7292_v62 }
 0x469   :  { %4805 = vmatprep.mubr.bf16.mxu0 %v7298_v63  ;;  %v8756_v63 = vld [vmem:[#allocation5_spill] sm:$0xff] }
 0x470   :  { %4806 = vmatmul.mubr.bf16.gmra.mrb[48].mxu0 %v7304_v0 }
 0x471   :  { %4809 = vmatprep.mubr.bf16.mxu0 %v7310_v13  ;;  %v8757_v13 = vld [vmem:[#allocation7_spill] sm:$0xff] }
 0x478   :  { %4810 = vmatmul.mubr.bf16.gmra.mrb[52].mxu0 %v7316_v14 }
 0x479   :  { %4893 = vmatprep.mubr.msk.bf16.mxu0 %vm6231_vm0, %v8733_v36 }
 0x513   :  { %v1424_v49 = vpop.f32.mrb[36].mxu0 }
 0x514   :  { %v1430_v22 = vadd.f32 %v1424_v49, %v7321_v51  ;;  %v4779_v34 = vpop.f32.mrb[37].mxu0 }
 0x515   :  { %v1427_v60 = vpop.f32.mrb[38].mxu0 }
 0x516   :  { %4116 = vst [vmem:[%s8564_s9 + $0x1] sm:$0x1] %v1430_v22  ;;  %v4780_v61 = vpop.f32.mrb[39].mxu0  ;;  %v8761_v22 = vld [vmem:[#allocation31_spill] sm:$0xff] }
 0x533   :  { %v4799_v62 = vpop.f32.mrb[40].mxu0 }
 0x534   :  { %v1499_v0 = vadd.f32 %v4799_v62, %v8756_v63  ;;  %v1490_v15 = vpop.f32.mrb[41].mxu0  ;;  %v8762_v62 = vld [vmem:[#allocation41_spill] sm:$0xff] }
 0x535   :  { %v1491_v40 = vadd.f32 %v1490_v15, %v8757_v13  ;;  %v4800_v14 = vpop.f32.mrb[42].mxu0  ;;  %v8763_v13 = vld [vmem:[#allocation29_spill] sm:$0xff] }
 0x536   :  { %v1555_v6 = vadd.f32 %v1499_v0, %v6728_v25  ;;  %v1502_v27 = vadd.f32 %v4800_v14, %v8758_v31  ;;  %v1493_v26 = vpop.f32.mrb[43].mxu0 }
 0x537   :  { %v1553_v50 = vadd.f32 %v1491_v40, %v6658_v43  ;;  %v1494_v45 = vadd.f32 %v1493_v26, %v8759_v10  ;;  %v8764_v10 = vld [vmem:[#allocation67_spill] sm:$0xff] }
 0x538   :  { %5762 = vtanh.f32 %v1555_v6  ;;  %v1556_v2 = vadd.f32 %v1502_v27, %v6710_v57 }
 0x539   :  { %5764 = vtanh.f32 %v1553_v50  ;;  %v1554_v28 = vadd.f32 %v1494_v45, %v6640_v38 }
 0x53a   :  { %5766 = vtanh.f32 %v1556_v2 }
 0x53b   :  { %5768 = vtanh.f32 %v1554_v28  ;;  %v4803_v44 = vpop.f32.mrb[44].mxu0 }
 0x53c   :  { %v1515_v55 = vadd.f32 %v4803_v44, %v8760_v8  ;;  %v1506_v49 = vpop.f32.mrb[45].mxu0  ;;  %v8765_v44 = vld [vmem:[#allocation55_spill] sm:$0xff] }
 0x53d   :  { %v1507_v34 = vadd.f32 %v1506_v49, %v8761_v22  ;;  %v4804_v60 = vpop.f32.mrb[46].mxu0 }
 0x53e   :  { %v1559_v61 = vadd.f32 %v1515_v55, %v6856_v52  ;;  %v1518_v63 = vadd.f32 %v4804_v60, %v8762_v62  ;;  %v1509_v0 = vpop.f32.mrb[47].mxu0 }
 0x53f   :  { %v1557_v15 = vadd.f32 %v1507_v34, %v6792_v53  ;;  %v1510_v40 = vadd.f32 %v1509_v0, %v8763_v13  ;;  %v8766_v34 = vld [vmem:[#allocation65_spill] sm:$0xff] }
 0x540   :  { %5770 = vtanh.f32 %v1559_v61  ;;  %v1560_v14 = vadd.f32 %v1518_v63, %v6838_v41  ;;  %v8767_v0 = vld [vmem:[#allocation53_spill] sm:$0xff] }
 0x541   :  { %5772 = vtanh.f32 %v1557_v15  ;;  %v1558_v6 = vadd.f32 %v1510_v40, %v6774_v21 }
 0x542   :  { %v5763_v31 = vpop.eup %5762  ;;  %5774 = vtanh.f32 %v1560_v14 }
 0x543   :  { %v5765_v27 = vpop.eup %5764  ;;  %5776 = vtanh.f32 %v1558_v6  ;;  %v4807_v26 = vpop.f32.mrb[48].mxu0 }
 0x544   :  { %v5767_v50 = vpop.eup %5766  ;;  %v1531_v45 = vadd.f32 %v4807_v26, %v8764_v10  ;;  %v1522_v2 = vpop.f32.mrb[49].mxu0  ;;  %v8768_v26 = vld [vmem:[#allocation94_spill] sm:$0xff] }
 0x545   :  { %v5769_v28 = vpop.eup %5768  ;;  %v1523_v8 = vadd.f32 %v1522_v2, %v8765_v44  ;;  %v4808_v55 = vpop.f32.mrb[50].mxu0  ;;  %v7525_v49 = vpack.c.bf16 %v5767_v50, %v5763_v31  ;;  %v8769_v2 = vld [vmem:[#allocation81_spill] sm:$0xff] }
 0x546   :  { %v1563_v22 = vadd.f32 %v1531_v45, %v6984_v32  ;;  %v1534_v60 = vadd.f32 %v4808_v55, %v8766_v34  ;;  %v1525_v61 = vpop.f32.mrb[51].mxu0  ;;  %v7529_v62 = vpack.c.bf16 %v5769_v28, %v5765_v27 }
 0x547   :  { %v1561_v63 = vadd.f32 %v1523_v8, %v6920_v35  ;;  %v1526_v15 = vadd.f32 %v1525_v61, %v8767_v0  ;;  %v8771_v0 = vld [vmem:[#allocation78_spill] sm:$0xff] }
 0x548   :  { %5778 = vtanh.f32 %v1563_v22  ;;  %v1564_v13 = vadd.f32 %v1534_v60, %v6966_v48  ;;  %4845 = vmatprep.subr.bf16.mxu1 %v7529_v62  ;;  %v8770_v22 = vld [vmem:[#allocation92_spill] sm:$0xff] }
 0x549   :  { %5780 = vtanh.f32 %v1561_v63  ;;  %v1562_v40 = vadd.f32 %v1526_v15, %v6902_v19  ;;  %4846 = vmatpush3.bf16.msra.mxu1 %v7529_v62 }
 0x54a   :  { %v5771_v14 = vpop.eup %5770  ;;  %5782 = vtanh.f32 %v1564_v13  ;;  %4847 = vmatprep.subr.bf16.mxu1 %v7525_v49 }
 0x54b   :  { %v5773_v6 = vpop.eup %5772  ;;  %5784 = vtanh.f32 %v1562_v40  ;;  %v4811_v31 = vpop.f32.mrb[52].mxu0 }
 0x54c   :  { %v5775_v27 = vpop.eup %5774  ;;  %v1547_v50 = vadd.f32 %v4811_v31, %v8768_v26  ;;  %v1538_v10 = vpop.f32.mrb[53].mxu0 }
 0x54d   :  { %v5777_v45 = vpop.eup %5776  ;;  %v1539_v28 = vadd.f32 %v1538_v10, %v8769_v2  ;;  %v4812_v44 = vpop.f32.mrb[54].mxu0  ;;  %4848 = vmatpush3.bf16.msra.mxu1 %v7525_v49  ;;  %v7541_v8 = vpack.c.bf16 %v5775_v27, %v5771_v14 }
 0x54e   :  { %v1567_v55 = vadd.f32 %v1547_v50, %v7104_v3  ;;  %v1550_v34 = vadd.f32 %v4812_v44, %v8770_v22  ;;  %v1541_v60 = vpop.f32.mrb[55].mxu0  ;;  %v7545_v61 = vpack.c.bf16 %v5777_v45, %v5773_v6  ;;  %v7574_v22 = vld [vmem:[%s8562_s4 + $0x8] sm:$0xff]  }
 0x54f   :  { %v1565_v63 = vadd.f32 %v1539_v28, %v7088_v56  ;;  %v1542_v15 = vadd.f32 %v1541_v60, %v8771_v0  ;;  %v7586_v60 = vld [vmem:[%s8562_s4 + $0x18] sm:$0xff]   ;;  %v7598_v0 = vld [vmem:[%s8562_s4 + $0x28] sm:$0xff]  }
 0x550   :  { %5786 = vtanh.f32 %v1567_v55  ;;  %v1568_v13 = vadd.f32 %v1550_v34, %v7114_v39  ;;  %4849 = vmatprep.subr.bf16.mxu1 %v7545_v61  ;;  %v7580_v34 = vld [vmem:[%s8562_s4 + $0x10] sm:$0xff]   ;;  %8773 = vst [vmem:[#allocation91_spill] sm:$0xff] %v7598_v0 }
 0x551   :  { %5788 = vtanh.f32 %v1565_v63  ;;  %v1566_v40 = vadd.f32 %v1542_v15, %v8737_v58  ;;  %4850 = vmatpush3.bf16.msra.mxu1 %v7545_v61  ;;  %v7592_v63 = vld [vmem:[%s8562_s4 + $0x20] sm:$0xff]   ;;  %v7604_v15 = vld [vmem:[%s8562_s4 + $0x30] sm:$0xff]  }
 0x552   :  { %v5779_v14 = vpop.eup %5778  ;;  %5790 = vtanh.f32 %v1568_v13  ;;  %4851 = vmatprep.subr.bf16.mxu1 %v7541_v8  ;;  %8772 = vst [vmem:[#allocation80_spill] sm:$0xff] %v7592_v63  ;;  %8774 = vst [vmem:[#allocation77_spill] sm:$0xff] %v7604_v15  ;;  %v7610_v13 = vld [vmem:[%s8562_s4 + $0x38] sm:$0xff]  }
 0x553   :  { %v5781_v6 = vpop.eup %5780  ;;  %5792 = vtanh.f32 %v1566_v40  ;;  %8775 = vst [vmem:[#allocation104_spill] sm:$0xff] %v7610_v13 }
 0x554   :  { %v5783_v31 = vpop.eup %5782 }
 0x555   :  { %v5785_v27 = vpop.eup %5784  ;;  %4852 = vmatpush3.bf16.msra.mxu1 %v7541_v8  ;;  %v7555_v26 = vpack.c.bf16 %v5783_v31, %v5779_v14 }
 0x556   :  { %v7557_v50 = vpack.c.bf16 %v5785_v27, %v5781_v6 }
 0x558   :  { %4853 = vmatprep.subr.bf16.mxu1 %v7557_v50 }
 0x559   :  { %4854 = vmatpush3.bf16.msra.mxu1 %v7557_v50 }
 0x55a   :  { %v5787_v10 = vpop.eup %5786  ;;  %4855 = vmatprep.subr.bf16.mxu1 %v7555_v26 }
 0x55b   :  { %v5789_v45 = vpop.eup %5788 }
 0x55c   :  { %v5791_v2 = vpop.eup %5790 }
 0x55d   :  { %v5793_v28 = vpop.eup %5792  ;;  %4856 = vmatpush3.bf16.msra.mxu1 %v7555_v26  ;;  %v7563_v44 = vpack.c.bf16 %v5791_v2, %v5787_v10 }
 0x55e   :  { %v7565_v55 = vpack.c.bf16 %v5793_v28, %v5789_v45 }
 0x560   :  { %4857 = vmatprep.subr.bf16.mxu1 %v7565_v55 }
 0x561   :  { %4858 = vmatpush3.bf16.msra.mxu1 %v7565_v55 }
 0x562   :  { %4859 = vmatprep.subr.bf16.mxu1 %v7563_v44 }
 0x565   :  { %4860 = vmatpush3.bf16.msra.mxu1 %v7563_v44 }
 0x568   :  { %4862 = vmatmul.mubr.bf16.vlgmr.msra.gmra.mrb[32].mxu1 %v7574_v22 }
 0x569   :  { %4865 = vmatprep.mubr.bf16.mxu1 %v7580_v34 }
 0x570   :  { %4866 = vmatmul.mubr.bf16.gmra.mrb[36].mxu1 %v7586_v60 }
 0x571   :  { %4869 = vmatprep.mubr.bf16.mxu1 %v7592_v63 }
 0x578   :  { %4870 = vmatmul.mubr.bf16.gmra.mrb[40].mxu1 %v7598_v0  ;;  %v8777_v0 = vld [vmem:[#allocation116_spill] sm:$0xff] }
 0x579   :  { %4873 = vmatprep.mubr.bf16.mxu1 %v7604_v15 }
 0x580   :  { %4874 = vmatmul.mubr.bf16.gmra.mrb[44].mxu1 %v7610_v13  ;;  %v8776_v13 = vld [vmem:[#allocation117_spill] sm:$0xff] }
 0x581   :  { %4945 = vmatprep.mubr.bf16.mxu1 %v7401_v17 }
 0x63b   :  { %v4863_v40 = vpop.f32.mrb[32].mxu1 }
 0x63c   :  { %v1789_v14 = vadd.f32 %v4863_v40, %v8745_v59  ;;  %v1724_v6 = vpop.f32.mrb[33].mxu1  ;;  %v8778_v59 = vld [vmem:[#allocation118_spill] sm:$0xff] }
 0x63d   :  { %v1787_v31 = vadd.f32 %v1724_v6, %v8746_v12  ;;  %v4864_v27 = vpop.f32.mrb[34].mxu1 }
 0x63e   :  { %5794 = vtanh.f32 %v1789_v14  ;;  %v1790_v10 = vadd.f32 %v4864_v27, %v8747_v29  ;;  %v1727_v45 = vpop.f32.mrb[35].mxu1 }
 0x63f   :  { %5796 = vtanh.f32 %v1787_v31  ;;  %v1788_v2 = vadd.f32 %v1727_v45, %v8748_v11 }
 0x640   :  { %5798 = vtanh.f32 %v1790_v10 }
 0x641   :  { %5800 = vtanh.f32 %v1788_v2 }
 0x643   :  { %v4867_v28 = vpop.f32.mrb[36].mxu1 }
 0x644   :  { %v1793_v15 = vadd.f32 %v4867_v28, %v8776_v13  ;;  %v1740_v17 = vpop.f32.mrb[37].mxu1 }
 0x645   :  { %v1791_v63 = vadd.f32 %v1740_v17, %v8777_v0  ;;  %v4868_v40 = vpop.f32.mrb[38].mxu1 }
 0x646   :  { %5802 = vtanh.f32 %v1793_v15  ;;  %v1794_v6 = vadd.f32 %v4868_v40, %v8778_v59  ;;  %v1743_v12 = vpop.f32.mrb[39].mxu1 }
 0x647   :  { %5804 = vtanh.f32 %v1791_v63  ;;  %v1792_v14 = vadd.f32 %v1743_v12, %v7195_v4 }
 0x648   :  { %v5795_v27 = vpop.eup %5794  ;;  %5806 = vtanh.f32 %v1794_v6 }
 0x649   :  { %v5797_v31 = vpop.eup %5796  ;;  %5808 = vtanh.f32 %v1792_v14 }
 0x64a   :  { %v5799_v10 = vpop.eup %5798 }
 0x64b   :  { %v5801_v45 = vpop.eup %5800  ;;  %v4871_v2 = vpop.f32.mrb[40].mxu1  ;;  %v1820_v11 = vpack.c.bf16 %v5799_v10, %v5795_v27 }
 0x64c   :  { %v1797_v28 = vadd.f32 %v4871_v2, %v8752_v9  ;;  %v1756_v13 = vpop.f32.mrb[41].mxu1  ;;  %v1819_v17 = vpack.c.bf16 %v5801_v45, %v5797_v31 }
 0x64d   :  { %v1795_v15 = vadd.f32 %v1756_v13, %v8753_v16  ;;  %v4872_v0 = vpop.f32.mrb[42].mxu1 }
 0x64e   :  { %5810 = vtanh.f32 %v1797_v28  ;;  %v1798_v63 = vadd.f32 %v4872_v0, %v8754_v5  ;;  %v1759_v40 = vpop.f32.mrb[43].mxu1  ;;  %4878 = vmatpush3.bf16.msra.mxu0 %v1819_v17  ;;  %4929 = vmatprep.subr.bf16.mxu1 %v1819_v17 }
 0x64f   :  { %5812 = vtanh.f32 %v1795_v15  ;;  %v1796_v12 = vadd.f32 %v1759_v40, %v8755_v42  ;;  %4930 = vmatpush3.bf16.msra.mxu1 %v1819_v17  ;;  %4879 = vmatprep.subr.bf16.mxu0 %v8733_v36 }
 0x650   :  { %v5803_v6 = vpop.eup %5802  ;;  %5814 = vtanh.f32 %v1798_v63  ;;  %4931 = vmatprep.subr.bf16.mxu1 %v1820_v11 }
 0x651   :  { %v5805_v14 = vpop.eup %5804  ;;  %5816 = vtanh.f32 %v1796_v12 }
 0x652   :  { %v5807_v27 = vpop.eup %5806  ;;  %4880 = vmatpush3.bf16.msra.mxu0 %v1820_v11 }
 0x653   :  { %v5809_v13 = vpop.eup %5808  ;;  %v4875_v31 = vpop.f32.mrb[44].mxu1  ;;  %4932 = vmatpush3.bf16.msra.mxu1 %v1820_v11  ;;  %4881 = vmatprep.subr.bf16.mxu0 %v8733_v36  ;;  %v1822_v0 = vpack.c.bf16 %v5807_v27, %v5803_v6 }
 0x654   :  { %v1801_v10 = vadd.f32 %v4875_v31, %v7226_v46  ;;  %v1772_v45 = vpop.f32.mrb[45].mxu1  ;;  %v1821_v2 = vpack.c.bf16 %v5809_v13, %v5805_v14 }
 0x655   :  { %v1799_v28 = vadd.f32 %v1772_v45, %v7218_v1  ;;  %v4876_v17 = vpop.f32.mrb[46].mxu1 }
 0x656   :  { %5818 = vtanh.f32 %v1801_v10  ;;  %v1802_v15 = vadd.f32 %v4876_v17, %v7230_v54  ;;  %v1775_v63 = vpop.f32.mrb[47].mxu1  ;;  %4882 = vmatpush3.bf16.msra.mxu0 %v1821_v2  ;;  %4933 = vmatprep.subr.bf16.mxu1 %v1821_v2  ;;  %v7641_v17 = vld [vmem:[%s8563_s7] sm:$0xf] }
 0x657   :  { %5820 = vtanh.f32 %v1799_v28  ;;  %v1800_v40 = vadd.f32 %v1775_v63, %v7222_v23  ;;  %4934 = vmatpush3.bf16.msra.mxu1 %v1821_v2  ;;  %4883 = vmatprep.subr.bf16.mxu0 %v8733_v36  ;;  %v8780_v63 = vld [vmem:[#allocation8_spill] sm:$0xff] }
 0x658   :  { %v5811_v11 = vpop.eup %5810  ;;  %5822 = vtanh.f32 %v1802_v15  ;;  %4935 = vmatprep.subr.bf16.mxu1 %v1822_v0  ;;  %v7648_v15 = vld [vmem:[%s8556_s2] sm:$0xff]  }
 0x659   :  { %v5813_v12 = vpop.eup %5812  ;;  %5824 = vtanh.f32 %v1800_v40 }
 0x65a   :  { %v5815_v6 = vpop.eup %5814  ;;  %4884 = vmatpush3.bf16.msra.mxu0 %v1822_v0 }
 0x65b   :  { %v5817_v14 = vpop.eup %5816  ;;  %4936 = vmatpush3.bf16.msra.mxu1 %v1822_v0  ;;  %4885 = vmatprep.subr.bf16.mxu0 %v8733_v36  ;;  %v1824_v27 = vpack.c.bf16 %v5815_v6, %v5811_v11  ;;  %v8781_v6 = vld [vmem:[#allocation18_spill] sm:$0xff] }
 0x65c   :  { %v1823_v13 = vpack.c.bf16 %v5817_v14, %v5813_v12 }
 0x65e   :  { %4886 = vmatpush3.bf16.msra.mxu0 %v1823_v13  ;;  %4937 = vmatprep.subr.bf16.mxu1 %v1823_v13 }
 0x65f   :  { %4938 = vmatpush3.bf16.msra.mxu1 %v1823_v13  ;;  %4887 = vmatprep.subr.bf16.mxu0 %v8733_v36 }
 0x660   :  { %v5819_v31 = vpop.eup %5818  ;;  %4939 = vmatprep.subr.bf16.mxu1 %v1824_v27 }
 0x661   :  { %v5821_v10 = vpop.eup %5820 }
 0x662   :  { %v5823_v45 = vpop.eup %5822  ;;  %4888 = vmatpush3.bf16.msra.mxu0 %v1824_v27 }
 0x663   :  { %v5825_v2 = vpop.eup %5824  ;;  %4940 = vmatpush3.bf16.msra.mxu1 %v1824_v27  ;;  %4889 = vmatprep.subr.bf16.mxu0 %v8733_v36  ;;  %v1826_v28 = vpack.c.bf16 %v5823_v45, %v5819_v31  ;;  %v8782_v31 = vld [vmem:[#allocation20_spill] sm:$0xff] }
 0x664   :  { %v1825_v0 = vpack.c.bf16 %v5825_v2, %v5821_v10 }
 0x666   :  { %4890 = vmatpush3.bf16.msra.mxu0 %v1825_v0  ;;  %4941 = vmatprep.subr.bf16.mxu1 %v1825_v0 }
 0x667   :  { %4942 = vmatpush3.bf16.msra.mxu1 %v1825_v0  ;;  %4891 = vmatprep.subr.bf16.mxu0 %v8733_v36  ;;  %v8783_v0 = vld [vmem:[#allocation44_spill] sm:$0xff] }
 0x668   :  { %4943 = vmatprep.subr.bf16.mxu1 %v1826_v28 }
 0x66a   :  { %4892 = vmatpush3.bf16.msra.mxu0 %v1826_v28 }
 0x66b   :  { %4897 = vmatprep.subr.bf16.mxu0 %v7529_v62  ;;  %4944 = vmatpush3.bf16.msra.mxu1 %v1826_v28 }
 0x66d   :  { %4894 = vmatmul.mubr.bf16.vlgmr.msra.gmra.mrb[56].mxu0 %v7641_v17 }
 0x66e   :  { %4898 = vmatpush3.bf16.msra.mxu0 %v7529_v62  ;;  %4913 = vmatprep.mubr.bf16.mxu0 %v7648_v15 }
 0x66f   :  { %4899 = vmatprep.subr.bf16.mxu0 %v7525_v49  ;;  %4946 = vmatmul.mubr.bf16.vlgmr.msra.gmra.mrb[48].mxu1 %v7435_v37  ;;  %v7677_v37 = vld [vmem:[%s8556_s2 + $0x8] sm:$0xff]  }
 0x670   :  { %4949 = vmatprep.mubr.bf16.mxu1 %v7441_v20  ;;  %v7683_v20 = vld [vmem:[%s8556_s2 + $0x10] sm:$0xff]  }
 0x672   :  { %4900 = vmatpush3.bf16.msra.mxu0 %v7525_v49 }
 0x673   :  { %4901 = vmatprep.subr.bf16.mxu0 %v7545_v61 }
 0x676   :  { %4902 = vmatpush3.bf16.msra.mxu0 %v7545_v61 }
 0x677   :  { %4903 = vmatprep.subr.bf16.mxu0 %v7541_v8  ;;  %4950 = vmatmul.mubr.bf16.gmra.mrb[52].mxu1 %v7451_v18  ;;  %v7689_v18 = vld [vmem:[%s8556_s2 + $0x18] sm:$0xff]  }
 0x678   :  { %4953 = vmatprep.mubr.bf16.mxu1 %v7457_v30  ;;  %v7695_v30 = vld [vmem:[%s8556_s2 + $0x20] sm:$0xff]  }
 0x67a   :  { %4904 = vmatpush3.bf16.msra.mxu0 %v7541_v8 }
 0x67b   :  { %4905 = vmatprep.subr.bf16.mxu0 %v7557_v50 }
 0x67e   :  { %4906 = vmatpush3.bf16.msra.mxu0 %v7557_v50  ;;  %v8779_v50 = vld [vmem:[#allocation6_spill] sm:$0xff] }
 0x67f   :  { %4907 = vmatprep.subr.bf16.mxu0 %v7555_v26  ;;  %4954 = vmatmul.mubr.bf16.gmra.mrb[56].mxu1 %v7467_v47  ;;  %v7701_v47 = vld [vmem:[%s8556_s2 + $0x28] sm:$0xff]  }
 0x680   :  { %4957 = vmatprep.mubr.bf16.mxu1 %v7473_v24  ;;  %v7707_v24 = vld [vmem:[%s8556_s2 + $0x30] sm:$0xff]  }
 0x682   :  { %4908 = vmatpush3.bf16.msra.mxu0 %v7555_v26 }
 0x683   :  { %4909 = vmatprep.subr.bf16.mxu0 %v7565_v55 }
 0x686   :  { %4910 = vmatpush3.bf16.msra.mxu0 %v7565_v55 }
 0x687   :  { %4911 = vmatprep.subr.bf16.mxu0 %v7563_v44  ;;  %4958 = vmatmul.mubr.bf16.gmra.mrb[60].mxu1 %v7483_v7  ;;  %v7713_v7 = vld [vmem:[%s8556_s2 + $0x38] sm:$0xff]  }
 0x688   :  { %4977 = vmatprep.mubr.bf16.mxu1 %v7489_v33 }
 0x68a   :  { %4912 = vmatpush3.bf16.msra.mxu0 %v7563_v44 }
 0x68b   :  { %4993 = vmatprep.subr.bf16.mxu0 %v8733_v36 }
 0x68d   :  { %4914 = vmatmul.mubr.bf16.vlgmr.msra.gmra.mrb[60].mxu0 %v7677_v37 }
 0x68e   :  { %4917 = vmatprep.mubr.bf16.mxu0 %v7683_v20 }
 0x695   :  { %4918 = vmatmul.mubr.bf16.gmra.mrb[64].mxu0 %v7689_v18 }
 0x696   :  { %4921 = vmatprep.mubr.bf16.mxu0 %v7695_v30 }
 0x69d   :  { %4922 = vmatmul.mubr.bf16.gmra.mrb[68].mxu0 %v7701_v47 }
 0x69e   :  { %4925 = vmatprep.mubr.bf16.mxu0 %v7707_v24 }
 0x6a5   :  { %4926 = vmatmul.mubr.bf16.gmra.mrb[72].mxu0 %v7713_v7 }
 0x6a6   :  { %5009 = vmatprep.mubr.msk.bf16.mxu0 %vm6231_vm0, %v8733_v36 }
 0x740   :  { %v1861_v33 = vpop.f32.mrb[56].mxu0 }
 0x741   :  { %v1867_v49 = vadd.f32 %v1861_v33, %v7321_v51  ;;  %v4895_v62 = vpop.f32.mrb[57].mxu0 }
 0x742   :  { %v1864_v8 = vpop.f32.mrb[58].mxu0  ;;  %v8784_v62 = vld [vmem:[#allocation32_spill] sm:$0xff] }
 0x743   :  { %4119 = vst [vmem:[%s8564_s9 + $0x2] sm:$0x1] %v1867_v49  ;;  %v4896_v61 = vpop.f32.mrb[59].mxu0 }
 0x760   :  { %v4915_v26 = vpop.f32.mrb[60].mxu0 }
 0x761   :  { %v1936_v44 = vadd.f32 %v4915_v26, %v8779_v50  ;;  %v1927_v55 = vpop.f32.mrb[61].mxu0  ;;  %v8785_v50 = vld [vmem:[#allocation42_spill] sm:$0xff] }
 0x762   :  { %v1928_v40 = vadd.f32 %v1927_v55, %v8780_v63  ;;  %v4916_v11 = vpop.f32.mrb[62].mxu0 }
 0x763   :  { %v1992_v12 = vadd.f32 %v1936_v44, %v6728_v25  ;;  %v1939_v14 = vadd.f32 %v4916_v11, %v8781_v6  ;;  %v1930_v27 = vpop.f32.mrb[63].mxu0 }
 0x764   :  { %v1990_v13 = vadd.f32 %v1928_v40, %v6658_v43  ;;  %v1931_v10 = vadd.f32 %v1930_v27, %v8782_v31  ;;  %v8786_v40 = vld [vmem:[#allocation30_spill] sm:$0xff] }
 0x765   :  { %5826 = vtanh.f32 %v1992_v12  ;;  %v1993_v45 = vadd.f32 %v1939_v14, %v6710_v57 }
 0x766   :  { %5828 = vtanh.f32 %v1990_v13  ;;  %v1991_v2 = vadd.f32 %v1931_v10, %v6640_v38  ;;  %v8787_v10 = vld [vmem:[#allocation68_spill] sm:$0xff] }
 0x767   :  { %5830 = vtanh.f32 %v1993_v45 }
 0x768   :  { %5832 = vtanh.f32 %v1991_v2  ;;  %v4919_v28 = vpop.f32.mrb[64].mxu0 }
 0x769   :  { %v1952_v33 = vadd.f32 %v4919_v28, %v8783_v0  ;;  %v1943_v49 = vpop.f32.mrb[65].mxu0  ;;  %v8788_v0 = vld [vmem:[#allocation56_spill] sm:$0xff] }
 0x76a   :  { %v1944_v8 = vadd.f32 %v1943_v49, %v8784_v62  ;;  %v4920_v61 = vpop.f32.mrb[66].mxu0 }
 0x76b   :  { %v1996_v26 = vadd.f32 %v1952_v33, %v6856_v52  ;;  %v1955_v44 = vadd.f32 %v4920_v61, %v8785_v50  ;;  %v1946_v55 = vpop.f32.mrb[67].mxu0  ;;  %v8789_v61 = vld [vmem:[#allocation66_spill] sm:$0xff] }
 0x76c   :  { %v1994_v63 = vadd.f32 %v1944_v8, %v6792_v53  ;;  %v1947_v11 = vadd.f32 %v1946_v55, %v8786_v40 }
 0x76d   :  { %5834 = vtanh.f32 %v1996_v26  ;;  %v1997_v12 = vadd.f32 %v1955_v44, %v6838_v41 }
 0x76e   :  { %5836 = vtanh.f32 %v1994_v63  ;;  %v1995_v6 = vadd.f32 %v1947_v11, %v6774_v21  ;;  %v8790_v63 = vld [vmem:[#allocation54_spill] sm:$0xff] }
 0x76f   :  { %v5827_v14 = vpop.eup %5826  ;;  %5838 = vtanh.f32 %v1997_v12 }
 0x770   :  { %v5829_v27 = vpop.eup %5828  ;;  %5840 = vtanh.f32 %v1995_v6  ;;  %v4923_v13 = vpop.f32.mrb[68].mxu0 }
 0x771   :  { %v5831_v31 = vpop.eup %5830  ;;  %v1968_v45 = vadd.f32 %v4923_v13, %v8787_v10  ;;  %v1959_v2 = vpop.f32.mrb[69].mxu0 }
 0x772   :  { %v5833_v28 = vpop.eup %5832  ;;  %v1960_v33 = vadd.f32 %v1959_v2, %v8788_v0  ;;  %v4924_v49 = vpop.f32.mrb[70].mxu0  ;;  %v7740_v62 = vpack.c.bf16 %v5831_v31, %v5827_v14  ;;  %v8791_v31 = vld [vmem:[#allocation95_spill] sm:$0xff] }
 0x773   :  { %v2000_v8 = vadd.f32 %v1968_v45, %v6984_v32  ;;  %v1971_v26 = vadd.f32 %v4924_v49, %v8789_v61  ;;  %v1962_v50 = vpop.f32.mrb[71].mxu0  ;;  %v7744_v44 = vpack.c.bf16 %v5833_v28, %v5829_v27  ;;  %v8792_v28 = vld [vmem:[#allocation82_spill] sm:$0xff]  ;;  %v8793_v61 = vld [vmem:[#allocation93_spill] sm:$0xff] }
 0x774   :  { %v1998_v55 = vadd.f32 %v1960_v33, %v6920_v35  ;;  %v1963_v40 = vadd.f32 %v1962_v50, %v8790_v63 }
 0x775   :  { %5842 = vtanh.f32 %v2000_v8  ;;  %v2001_v11 = vadd.f32 %v1971_v26, %v6966_v48  ;;  %4961 = vmatprep.subr.bf16.mxu1 %v7744_v44 }
 0x776   :  { %5844 = vtanh.f32 %v1998_v55  ;;  %v1999_v12 = vadd.f32 %v1963_v40, %v6902_v19  ;;  %4962 = vmatpush3.bf16.msra.mxu1 %v7744_v44  ;;  %v8794_v40 = vld [vmem:[#allocation79_spill] sm:$0xff] }
 0x777   :  { %v5835_v6 = vpop.eup %5834  ;;  %5846 = vtanh.f32 %v2001_v11  ;;  %4963 = vmatprep.subr.bf16.mxu1 %v7740_v62 }
 0x778   :  { %v5837_v14 = vpop.eup %5836  ;;  %5848 = vtanh.f32 %v1999_v12  ;;  %v4927_v27 = vpop.f32.mrb[72].mxu0 }
 0x779   :  { %v5839_v13 = vpop.eup %5838  ;;  %v1984_v10 = vadd.f32 %v4927_v27, %v8791_v31  ;;  %v1975_v45 = vpop.f32.mrb[73].mxu0 }
 0x77a   :  { %v5841_v2 = vpop.eup %5840  ;;  %v1976_v0 = vadd.f32 %v1975_v45, %v8792_v28  ;;  %v4928_v33 = vpop.f32.mrb[74].mxu0  ;;  %4964 = vmatpush3.bf16.msra.mxu1 %v7740_v62  ;;  %v7756_v49 = vpack.c.bf16 %v5839_v13, %v5835_v6 }
 0x77b   :  { %v2004_v8 = vadd.f32 %v1984_v10, %v7104_v3  ;;  %v1987_v26 = vadd.f32 %v4928_v33, %v8793_v61  ;;  %v1978_v50 = vpop.f32.mrb[75].mxu0  ;;  %v7760_v55 = vpack.c.bf16 %v5841_v2, %v5837_v14 }
 0x77c   :  { %v2002_v63 = vadd.f32 %v1976_v0, %v7088_v56  ;;  %v1979_v11 = vadd.f32 %v1978_v50, %v8794_v40  ;;  %v8796_v50 = vld [vmem:[#allocation91_spill] sm:$0xff]  ;;  %v8798_v40 = vld [vmem:[#allocation104_spill] sm:$0xff] }
 0x77d   :  { %5850 = vtanh.f32 %v2004_v8  ;;  %v2005_v12 = vadd.f32 %v1987_v26, %v7114_v39  ;;  %4965 = vmatprep.subr.bf16.mxu1 %v7760_v55  ;;  %v8795_v26 = vld [vmem:[#allocation80_spill] sm:$0xff] }
 0x77e   :  { %5852 = vtanh.f32 %v2002_v63  ;;  %v2003_v6 = vadd.f32 %v1979_v11, %v8737_v58  ;;  %4966 = vmatpush3.bf16.msra.mxu1 %v7760_v55  ;;  %v8797_v63 = vld [vmem:[#allocation77_spill] sm:$0xff] }
 0x77f   :  { %v5843_v27 = vpop.eup %5842  ;;  %5854 = vtanh.f32 %v2005_v12  ;;  %4967 = vmatprep.subr.bf16.mxu1 %v7756_v49  ;;  %v7796_v11 = vld [vmem:[%s8560_s5] sm:$0xff]   ;;  %v8799_v12 = vld [vmem:[#allocation114_spill] sm:$0xff] }
 0x780   :  { %v5845_v14 = vpop.eup %5844  ;;  %5856 = vtanh.f32 %v2003_v6 }
 0x781   :  { %v5847_v13 = vpop.eup %5846 }
 0x782   :  { %v5849_v31 = vpop.eup %5848  ;;  %4968 = vmatpush3.bf16.msra.mxu1 %v7756_v49  ;;  %v7770_v10 = vpack.c.bf16 %v5847_v13, %v5843_v27 }
 0x783   :  { %v7772_v45 = vpack.c.bf16 %v5849_v31, %v5845_v14 }
 0x785   :  { %4969 = vmatprep.subr.bf16.mxu1 %v7772_v45 }
 0x786   :  { %4970 = vmatpush3.bf16.msra.mxu1 %v7772_v45 }
 0x787   :  { %v5851_v2 = vpop.eup %5850  ;;  %4971 = vmatprep.subr.bf16.mxu1 %v7770_v10 }
 0x788   :  { %v5853_v28 = vpop.eup %5852 }
 0x789   :  { %v5855_v0 = vpop.eup %5854 }
 0x78a   :  { %v5857_v33 = vpop.eup %5856  ;;  %4972 = vmatpush3.bf16.msra.mxu1 %v7770_v10  ;;  %v7778_v8 = vpack.c.bf16 %v5855_v0, %v5851_v2  ;;  %v8801_v2 = vld [vmem:[#allocation113_spill] sm:$0xff] }
 0x78b   :  { %v7780_v61 = vpack.c.bf16 %v5857_v33, %v5853_v28  ;;  %v8802_v33 = vld [vmem:[#allocation117_spill] sm:$0xff] }
 0x78d   :  { %4973 = vmatprep.subr.bf16.mxu1 %v7780_v61 }
 0x78e   :  { %4974 = vmatpush3.bf16.msra.mxu1 %v7780_v61 }
 0x78f   :  { %4975 = vmatprep.subr.bf16.mxu1 %v7778_v8 }
 0x792   :  { %4976 = vmatpush3.bf16.msra.mxu1 %v7778_v8 }
 0x795   :  { %4978 = vmatmul.mubr.bf16.vlgmr.msra.gmra.mrb[48].mxu1 %v7574_v22 }
 0x796   :  { %4981 = vmatprep.mubr.bf16.mxu1 %v7580_v34 }
 0x79d   :  { %4982 = vmatmul.mubr.bf16.gmra.mrb[52].mxu1 %v7586_v60  ;;  %v8800_v60 = vld [vmem:[#allocation112_spill] sm:$0xff] }
 0x79e   :  { %4985 = vmatprep.mubr.bf16.mxu1 %v8795_v26 }
 0x7a5   :  { %4986 = vmatmul.mubr.bf16.gmra.mrb[56].mxu1 %v8796_v50 }
 0x7a6   :  { %4989 = vmatprep.mubr.bf16.mxu1 %v8797_v63  ;;  %v8803_v63 = vld [vmem:[#allocation116_spill] sm:$0xff] }
 0x7ad   :  { %4990 = vmatmul.mubr.bf16.gmra.mrb[60].mxu1 %v8798_v40 }
 0x7ae   :  { %5061 = vmatprep.mubr.bf16.mxu1 %v7796_v11 }
 0x868   :  { %v4979_v22 = vpop.f32.mrb[48].mxu1 }
 0x869   :  { %v2226_v34 = vadd.f32 %v4979_v22, %v8799_v12  ;;  %v2161_v6 = vpop.f32.mrb[49].mxu1 }
 0x86a   :  { %v2224_v27 = vadd.f32 %v2161_v6, %v8800_v60  ;;  %v4980_v14 = vpop.f32.mrb[50].mxu1 }
 0x86b   :  { %5858 = vtanh.f32 %v2226_v34  ;;  %v2227_v13 = vadd.f32 %v4980_v14, %v8747_v29  ;;  %v2164_v31 = vpop.f32.mrb[51].mxu1 }
 0x86c   :  { %5860 = vtanh.f32 %v2224_v27  ;;  %v2225_v28 = vadd.f32 %v2164_v31, %v8801_v2 }
 0x86d   :  { %5862 = vtanh.f32 %v2227_v13 }
 0x86e   :  { %5864 = vtanh.f32 %v2225_v28 }
 0x870   :  { %v4983_v0 = vpop.f32.mrb[52].mxu1 }
 0x871   :  { %v2230_v26 = vadd.f32 %v4983_v0, %v8802_v33  ;;  %v2177_v50 = vpop.f32.mrb[53].mxu1 }
 0x872   :  { %v2228_v40 = vadd.f32 %v2177_v50, %v8803_v63  ;;  %v4984_v22 = vpop.f32.mrb[54].mxu1 }
 0x873   :  { %5866 = vtanh.f32 %v2230_v26  ;;  %v2231_v6 = vadd.f32 %v4984_v22, %v8778_v59  ;;  %v2180_v60 = vpop.f32.mrb[55].mxu1 }
 0x874   :  { %5868 = vtanh.f32 %v2228_v40  ;;  %v2229_v34 = vadd.f32 %v2180_v60, %v7195_v4 }
 0x875   :  { %v5859_v14 = vpop.eup %5858  ;;  %5870 = vtanh.f32 %v2231_v6 }
 0x876   :  { %v5861_v27 = vpop.eup %5860  ;;  %5872 = vtanh.f32 %v2229_v34 }
 0x877   :  { %v5863_v13 = vpop.eup %5862 }
 0x878   :  { %v5865_v31 = vpop.eup %5864  ;;  %v4987_v28 = vpop.f32.mrb[56].mxu1  ;;  %v2257_v2 = vpack.c.bf16 %v5863_v13, %v5859_v14 }
 0x879   :  { %v2234_v0 = vadd.f32 %v4987_v28, %v8752_v9  ;;  %v2193_v33 = vpop.f32.mrb[57].mxu1  ;;  %v2256_v50 = vpack.c.bf16 %v5865_v31, %v5861_v27 }
 0x87a   :  { %v2232_v26 = vadd.f32 %v2193_v33, %v8753_v16  ;;  %v4988_v63 = vpop.f32.mrb[58].mxu1 }
 0x87b   :  { %5874 = vtanh.f32 %v2234_v0  ;;  %v2235_v40 = vadd.f32 %v4988_v63, %v8754_v5  ;;  %v2196_v22 = vpop.f32.mrb[59].mxu1  ;;  %4994 = vmatpush3.bf16.msra.mxu0 %v2256_v50  ;;  %5045 = vmatprep.subr.bf16.mxu1 %v2256_v50 }
 0x87c   :  { %5876 = vtanh.f32 %v2232_v26  ;;  %v2233_v60 = vadd.f32 %v2196_v22, %v8755_v42  ;;  %5046 = vmatpush3.bf16.msra.mxu1 %v2256_v50  ;;  %4995 = vmatprep.subr.bf16.mxu0 %v8733_v36 }
 0x87d   :  { %v5867_v6 = vpop.eup %5866  ;;  %5878 = vtanh.f32 %v2235_v40  ;;  %5047 = vmatprep.subr.bf16.mxu1 %v2257_v2 }
 0x87e   :  { %v5869_v34 = vpop.eup %5868  ;;  %5880 = vtanh.f32 %v2233_v60 }
 0x87f   :  { %v5871_v14 = vpop.eup %5870  ;;  %4996 = vmatpush3.bf16.msra.mxu0 %v2257_v2 }
 0x880   :  { %v5873_v33 = vpop.eup %5872  ;;  %v4991_v27 = vpop.f32.mrb[60].mxu1  ;;  %5048 = vmatpush3.bf16.msra.mxu1 %v2257_v2  ;;  %4997 = vmatprep.subr.bf16.mxu0 %v8733_v36  ;;  %v2259_v63 = vpack.c.bf16 %v5871_v14, %v5867_v6 }
 0x881   :  { %v2238_v13 = vadd.f32 %v4991_v27, %v7226_v46  ;;  %v2209_v31 = vpop.f32.mrb[61].mxu1  ;;  %v2258_v28 = vpack.c.bf16 %v5873_v33, %v5869_v34 }
 0x882   :  { %v2236_v0 = vadd.f32 %v2209_v31, %v7218_v1  ;;  %v4992_v50 = vpop.f32.mrb[62].mxu1 }
 0x883   :  { %5882 = vtanh.f32 %v2238_v13  ;;  %v2239_v26 = vadd.f32 %v4992_v50, %v7230_v54  ;;  %v2212_v40 = vpop.f32.mrb[63].mxu1  ;;  %4998 = vmatpush3.bf16.msra.mxu0 %v2258_v28  ;;  %5049 = vmatprep.subr.bf16.mxu1 %v2258_v28  ;;  %v7830_v50 = vld [vmem:[%s8560_s5 + $0x8] sm:$0xff]  }
 0x884   :  { %5884 = vtanh.f32 %v2236_v0  ;;  %v2237_v22 = vadd.f32 %v2212_v40, %v7222_v23  ;;  %5050 = vmatpush3.bf16.msra.mxu1 %v2258_v28  ;;  %4999 = vmatprep.subr.bf16.mxu0 %v8733_v36 }
 0x885   :  { %v5875_v2 = vpop.eup %5874  ;;  %5886 = vtanh.f32 %v2239_v26  ;;  %5051 = vmatprep.subr.bf16.mxu1 %v2259_v63  ;;  %v7836_v26 = vld [vmem:[%s8560_s5 + $0x10] sm:$0xff]  }
 0x886   :  { %v5877_v60 = vpop.eup %5876  ;;  %5888 = vtanh.f32 %v2237_v22 }
 0x887   :  { %v5879_v6 = vpop.eup %5878  ;;  %5000 = vmatpush3.bf16.msra.mxu0 %v2259_v63 }
 0x888   :  { %v5881_v34 = vpop.eup %5880  ;;  %5052 = vmatpush3.bf16.msra.mxu1 %v2259_v63  ;;  %5001 = vmatprep.subr.bf16.mxu0 %v8733_v36  ;;  %v2261_v14 = vpack.c.bf16 %v5879_v6, %v5875_v2  ;;  %v8806_v2 = vld [vmem:[#allocation21_spill] sm:$0xff] }
 0x889   :  { %v2260_v33 = vpack.c.bf16 %v5881_v34, %v5877_v60 }
 0x88b   :  { %5002 = vmatpush3.bf16.msra.mxu0 %v2260_v33  ;;  %5053 = vmatprep.subr.bf16.mxu1 %v2260_v33 }
 0x88c   :  { %5054 = vmatpush3.bf16.msra.mxu1 %v2260_v33  ;;  %5003 = vmatprep.subr.bf16.mxu0 %v8733_v36 }
 0x88d   :  { %v5883_v27 = vpop.eup %5882  ;;  %5055 = vmatprep.subr.bf16.mxu1 %v2261_v14 }
 0x88e   :  { %v5885_v13 = vpop.eup %5884 }
 0x88f   :  { %v5887_v31 = vpop.eup %5886  ;;  %5004 = vmatpush3.bf16.msra.mxu0 %v2261_v14 }
 0x890   :  { %v5889_v28 = vpop.eup %5888  ;;  %5056 = vmatpush3.bf16.msra.mxu1 %v2261_v14  ;;  %5005 = vmatprep.subr.bf16.mxu0 %v8733_v36  ;;  %v2263_v0 = vpack.c.bf16 %v5887_v31, %v5883_v27  ;;  %v8807_v14 = vld [vmem:[#allocation22_spill] sm:$0xff] }
 0x891   :  { %v2262_v63 = vpack.c.bf16 %v5889_v28, %v5885_v13  ;;  %v8808_v28 = vld [vmem:[#allocation45_spill] sm:$0xff] }
 0x893   :  { %5006 = vmatpush3.bf16.msra.mxu0 %v2262_v63  ;;  %5057 = vmatprep.subr.bf16.mxu1 %v2262_v63 }
 0x894   :  { %5058 = vmatpush3.bf16.msra.mxu1 %v2262_v63  ;;  %5007 = vmatprep.subr.bf16.mxu0 %v8733_v36 }
 0x895   :  { %5059 = vmatprep.subr.bf16.mxu1 %v2263_v0 }
 0x897   :  { %5008 = vmatpush3.bf16.msra.mxu0 %v2263_v0 }
 0x898   :  { %5013 = vmatprep.subr.bf16.mxu0 %v7744_v44  ;;  %5060 = vmatpush3.bf16.msra.mxu1 %v2263_v0 }
 0x89a   :  { %5010 = vmatmul.mubr.bf16.vlgmr.msra.gmra.mrb[76].mxu0 %v7641_v17  ;;  %v7846_v17 = vld [vmem:[%s8560_s5 + $0x18] sm:$0xff]  }
 0x89b   :  { %5014 = vmatpush3.bf16.msra.mxu0 %v7744_v44  ;;  %5029 = vmatprep.mubr.bf16.mxu0 %v7648_v15  ;;  %v7852_v15 = vld [vmem:[%s8560_s5 + $0x20] sm:$0xff]   ;;  %v7868_v44 = vld [vmem:[%s8560_s5 + $0x30] sm:$0xff]  }
 0x89c   :  { %5015 = vmatprep.subr.bf16.mxu0 %v7740_v62  ;;  %5062 = vmatmul.mubr.bf16.vlgmr.msra.gmra.mrb[64].mxu1 %v7830_v50 }
 0x89d   :  { %5065 = vmatprep.mubr.bf16.mxu1 %v7836_v26 }
 0x89f   :  { %5016 = vmatpush3.bf16.msra.mxu0 %v7740_v62  ;;  %v7862_v62 = vld [vmem:[%s8560_s5 + $0x28] sm:$0xff]  }
 0x8a0   :  { %5017 = vmatprep.subr.bf16.mxu0 %v7760_v55 }
 0x8a3   :  { %5018 = vmatpush3.bf16.msra.mxu0 %v7760_v55  ;;  %v7884_v55 = vld [vmem:[%s8562_s4] sm:$0xff]  }
 0x8a4   :  { %5019 = vmatprep.subr.bf16.mxu0 %v7756_v49  ;;  %5066 = vmatmul.mubr.bf16.gmra.mrb[68].mxu1 %v7846_v17 }
 0x8a5   :  { %5069 = vmatprep.mubr.bf16.mxu1 %v7852_v15 }
 0x8a7   :  { %5020 = vmatpush3.bf16.msra.mxu0 %v7756_v49  ;;  %v7878_v49 = vld [vmem:[%s8560_s5 + $0x38] sm:$0xff]  }
 0x8a8   :  { %5021 = vmatprep.subr.bf16.mxu0 %v7772_v45 }
 0x8ab   :  { %5022 = vmatpush3.bf16.msra.mxu0 %v7772_v45 }
 0x8ac   :  { %5023 = vmatprep.subr.bf16.mxu0 %v7770_v10  ;;  %5070 = vmatmul.mubr.bf16.gmra.mrb[72].mxu1 %v7862_v62 }
 0x8ad   :  { %5073 = vmatprep.mubr.bf16.mxu1 %v7868_v44 }
 0x8af   :  { %5024 = vmatpush3.bf16.msra.mxu0 %v7770_v10 }
 0x8b0   :  { %5025 = vmatprep.subr.bf16.mxu0 %v7780_v61 }
 0x8b3   :  { %5026 = vmatpush3.bf16.msra.mxu0 %v7780_v61 }
 0x8b4   :  { %5027 = vmatprep.subr.bf16.mxu0 %v7778_v8  ;;  %5074 = vmatmul.mubr.bf16.gmra.mrb[76].mxu1 %v7878_v49 }
 0x8b5   :  { %5093 = vmatprep.mubr.bf16.mxu1 %v7884_v55 }
 0x8b7   :  { %5028 = vmatpush3.bf16.msra.mxu0 %v7778_v8 }
 0x8b8   :  { %5109 = vmatprep.subr.bf16.mxu0 %v8733_v36 }
 0x8ba   :  { %5030 = vmatmul.mubr.bf16.vlgmr.msra.gmra.mrb[80].mxu0 %v7677_v37 }
 0x8bb   :  { %5033 = vmatprep.mubr.bf16.mxu0 %v7683_v20 }
 0x8c2   :  { %5034 = vmatmul.mubr.bf16.gmra.mrb[84].mxu0 %v7689_v18 }
 0x8c3   :  { %5037 = vmatprep.mubr.bf16.mxu0 %v7695_v30  ;;  %v8804_v30 = vld [vmem:[#allocation9_spill] sm:$0xff] }
 0x8ca   :  { %5038 = vmatmul.mubr.bf16.gmra.mrb[88].mxu0 %v7701_v47 }
 0x8cb   :  { %5041 = vmatprep.mubr.bf16.mxu0 %v7707_v24  ;;  %v8805_v24 = vld [vmem:[#allocation10_spill] sm:$0xff] }
 0x8d2   :  { %5042 = vmatmul.mubr.bf16.gmra.mrb[92].mxu0 %v7713_v7 }
 0x8d3   :  { %5125 = vmatprep.mubr.msk.bf16.mxu0 %vm6231_vm0, %v8733_v36 }
 0x96d   :  { %v2298_v10 = vpop.f32.mrb[76].mxu0 }
 0x96e   :  { %v2304_v45 = vadd.f32 %v2298_v10, %v7321_v51  ;;  %v5011_v8 = vpop.f32.mrb[77].mxu0  ;;  %v8809_v10 = vld [vmem:[#allocation33_spill] sm:$0xff] }
 0x96f   :  { %v2301_v37 = vpop.f32.mrb[78].mxu0 }
 0x970   :  { %4122 = vst [vmem:[%s8564_s9 + $0x3] sm:$0x1] %v2304_v45  ;;  %v5012_v20 = vpop.f32.mrb[79].mxu0 }
 0x971   :  { %v8810_v20 = vld [vmem:[#allocation46_spill] sm:$0xff] }
 0x98d   :  { %v5031_v18 = vpop.f32.mrb[80].mxu0 }
 0x98e   :  { %v2373_v47 = vadd.f32 %v5031_v18, %v8804_v30  ;;  %v2364_v61 = vpop.f32.mrb[81].mxu0 }
 0x98f   :  { %v2365_v40 = vadd.f32 %v2364_v61, %v8805_v24  ;;  %v5032_v7 = vpop.f32.mrb[82].mxu0  ;;  %v8811_v61 = vld [vmem:[#allocation34_spill] sm:$0xff] }
 0x990   :  { %v2429_v22 = vadd.f32 %v2373_v47, %v6728_v25  ;;  %v2376_v60 = vadd.f32 %v5032_v7, %v8806_v2  ;;  %v2367_v6 = vpop.f32.mrb[83].mxu0 }
 0x991   :  { %v2427_v34 = vadd.f32 %v2365_v40, %v6658_v43  ;;  %v2368_v33 = vadd.f32 %v2367_v6, %v8807_v14 }
 0x992   :  { %5890 = vtanh.f32 %v2429_v22  ;;  %v2430_v27 = vadd.f32 %v2376_v60, %v6710_v57 }
 0x993   :  { %5892 = vtanh.f32 %v2427_v34  ;;  %v2428_v13 = vadd.f32 %v2368_v33, %v6640_v38  ;;  %v8812_v34 = vld [vmem:[#allocation69_spill] sm:$0xff] }
 0x994   :  { %5894 = vtanh.f32 %v2430_v27 }
 0x995   :  { %5896 = vtanh.f32 %v2428_v13  ;;  %v5035_v31 = vpop.f32.mrb[84].mxu0  ;;  %v8813_v13 = vld [vmem:[#allocation57_spill] sm:$0xff] }
 0x996   :  { %v2389_v0 = vadd.f32 %v5035_v31, %v8808_v28  ;;  %v2380_v63 = vpop.f32.mrb[85].mxu0 }
 0x997   :  { %v2381_v45 = vadd.f32 %v2380_v63, %v8809_v10  ;;  %v5036_v8 = vpop.f32.mrb[86].mxu0  ;;  %v8814_v10 = vld [vmem:[#allocation70_spill] sm:$0xff] }
 0x998   :  { %v2433_v37 = vadd.f32 %v2389_v0, %v6856_v52  ;;  %v2392_v18 = vadd.f32 %v5036_v8, %v8810_v20  ;;  %v2383_v30 = vpop.f32.mrb[87].mxu0 }
 0x999   :  { %v2431_v47 = vadd.f32 %v2381_v45, %v6792_v53  ;;  %v2384_v24 = vadd.f32 %v2383_v30, %v8811_v61 }
 0x99a   :  { %5898 = vtanh.f32 %v2433_v37  ;;  %v2434_v40 = vadd.f32 %v2392_v18, %v6838_v41  ;;  %v8815_v18 = vld [vmem:[#allocation58_spill] sm:$0xff] }
 0x99b   :  { %5900 = vtanh.f32 %v2431_v47  ;;  %v2432_v7 = vadd.f32 %v2384_v24, %v6774_v21 }
 0x99c   :  { %v5891_v22 = vpop.eup %5890  ;;  %5902 = vtanh.f32 %v2434_v40 }
 0x99d   :  { %v5893_v2 = vpop.eup %5892  ;;  %5904 = vtanh.f32 %v2432_v7  ;;  %v5039_v60 = vpop.f32.mrb[88].mxu0 }
 0x99e   :  { %v5895_v6 = vpop.eup %5894  ;;  %v2405_v14 = vadd.f32 %v5039_v60, %v8812_v34  ;;  %v2396_v33 = vpop.f32.mrb[89].mxu0 }
 0x99f   :  { %v5897_v27 = vpop.eup %5896  ;;  %v2397_v31 = vadd.f32 %v2396_v33, %v8813_v13  ;;  %v5040_v28 = vpop.f32.mrb[90].mxu0  ;;  %v7920_v0 = vpack.c.bf16 %v5895_v6, %v5891_v22 }
 0x9a0   :  { %v2437_v63 = vadd.f32 %v2405_v14, %v6984_v32  ;;  %v2408_v45 = vadd.f32 %v5040_v28, %v8814_v10  ;;  %v2399_v8 = vpop.f32.mrb[91].mxu0  ;;  %v7924_v37 = vpack.c.bf16 %v5897_v27, %v5893_v2  ;;  %v8816_v2 = vld [vmem:[#allocation96_spill] sm:$0xff]  ;;  %v8817_v14 = vld [vmem:[#allocation83_spill] sm:$0xff]  ;;  %v8818_v28 = vld [vmem:[#allocation97_spill] sm:$0xff] }
 0x9a1   :  { %v2435_v20 = vadd.f32 %v2397_v31, %v6920_v35  ;;  %v2400_v30 = vadd.f32 %v2399_v8, %v8815_v18 }
 0x9a2   :  { %5906 = vtanh.f32 %v2437_v63  ;;  %v2438_v47 = vadd.f32 %v2408_v45, %v6966_v48  ;;  %5077 = vmatprep.subr.bf16.mxu1 %v7924_v37 }
 0x9a3   :  { %5908 = vtanh.f32 %v2435_v20  ;;  %v2436_v61 = vadd.f32 %v2400_v30, %v6902_v19  ;;  %5078 = vmatpush3.bf16.msra.mxu1 %v7924_v37  ;;  %v8819_v20 = vld [vmem:[#allocation84_spill] sm:$0xff] }
 0x9a4   :  { %v5899_v24 = vpop.eup %5898  ;;  %5910 = vtanh.f32 %v2438_v47  ;;  %5079 = vmatprep.subr.bf16.mxu1 %v7920_v0 }
 0x9a5   :  { %v5901_v40 = vpop.eup %5900  ;;  %5912 = vtanh.f32 %v2436_v61  ;;  %v5043_v7 = vpop.f32.mrb[92].mxu0 }
 0x9a6   :  { %v5903_v22 = vpop.eup %5902  ;;  %v2421_v60 = vadd.f32 %v5043_v7, %v8816_v2  ;;  %v2412_v6 = vpop.f32.mrb[93].mxu0 }
 0x9a7   :  { %v5905_v34 = vpop.eup %5904  ;;  %v2413_v33 = vadd.f32 %v2412_v6, %v8817_v14  ;;  %v5044_v27 = vpop.f32.mrb[94].mxu0  ;;  %5080 = vmatpush3.bf16.msra.mxu1 %v7920_v0  ;;  %v7936_v13 = vpack.c.bf16 %v5903_v22, %v5899_v24 }
 0x9a8   :  { %v2441_v31 = vadd.f32 %v2421_v60, %v7104_v3  ;;  %v2424_v63 = vadd.f32 %v5044_v27, %v8818_v28  ;;  %v2415_v10 = vpop.f32.mrb[95].mxu0  ;;  %v7940_v45 = vpack.c.bf16 %v5905_v34, %v5901_v40  ;;  %v7975_v28 = vld [vmem:[%s8562_s4 + $0x10] sm:$0xff]  }
 0x9a9   :  { %v2439_v8 = vadd.f32 %v2413_v33, %v7088_v56  ;;  %v2416_v18 = vadd.f32 %v2415_v10, %v8819_v20  ;;  %v7987_v10 = vld [vmem:[%s8562_s4 + $0x20] sm:$0xff]   ;;  %v7999_v20 = vld [vmem:[%s8562_s4 + $0x30] sm:$0xff]  }
 0x9aa   :  { %5914 = vtanh.f32 %v2441_v31  ;;  %v2442_v30 = vadd.f32 %v2424_v63, %v7114_v39  ;;  %5081 = vmatprep.subr.bf16.mxu1 %v7940_v45  ;;  %v7969_v31 = vld [vmem:[%s8562_s4 + $0x8] sm:$0xff]   ;;  %v7981_v63 = vld [vmem:[%s8562_s4 + $0x18] sm:$0xff]   ;;  %8821 = vst [vmem:[#allocation106_spill] sm:$0xff] %v7987_v10  ;;  %8823 = vst [vmem:[#allocation108_spill] sm:$0xff] %v7999_v20 }
 0x9ab   :  { %5916 = vtanh.f32 %v2439_v8  ;;  %v2440_v47 = vadd.f32 %v2416_v18, %v8737_v58  ;;  %5082 = vmatpush3.bf16.msra.mxu1 %v7940_v45  ;;  %8820 = vst [vmem:[#allocation105_spill] sm:$0xff] %v7981_v63  ;;  %v7993_v8 = vld [vmem:[%s8562_s4 + $0x28] sm:$0xff]   ;;  %v8005_v18 = vld [vmem:[%s8562_s4 + $0x38] sm:$0xff]  }
 0x9ac   :  { %v5907_v61 = vpop.eup %5906  ;;  %5918 = vtanh.f32 %v2442_v30  ;;  %5083 = vmatprep.subr.bf16.mxu1 %v7936_v13  ;;  %8822 = vst [vmem:[#allocation107_spill] sm:$0xff] %v7993_v8  ;;  %8824 = vst [vmem:[#allocation109_spill] sm:$0xff] %v8005_v18 }
 0x9ad   :  { %v5909_v24 = vpop.eup %5908  ;;  %5920 = vtanh.f32 %v2440_v47 }
 0x9ae   :  { %v5911_v40 = vpop.eup %5910 }
 0x9af   :  { %v5913_v7 = vpop.eup %5912  ;;  %5084 = vmatpush3.bf16.msra.mxu1 %v7936_v13  ;;  %v7950_v22 = vpack.c.bf16 %v5911_v40, %v5907_v61 }
 0x9b0   :  { %v7952_v2 = vpack.c.bf16 %v5913_v7, %v5909_v24  ;;  %v8825_v24 = vld [vmem:[#allocation112_spill] sm:$0xff] }
 0x9b2   :  { %5085 = vmatprep.subr.bf16.mxu1 %v7952_v2 }
 0x9b3   :  { %5086 = vmatpush3.bf16.msra.mxu1 %v7952_v2 }
 0x9b4   :  { %v5915_v60 = vpop.eup %5914  ;;  %5087 = vmatprep.subr.bf16.mxu1 %v7950_v22 }
 0x9b5   :  { %v5917_v6 = vpop.eup %5916 }
 0x9b6   :  { %v5919_v34 = vpop.eup %5918 }
 0x9b7   :  { %v5921_v14 = vpop.eup %5920  ;;  %5088 = vmatpush3.bf16.msra.mxu1 %v7950_v22  ;;  %v7958_v33 = vpack.c.bf16 %v5919_v34, %v5915_v60  ;;  %v8826_v34 = vld [vmem:[#allocation113_spill] sm:$0xff] }
 0x9b8   :  { %v7960_v27 = vpack.c.bf16 %v5921_v14, %v5917_v6 }
 0x9ba   :  { %5089 = vmatprep.subr.bf16.mxu1 %v7960_v27 }
 0x9bb   :  { %5090 = vmatpush3.bf16.msra.mxu1 %v7960_v27 }
 0x9bc   :  { %5091 = vmatprep.subr.bf16.mxu1 %v7958_v33 }
 0x9bf   :  { %5092 = vmatpush3.bf16.msra.mxu1 %v7958_v33 }
 0x9c2   :  { %5094 = vmatmul.mubr.bf16.vlgmr.msra.gmra.mrb[64].mxu1 %v7969_v31 }
 0x9c3   :  { %5097 = vmatprep.mubr.bf16.mxu1 %v7975_v28 }
 0x9ca   :  { %5098 = vmatmul.mubr.bf16.gmra.mrb[68].mxu1 %v7981_v63 }
 0x9cb   :  { %5101 = vmatprep.mubr.bf16.mxu1 %v7987_v10  ;;  %v8828_v10 = vld [vmem:[#allocation116_spill] sm:$0xff] }
 0x9d2   :  { %5102 = vmatmul.mubr.bf16.gmra.mrb[72].mxu1 %v7993_v8 }
 0x9d3   :  { %5105 = vmatprep.mubr.bf16.mxu1 %v7999_v20 }
 0x9da   :  { %5106 = vmatmul.mubr.bf16.gmra.mrb[76].mxu1 %v8005_v18  ;;  %v8827_v18 = vld [vmem:[#allocation117_spill] sm:$0xff] }
 0x9db   :  { %5177 = vmatprep.mubr.bf16.mxu1 %v7796_v11 }
 0xa95   :  { %v5095_v30 = vpop.f32.mrb[64].mxu1 }
 0xa96   :  { %v2663_v47 = vadd.f32 %v5095_v30, %v8799_v12  ;;  %v2598_v61 = vpop.f32.mrb[65].mxu1 }
 0xa97   :  { %v2661_v40 = vadd.f32 %v2598_v61, %v8825_v24  ;;  %v5096_v7 = vpop.f32.mrb[66].mxu1 }
 0xa98   :  { %5922 = vtanh.f32 %v2663_v47  ;;  %v2664_v60 = vadd.f32 %v5096_v7, %v8747_v29  ;;  %v2601_v6 = vpop.f32.mrb[67].mxu1 }
 0xa99   :  { %5924 = vtanh.f32 %v2661_v40  ;;  %v2662_v14 = vadd.f32 %v2601_v6, %v8826_v34 }
 0xa9a   :  { %5926 = vtanh.f32 %v2664_v60 }
 0xa9b   :  { %5928 = vtanh.f32 %v2662_v14 }
 0xa9d   :  { %v5099_v20 = vpop.f32.mrb[68].mxu1 }
 0xa9e   :  { %v2667_v8 = vadd.f32 %v5099_v20, %v8827_v18  ;;  %v2614_v11 = vpop.f32.mrb[69].mxu1 }
 0xa9f   :  { %v2665_v63 = vadd.f32 %v2614_v11, %v8828_v10  ;;  %v5100_v30 = vpop.f32.mrb[70].mxu1 }
 0xaa0   :  { %5930 = vtanh.f32 %v2667_v8  ;;  %v2668_v61 = vadd.f32 %v5100_v30, %v8778_v59  ;;  %v2617_v24 = vpop.f32.mrb[71].mxu1 }
 0xaa1   :  { %5932 = vtanh.f32 %v2665_v63  ;;  %v2666_v47 = vadd.f32 %v2617_v24, %v7195_v4 }
 0xaa2   :  { %v5923_v7 = vpop.eup %5922  ;;  %5934 = vtanh.f32 %v2668_v61 }
 0xaa3   :  { %v5925_v40 = vpop.eup %5924  ;;  %5936 = vtanh.f32 %v2666_v47 }
 0xaa4   :  { %v5927_v60 = vpop.eup %5926 }
 0xaa5   :  { %v5929_v6 = vpop.eup %5928  ;;  %v5103_v14 = vpop.f32.mrb[72].mxu1  ;;  %v2694_v34 = vpack.c.bf16 %v5927_v60, %v5923_v7 }
 0xaa6   :  { %v2671_v20 = vadd.f32 %v5103_v14, %v8752_v9  ;;  %v2630_v18 = vpop.f32.mrb[73].mxu1  ;;  %v2693_v11 = vpack.c.bf16 %v5929_v6, %v5925_v40 }
 0xaa7   :  { %v2669_v8 = vadd.f32 %v2630_v18, %v8753_v16  ;;  %v5104_v10 = vpop.f32.mrb[74].mxu1 }
 0xaa8   :  { %5938 = vtanh.f32 %v2671_v20  ;;  %v2672_v63 = vadd.f32 %v5104_v10, %v8754_v5  ;;  %v2633_v30 = vpop.f32.mrb[75].mxu1  ;;  %5110 = vmatpush3.bf16.msra.mxu0 %v2693_v11  ;;  %5161 = vmatprep.subr.bf16.mxu1 %v2693_v11 }
 0xaa9   :  { %5940 = vtanh.f32 %v2669_v8  ;;  %v2670_v24 = vadd.f32 %v2633_v30, %v8755_v42  ;;  %5162 = vmatpush3.bf16.msra.mxu1 %v2693_v11  ;;  %5111 = vmatprep.subr.bf16.mxu0 %v8733_v36 }
 0xaaa   :  { %v5931_v61 = vpop.eup %5930  ;;  %5942 = vtanh.f32 %v2672_v63  ;;  %5163 = vmatprep.subr.bf16.mxu1 %v2694_v34 }
 0xaab   :  { %v5933_v47 = vpop.eup %5932  ;;  %5944 = vtanh.f32 %v2670_v24 }
 0xaac   :  { %v5935_v7 = vpop.eup %5934  ;;  %5112 = vmatpush3.bf16.msra.mxu0 %v2694_v34 }
 0xaad   :  { %v5937_v18 = vpop.eup %5936  ;;  %v5107_v40 = vpop.f32.mrb[76].mxu1  ;;  %5164 = vmatpush3.bf16.msra.mxu1 %v2694_v34  ;;  %5113 = vmatprep.subr.bf16.mxu0 %v8733_v36  ;;  %v2696_v10 = vpack.c.bf16 %v5935_v7, %v5931_v61 }
 0xaae   :  { %v2675_v60 = vadd.f32 %v5107_v40, %v7226_v46  ;;  %v2646_v6 = vpop.f32.mrb[77].mxu1  ;;  %v2695_v14 = vpack.c.bf16 %v5937_v18, %v5933_v47 }
 0xaaf   :  { %v2673_v20 = vadd.f32 %v2646_v6, %v7218_v1  ;;  %v5108_v11 = vpop.f32.mrb[78].mxu1 }
 0xab0   :  { %5946 = vtanh.f32 %v2675_v60  ;;  %v2676_v8 = vadd.f32 %v5108_v11, %v7230_v54  ;;  %v2649_v63 = vpop.f32.mrb[79].mxu1  ;;  %5114 = vmatpush3.bf16.msra.mxu0 %v2695_v14  ;;  %5165 = vmatprep.subr.bf16.mxu1 %v2695_v14  ;;  %v8036_v11 = vld [vmem:[%s8563_s7] sm:$0xf] }
 0xab1   :  { %5948 = vtanh.f32 %v2673_v20  ;;  %v2674_v30 = vadd.f32 %v2649_v63, %v7222_v23  ;;  %5166 = vmatpush3.bf16.msra.mxu1 %v2695_v14  ;;  %5115 = vmatprep.subr.bf16.mxu0 %v8733_v36  ;;  %v8830_v63 = vld [vmem:[#allocation12_spill] sm:$0xff] }
 0xab2   :  { %v5939_v34 = vpop.eup %5938  ;;  %5950 = vtanh.f32 %v2676_v8  ;;  %5167 = vmatprep.subr.bf16.mxu1 %v2696_v10  ;;  %v8043_v8 = vld [vmem:[%s8556_s2] sm:$0xff]  }
 0xab3   :  { %v5941_v24 = vpop.eup %5940  ;;  %5952 = vtanh.f32 %v2674_v30 }
 0xab4   :  { %v5943_v61 = vpop.eup %5942  ;;  %5116 = vmatpush3.bf16.msra.mxu0 %v2696_v10 }
 0xab5   :  { %v5945_v47 = vpop.eup %5944  ;;  %5168 = vmatpush3.bf16.msra.mxu1 %v2696_v10  ;;  %5117 = vmatprep.subr.bf16.mxu0 %v8733_v36  ;;  %v2698_v7 = vpack.c.bf16 %v5943_v61, %v5939_v34  ;;  %v8831_v61 = vld [vmem:[#allocation23_spill] sm:$0xff] }
 0xab6   :  { %v2697_v18 = vpack.c.bf16 %v5945_v47, %v5941_v24 }
 0xab8   :  { %5118 = vmatpush3.bf16.msra.mxu0 %v2697_v18  ;;  %5169 = vmatprep.subr.bf16.mxu1 %v2697_v18 }
 0xab9   :  { %5170 = vmatpush3.bf16.msra.mxu1 %v2697_v18  ;;  %5119 = vmatprep.subr.bf16.mxu0 %v8733_v36 }
 0xaba   :  { %v5947_v40 = vpop.eup %5946  ;;  %5171 = vmatprep.subr.bf16.mxu1 %v2698_v7 }
 0xabb   :  { %v5949_v60 = vpop.eup %5948 }
 0xabc   :  { %v5951_v6 = vpop.eup %5950  ;;  %5120 = vmatpush3.bf16.msra.mxu0 %v2698_v7 }
 0xabd   :  { %v5953_v14 = vpop.eup %5952  ;;  %5172 = vmatpush3.bf16.msra.mxu1 %v2698_v7  ;;  %5121 = vmatprep.subr.bf16.mxu0 %v8733_v36  ;;  %v2700_v20 = vpack.c.bf16 %v5951_v6, %v5947_v40  ;;  %v8832_v40 = vld [vmem:[#allocation24_spill] sm:$0xff] }
 0xabe   :  { %v2699_v10 = vpack.c.bf16 %v5953_v14, %v5949_v60 }
 0xac0   :  { %5122 = vmatpush3.bf16.msra.mxu0 %v2699_v10  ;;  %5173 = vmatprep.subr.bf16.mxu1 %v2699_v10 }
 0xac1   :  { %5174 = vmatpush3.bf16.msra.mxu1 %v2699_v10  ;;  %5123 = vmatprep.subr.bf16.mxu0 %v8733_v36  ;;  %v8833_v10 = vld [vmem:[#allocation47_spill] sm:$0xff] }
 0xac2   :  { %5175 = vmatprep.subr.bf16.mxu1 %v2700_v20 }
 0xac4   :  { %5124 = vmatpush3.bf16.msra.mxu0 %v2700_v20 }
 0xac5   :  { %5129 = vmatprep.subr.bf16.mxu0 %v7924_v37  ;;  %5176 = vmatpush3.bf16.msra.mxu1 %v2700_v20 }
 0xac7   :  { %5126 = vmatmul.mubr.bf16.vlgmr.msra.gmra.mrb[96].mxu0 %v8036_v11 }
 0xac8   :  { %5130 = vmatpush3.bf16.msra.mxu0 %v7924_v37  ;;  %5145 = vmatprep.mubr.bf16.mxu0 %v8043_v8 }
 0xac9   :  { %5131 = vmatprep.subr.bf16.mxu0 %v7920_v0  ;;  %5178 = vmatmul.mubr.bf16.vlgmr.msra.gmra.mrb[80].mxu1 %v7830_v50  ;;  %v8072_v50 = vld [vmem:[%s8556_s2 + $0x8] sm:$0xff]  }
 0xaca   :  { %5181 = vmatprep.mubr.bf16.mxu1 %v7836_v26  ;;  %v8078_v26 = vld [vmem:[%s8556_s2 + $0x10] sm:$0xff]  }
 0xacc   :  { %5132 = vmatpush3.bf16.msra.mxu0 %v7920_v0 }
 0xacd   :  { %5133 = vmatprep.subr.bf16.mxu0 %v7940_v45 }
 0xad0   :  { %5134 = vmatpush3.bf16.msra.mxu0 %v7940_v45 }
 0xad1   :  { %5135 = vmatprep.subr.bf16.mxu0 %v7936_v13  ;;  %5182 = vmatmul.mubr.bf16.gmra.mrb[84].mxu1 %v7846_v17  ;;  %v8084_v17 = vld [vmem:[%s8556_s2 + $0x18] sm:$0xff]  }
 0xad2   :  { %5185 = vmatprep.mubr.bf16.mxu1 %v7852_v15  ;;  %v8090_v15 = vld [vmem:[%s8556_s2 + $0x20] sm:$0xff]  }
 0xad4   :  { %5136 = vmatpush3.bf16.msra.mxu0 %v7936_v13 }
 0xad5   :  { %5137 = vmatprep.subr.bf16.mxu0 %v7952_v2 }
 0xad8   :  { %5138 = vmatpush3.bf16.msra.mxu0 %v7952_v2  ;;  %v8829_v2 = vld [vmem:[#allocation11_spill] sm:$0xff] }
 0xad9   :  { %5139 = vmatprep.subr.bf16.mxu0 %v7950_v22  ;;  %5186 = vmatmul.mubr.bf16.gmra.mrb[88].mxu1 %v7862_v62  ;;  %v8096_v62 = vld [vmem:[%s8556_s2 + $0x28] sm:$0xff]  }
 0xada   :  { %5189 = vmatprep.mubr.bf16.mxu1 %v7868_v44  ;;  %v8102_v44 = vld [vmem:[%s8556_s2 + $0x30] sm:$0xff]  }
 0xadc   :  { %5140 = vmatpush3.bf16.msra.mxu0 %v7950_v22 }
 0xadd   :  { %5141 = vmatprep.subr.bf16.mxu0 %v7960_v27 }
 0xae0   :  { %5142 = vmatpush3.bf16.msra.mxu0 %v7960_v27 }
 0xae1   :  { %5143 = vmatprep.subr.bf16.mxu0 %v7958_v33  ;;  %5190 = vmatmul.mubr.bf16.gmra.mrb[92].mxu1 %v7878_v49  ;;  %v8108_v49 = vld [vmem:[%s8556_s2 + $0x38] sm:$0xff]  }
 0xae2   :  { %5209 = vmatprep.mubr.bf16.mxu1 %v7884_v55 }
 0xae4   :  { %5144 = vmatpush3.bf16.msra.mxu0 %v7958_v33 }
 0xae5   :  { %5225 = vmatprep.subr.bf16.mxu0 %v8733_v36 }
 0xae7   :  { %5146 = vmatmul.mubr.bf16.vlgmr.msra.gmra.mrb[100].mxu0 %v8072_v50 }
 0xae8   :  { %5149 = vmatprep.mubr.bf16.mxu0 %v8078_v26 }
 0xaef   :  { %5150 = vmatmul.mubr.bf16.gmra.mrb[104].mxu0 %v8084_v17 }
 0xaf0   :  { %5153 = vmatprep.mubr.bf16.mxu0 %v8090_v15 }
 0xaf7   :  { %5154 = vmatmul.mubr.bf16.gmra.mrb[108].mxu0 %v8096_v62 }
 0xaf8   :  { %5157 = vmatprep.mubr.bf16.mxu0 %v8102_v44 }
 0xaff   :  { %5158 = vmatmul.mubr.bf16.gmra.mrb[112].mxu0 %v8108_v49 }
 0xb00   :  { %5241 = vmatprep.mubr.msk.bf16.mxu0 %vm6231_vm0, %v8733_v36 }
 0xb9a   :  { %v2735_v55 = vpop.f32.mrb[96].mxu0 }
 0xb9b   :  { %v2741_v0 = vadd.f32 %v2735_v55, %v7321_v51  ;;  %v5127_v37 = vpop.f32.mrb[97].mxu0 }
 0xb9c   :  { %v2738_v13 = vpop.f32.mrb[98].mxu0  ;;  %v8834_v37 = vld [vmem:[#allocation35_spill] sm:$0xff] }
 0xb9d   :  { %4125 = vst [vmem:[%s8564_s9 + $0x4] sm:$0x1] %v2741_v0  ;;  %v5128_v45 = vpop.f32.mrb[99].mxu0 }
 0xbba   :  { %v5147_v22 = vpop.f32.mrb[100].mxu0 }
 0xbbb   :  { %v2810_v33 = vadd.f32 %v5147_v22, %v8829_v2  ;;  %v2801_v27 = vpop.f32.mrb[101].mxu0  ;;  %v8835_v2 = vld [vmem:[#allocation48_spill] sm:$0xff] }
 0xbbc   :  { %v2802_v30 = vadd.f32 %v2801_v27, %v8830_v63  ;;  %v5148_v34 = vpop.f32.mrb[102].mxu0 }
 0xbbd   :  { %v2866_v24 = vadd.f32 %v2810_v33, %v6728_v25  ;;  %v2813_v47 = vadd.f32 %v5148_v34, %v8831_v61  ;;  %v2804_v7 = vpop.f32.mrb[103].mxu0 }
 0xbbe   :  { %v2864_v18 = vadd.f32 %v2802_v30, %v6658_v43  ;;  %v2805_v60 = vadd.f32 %v2804_v7, %v8832_v40  ;;  %v8836_v30 = vld [vmem:[#allocation36_spill] sm:$0xff] }
 0xbbf   :  { %5954 = vtanh.f32 %v2866_v24  ;;  %v2867_v6 = vadd.f32 %v2813_v47, %v6710_v57 }
 0xbc0   :  { %5956 = vtanh.f32 %v2864_v18  ;;  %v2865_v14 = vadd.f32 %v2805_v60, %v6640_v38  ;;  %v8837_v60 = vld [vmem:[#allocation71_spill] sm:$0xff] }
 0xbc1   :  { %5958 = vtanh.f32 %v2867_v6 }
 0xbc2   :  { %5960 = vtanh.f32 %v2865_v14  ;;  %v5151_v20 = vpop.f32.mrb[104].mxu0 }
 0xbc3   :  { %v2826_v55 = vadd.f32 %v5151_v20, %v8833_v10  ;;  %v2817_v0 = vpop.f32.mrb[105].mxu0  ;;  %v8838_v10 = vld [vmem:[#allocation59_spill] sm:$0xff] }
 0xbc4   :  { %v2818_v13 = vadd.f32 %v2817_v0, %v8834_v37  ;;  %v5152_v45 = vpop.f32.mrb[106].mxu0 }
 0xbc5   :  { %v2870_v22 = vadd.f32 %v2826_v55, %v6856_v52  ;;  %v2829_v33 = vadd.f32 %v5152_v45, %v8835_v2  ;;  %v2820_v27 = vpop.f32.mrb[107].mxu0  ;;  %v8839_v45 = vld [vmem:[#allocation72_spill] sm:$0xff] }
 0xbc6   :  { %v2868_v63 = vadd.f32 %v2818_v13, %v6792_v53  ;;  %v2821_v34 = vadd.f32 %v2820_v27, %v8836_v30 }
 0xbc7   :  { %5962 = vtanh.f32 %v2870_v22  ;;  %v2871_v24 = vadd.f32 %v2829_v33, %v6838_v41 }
 0xbc8   :  { %5964 = vtanh.f32 %v2868_v63  ;;  %v2869_v61 = vadd.f32 %v2821_v34, %v6774_v21  ;;  %v8840_v63 = vld [vmem:[#allocation60_spill] sm:$0xff] }
 0xbc9   :  { %v5955_v47 = vpop.eup %5954  ;;  %5966 = vtanh.f32 %v2871_v24 }
 0xbca   :  { %v5957_v7 = vpop.eup %5956  ;;  %5968 = vtanh.f32 %v2869_v61  ;;  %v5155_v18 = vpop.f32.mrb[108].mxu0 }
 0xbcb   :  { %v5959_v40 = vpop.eup %5958  ;;  %v2842_v6 = vadd.f32 %v5155_v18, %v8837_v60  ;;  %v2833_v14 = vpop.f32.mrb[109].mxu0 }
 0xbcc   :  { %v5961_v20 = vpop.eup %5960  ;;  %v2834_v55 = vadd.f32 %v2833_v14, %v8838_v10  ;;  %v5156_v0 = vpop.f32.mrb[110].mxu0  ;;  %v8135_v37 = vpack.c.bf16 %v5959_v40, %v5955_v47  ;;  %v8841_v40 = vld [vmem:[#allocation98_spill] sm:$0xff] }
 0xbcd   :  { %v2874_v13 = vadd.f32 %v2842_v6, %v6984_v32  ;;  %v2845_v22 = vadd.f32 %v5156_v0, %v8839_v45  ;;  %v2836_v2 = vpop.f32.mrb[111].mxu0  ;;  %v8139_v33 = vpack.c.bf16 %v5961_v20, %v5957_v7  ;;  %v8842_v20 = vld [vmem:[#allocation85_spill] sm:$0xff]  ;;  %v8843_v45 = vld [vmem:[#allocation99_spill] sm:$0xff] }
 0xbce   :  { %v2872_v27 = vadd.f32 %v2834_v55, %v6920_v35  ;;  %v2837_v30 = vadd.f32 %v2836_v2, %v8840_v63 }
 0xbcf   :  { %5970 = vtanh.f32 %v2874_v13  ;;  %v2875_v34 = vadd.f32 %v2845_v22, %v6966_v48  ;;  %5193 = vmatprep.subr.bf16.mxu1 %v8139_v33 }
 0xbd0   :  { %5972 = vtanh.f32 %v2872_v27  ;;  %v2873_v24 = vadd.f32 %v2837_v30, %v6902_v19  ;;  %5194 = vmatpush3.bf16.msra.mxu1 %v8139_v33  ;;  %v8844_v30 = vld [vmem:[#allocation86_spill] sm:$0xff] }
 0xbd1   :  { %v5963_v61 = vpop.eup %5962  ;;  %5974 = vtanh.f32 %v2875_v34  ;;  %5195 = vmatprep.subr.bf16.mxu1 %v8135_v37 }
 0xbd2   :  { %v5965_v47 = vpop.eup %5964  ;;  %5976 = vtanh.f32 %v2873_v24  ;;  %v5159_v7 = vpop.f32.mrb[112].mxu0 }
 0xbd3   :  { %v5967_v18 = vpop.eup %5966  ;;  %v2858_v60 = vadd.f32 %v5159_v7, %v8841_v40  ;;  %v2849_v6 = vpop.f32.mrb[113].mxu0 }
 0xbd4   :  { %v5969_v14 = vpop.eup %5968  ;;  %v2850_v10 = vadd.f32 %v2849_v6, %v8842_v20  ;;  %v5160_v55 = vpop.f32.mrb[114].mxu0  ;;  %5196 = vmatpush3.bf16.msra.mxu1 %v8135_v37  ;;  %v8151_v0 = vpack.c.bf16 %v5967_v18, %v5963_v61 }
 0xbd5   :  { %v2878_v13 = vadd.f32 %v2858_v60, %v7104_v3  ;;  %v2861_v22 = vadd.f32 %v5160_v55, %v8843_v45  ;;  %v2852_v2 = vpop.f32.mrb[115].mxu0  ;;  %v8155_v27 = vpack.c.bf16 %v5969_v14, %v5965_v47 }
 0xbd6   :  { %v2876_v63 = vadd.f32 %v2850_v10, %v7088_v56  ;;  %v2853_v34 = vadd.f32 %v2852_v2, %v8844_v30  ;;  %v8846_v2 = vld [vmem:[#allocation106_spill] sm:$0xff]  ;;  %v8848_v30 = vld [vmem:[#allocation108_spill] sm:$0xff] }
 0xbd7   :  { %5978 = vtanh.f32 %v2878_v13  ;;  %v2879_v24 = vadd.f32 %v2861_v22, %v7114_v39  ;;  %5197 = vmatprep.subr.bf16.mxu1 %v8155_v27  ;;  %v8845_v22 = vld [vmem:[#allocation105_spill] sm:$0xff] }
 0xbd8   :  { %5980 = vtanh.f32 %v2876_v63  ;;  %v2877_v61 = vadd.f32 %v2853_v34, %v8737_v58  ;;  %5198 = vmatpush3.bf16.msra.mxu1 %v8155_v27  ;;  %v8847_v63 = vld [vmem:[#allocation107_spill] sm:$0xff]  ;;  %v8849_v34 = vld [vmem:[#allocation109_spill] sm:$0xff] }
 0xbd9   :  { %v5971_v7 = vpop.eup %5970  ;;  %5982 = vtanh.f32 %v2879_v24  ;;  %5199 = vmatprep.subr.bf16.mxu1 %v8151_v0  ;;  %v8191_v24 = vld [vmem:[%s8560_s5] sm:$0xff]  }
 0xbda   :  { %v5973_v47 = vpop.eup %5972  ;;  %5984 = vtanh.f32 %v2877_v61 }
 0xbdb   :  { %v5975_v18 = vpop.eup %5974 }
 0xbdc   :  { %v5977_v40 = vpop.eup %5976  ;;  %5200 = vmatpush3.bf16.msra.mxu1 %v8151_v0  ;;  %v8165_v60 = vpack.c.bf16 %v5975_v18, %v5971_v7  ;;  %v8850_v7 = vld [vmem:[#allocation112_spill] sm:$0xff] }
 0xbdd   :  { %v8167_v6 = vpack.c.bf16 %v5977_v40, %v5973_v47 }
 0xbdf   :  { %5201 = vmatprep.subr.bf16.mxu1 %v8167_v6 }
 0xbe0   :  { %5202 = vmatpush3.bf16.msra.mxu1 %v8167_v6 }
 0xbe1   :  { %v5979_v14 = vpop.eup %5978  ;;  %5203 = vmatprep.subr.bf16.mxu1 %v8165_v60 }
 0xbe2   :  { %v5981_v20 = vpop.eup %5980 }
 0xbe3   :  { %v5983_v10 = vpop.eup %5982 }
 0xbe4   :  { %v5985_v55 = vpop.eup %5984  ;;  %5204 = vmatpush3.bf16.msra.mxu1 %v8165_v60  ;;  %v8173_v13 = vpack.c.bf16 %v5983_v10, %v5979_v14 }
 0xbe5   :  { %v8175_v45 = vpack.c.bf16 %v5985_v55, %v5981_v20  ;;  %v8851_v20 = vld [vmem:[#allocation113_spill] sm:$0xff] }
 0xbe7   :  { %5205 = vmatprep.subr.bf16.mxu1 %v8175_v45 }
 0xbe8   :  { %5206 = vmatpush3.bf16.msra.mxu1 %v8175_v45 }
 0xbe9   :  { %5207 = vmatprep.subr.bf16.mxu1 %v8173_v13 }
 0xbec   :  { %5208 = vmatpush3.bf16.msra.mxu1 %v8173_v13 }
 0xbef   :  { %5210 = vmatmul.mubr.bf16.vlgmr.msra.gmra.mrb[80].mxu1 %v7969_v31 }
 0xbf0   :  { %5213 = vmatprep.mubr.bf16.mxu1 %v7975_v28 }
 0xbf7   :  { %5214 = vmatmul.mubr.bf16.gmra.mrb[84].mxu1 %v8845_v22  ;;  %v8852_v22 = vld [vmem:[#allocation117_spill] sm:$0xff] }
 0xbf8   :  { %5217 = vmatprep.mubr.bf16.mxu1 %v8846_v2 }
 0xbff   :  { %5218 = vmatmul.mubr.bf16.gmra.mrb[88].mxu1 %v8847_v63 }
 0xc00   :  { %5221 = vmatprep.mubr.bf16.mxu1 %v8848_v30  ;;  %v8853_v30 = vld [vmem:[#allocation116_spill] sm:$0xff] }
 0xc07   :  { %5222 = vmatmul.mubr.bf16.gmra.mrb[92].mxu1 %v8849_v34 }
 0xc08   :  { %5293 = vmatprep.mubr.bf16.mxu1 %v8191_v24 }
 0xcc2   :  { %v5211_v31 = vpop.f32.mrb[80].mxu1 }
 0xcc3   :  { %v3100_v28 = vadd.f32 %v5211_v31, %v8799_v12  ;;  %v3035_v61 = vpop.f32.mrb[81].mxu1 }
 0xcc4   :  { %v3098_v47 = vadd.f32 %v3035_v61, %v8850_v7  ;;  %v5212_v18 = vpop.f32.mrb[82].mxu1 }
 0xcc5   :  { %5986 = vtanh.f32 %v3100_v28  ;;  %v3101_v40 = vadd.f32 %v5212_v18, %v8747_v29  ;;  %v3038_v14 = vpop.f32.mrb[83].mxu1 }
 0xcc6   :  { %5988 = vtanh.f32 %v3098_v47  ;;  %v3099_v10 = vadd.f32 %v3038_v14, %v8851_v20 }
 0xcc7   :  { %5990 = vtanh.f32 %v3101_v40 }
 0xcc8   :  { %5992 = vtanh.f32 %v3099_v10 }
 0xcca   :  { %v5215_v55 = vpop.f32.mrb[84].mxu1 }
 0xccb   :  { %v3104_v2 = vadd.f32 %v5215_v55, %v8852_v22  ;;  %v3051_v63 = vpop.f32.mrb[85].mxu1 }
 0xccc   :  { %v3102_v34 = vadd.f32 %v3051_v63, %v8853_v30  ;;  %v5216_v31 = vpop.f32.mrb[86].mxu1 }
 0xccd   :  { %5994 = vtanh.f32 %v3104_v2  ;;  %v3105_v61 = vadd.f32 %v5216_v31, %v8778_v59  ;;  %v3054_v7 = vpop.f32.mrb[87].mxu1 }
 0xcce   :  { %5996 = vtanh.f32 %v3102_v34  ;;  %v3103_v28 = vadd.f32 %v3054_v7, %v7195_v4 }
 0xccf   :  { %v5987_v18 = vpop.eup %5986  ;;  %5998 = vtanh.f32 %v3105_v61 }
 0xcd0   :  { %v5989_v47 = vpop.eup %5988  ;;  %6000 = vtanh.f32 %v3103_v28 }
 0xcd1   :  { %v5991_v40 = vpop.eup %5990 }
 0xcd2   :  { %v5993_v14 = vpop.eup %5992  ;;  %v5219_v10 = vpop.f32.mrb[88].mxu1  ;;  %v3131_v20 = vpack.c.bf16 %v5991_v40, %v5987_v18 }
 0xcd3   :  { %v3108_v55 = vadd.f32 %v5219_v10, %v8752_v9  ;;  %v3067_v22 = vpop.f32.mrb[89].mxu1  ;;  %v3130_v63 = vpack.c.bf16 %v5993_v14, %v5989_v47 }
 0xcd4   :  { %v3106_v2 = vadd.f32 %v3067_v22, %v8753_v16  ;;  %v5220_v30 = vpop.f32.mrb[90].mxu1 }
 0xcd5   :  { %6002 = vtanh.f32 %v3108_v55  ;;  %v3109_v34 = vadd.f32 %v5220_v30, %v8754_v5  ;;  %v3070_v31 = vpop.f32.mrb[91].mxu1  ;;  %5226 = vmatpush3.bf16.msra.mxu0 %v3130_v63  ;;  %5277 = vmatprep.subr.bf16.mxu1 %v3130_v63 }
 0xcd6   :  { %6004 = vtanh.f32 %v3106_v2  ;;  %v3107_v7 = vadd.f32 %v3070_v31, %v8755_v42  ;;  %5278 = vmatpush3.bf16.msra.mxu1 %v3130_v63  ;;  %5227 = vmatprep.subr.bf16.mxu0 %v8733_v36 }
 0xcd7   :  { %v5995_v61 = vpop.eup %5994  ;;  %6006 = vtanh.f32 %v3109_v34  ;;  %5279 = vmatprep.subr.bf16.mxu1 %v3131_v20 }
 0xcd8   :  { %v5997_v28 = vpop.eup %5996  ;;  %6008 = vtanh.f32 %v3107_v7 }
 0xcd9   :  { %v5999_v18 = vpop.eup %5998  ;;  %5228 = vmatpush3.bf16.msra.mxu0 %v3131_v20 }
 0xcda   :  { %v6001_v22 = vpop.eup %6000  ;;  %v5223_v47 = vpop.f32.mrb[92].mxu1  ;;  %5280 = vmatpush3.bf16.msra.mxu1 %v3131_v20  ;;  %5229 = vmatprep.subr.bf16.mxu0 %v8733_v36  ;;  %v3133_v30 = vpack.c.bf16 %v5999_v18, %v5995_v61 }
 0xcdb   :  { %v3112_v40 = vadd.f32 %v5223_v47, %v7226_v46  ;;  %v3083_v14 = vpop.f32.mrb[93].mxu1  ;;  %v3132_v10 = vpack.c.bf16 %v6001_v22, %v5997_v28 }
 0xcdc   :  { %v3110_v55 = vadd.f32 %v3083_v14, %v7218_v1  ;;  %v5224_v63 = vpop.f32.mrb[94].mxu1 }
 0xcdd   :  { %6010 = vtanh.f32 %v3112_v40  ;;  %v3113_v2 = vadd.f32 %v5224_v63, %v7230_v54  ;;  %v3086_v34 = vpop.f32.mrb[95].mxu1  ;;  %5230 = vmatpush3.bf16.msra.mxu0 %v3132_v10  ;;  %5281 = vmatprep.subr.bf16.mxu1 %v3132_v10  ;;  %v8225_v63 = vld [vmem:[%s8560_s5 + $0x8] sm:$0xff]  }
 0xcde   :  { %6012 = vtanh.f32 %v3110_v55  ;;  %v3111_v31 = vadd.f32 %v3086_v34, %v7222_v23  ;;  %5282 = vmatpush3.bf16.msra.mxu1 %v3132_v10  ;;  %5231 = vmatprep.subr.bf16.mxu0 %v8733_v36 }
 0xcdf   :  { %v6003_v20 = vpop.eup %6002  ;;  %6014 = vtanh.f32 %v3113_v2  ;;  %5283 = vmatprep.subr.bf16.mxu1 %v3133_v30  ;;  %v8231_v2 = vld [vmem:[%s8560_s5 + $0x10] sm:$0xff]  }
 0xce0   :  { %v6005_v7 = vpop.eup %6004  ;;  %6016 = vtanh.f32 %v3111_v31 }
 0xce1   :  { %v6007_v61 = vpop.eup %6006  ;;  %5232 = vmatpush3.bf16.msra.mxu0 %v3133_v30 }
 0xce2   :  { %v6009_v28 = vpop.eup %6008  ;;  %5284 = vmatpush3.bf16.msra.mxu1 %v3133_v30  ;;  %5233 = vmatprep.subr.bf16.mxu0 %v8733_v36  ;;  %v3135_v18 = vpack.c.bf16 %v6007_v61, %v6003_v20  ;;  %v8856_v20 = vld [vmem:[#allocation25_spill] sm:$0xff] }
 0xce3   :  { %v3134_v22 = vpack.c.bf16 %v6009_v28, %v6005_v7 }
 0xce5   :  { %5234 = vmatpush3.bf16.msra.mxu0 %v3134_v22  ;;  %5285 = vmatprep.subr.bf16.mxu1 %v3134_v22 }
 0xce6   :  { %5286 = vmatpush3.bf16.msra.mxu1 %v3134_v22  ;;  %5235 = vmatprep.subr.bf16.mxu0 %v8733_v36 }
 0xce7   :  { %v6011_v47 = vpop.eup %6010  ;;  %5287 = vmatprep.subr.bf16.mxu1 %v3135_v18 }
 0xce8   :  { %v6013_v40 = vpop.eup %6012 }
 0xce9   :  { %v6015_v14 = vpop.eup %6014  ;;  %5236 = vmatpush3.bf16.msra.mxu0 %v3135_v18 }
 0xcea   :  { %v6017_v10 = vpop.eup %6016  ;;  %5288 = vmatpush3.bf16.msra.mxu1 %v3135_v18  ;;  %5237 = vmatprep.subr.bf16.mxu0 %v8733_v36  ;;  %v3137_v55 = vpack.c.bf16 %v6015_v14, %v6011_v47  ;;  %v8857_v18 = vld [vmem:[#allocation26_spill] sm:$0xff] }
 0xceb   :  { %v3136_v30 = vpack.c.bf16 %v6017_v10, %v6013_v40  ;;  %v8858_v10 = vld [vmem:[#allocation49_spill] sm:$0xff] }
 0xced   :  { %5238 = vmatpush3.bf16.msra.mxu0 %v3136_v30  ;;  %5289 = vmatprep.subr.bf16.mxu1 %v3136_v30 }
 0xcee   :  { %5290 = vmatpush3.bf16.msra.mxu1 %v3136_v30  ;;  %5239 = vmatprep.subr.bf16.mxu0 %v8733_v36 }
 0xcef   :  { %5291 = vmatprep.subr.bf16.mxu1 %v3137_v55 }
 0xcf1   :  { %5240 = vmatpush3.bf16.msra.mxu0 %v3137_v55 }
 0xcf2   :  { %5245 = vmatprep.subr.bf16.mxu0 %v8139_v33  ;;  %5292 = vmatpush3.bf16.msra.mxu1 %v3137_v55 }
 0xcf4   :  { %5242 = vmatmul.mubr.bf16.vlgmr.msra.gmra.mrb[116].mxu0 %v8036_v11  ;;  %v8241_v11 = vld [vmem:[%s8560_s5 + $0x18] sm:$0xff]  }
 0xcf5   :  { %5246 = vmatpush3.bf16.msra.mxu0 %v8139_v33  ;;  %5261 = vmatprep.mubr.bf16.mxu0 %v8043_v8  ;;  %v8247_v8 = vld [vmem:[%s8560_s5 + $0x20] sm:$0xff]   ;;  %v8263_v33 = vld [vmem:[%s8560_s5 + $0x30] sm:$0xff]  }
 0xcf6   :  { %5247 = vmatprep.subr.bf16.mxu0 %v8135_v37  ;;  %5294 = vmatmul.mubr.bf16.vlgmr.msra.gmra.mrb[96].mxu1 %v8225_v63 }
 0xcf7   :  { %5297 = vmatprep.mubr.bf16.mxu1 %v8231_v2 }
 0xcf9   :  { %5248 = vmatpush3.bf16.msra.mxu0 %v8135_v37  ;;  %v8257_v37 = vld [vmem:[%s8560_s5 + $0x28] sm:$0xff]  }
 0xcfa   :  { %5249 = vmatprep.subr.bf16.mxu0 %v8155_v27 }
 0xcfd   :  { %5250 = vmatpush3.bf16.msra.mxu0 %v8155_v27  ;;  %v8279_v27 = vld [vmem:[%s8562_s4] sm:$0xff]  }
 0xcfe   :  { %5251 = vmatprep.subr.bf16.mxu0 %v8151_v0  ;;  %5298 = vmatmul.mubr.bf16.gmra.mrb[100].mxu1 %v8241_v11 }
 0xcff   :  { %5301 = vmatprep.mubr.bf16.mxu1 %v8247_v8 }
 0xd01   :  { %5252 = vmatpush3.bf16.msra.mxu0 %v8151_v0  ;;  %v8273_v0 = vld [vmem:[%s8560_s5 + $0x38] sm:$0xff]  }
 0xd02   :  { %5253 = vmatprep.subr.bf16.mxu0 %v8167_v6 }
 0xd05   :  { %5254 = vmatpush3.bf16.msra.mxu0 %v8167_v6 }
 0xd06   :  { %5255 = vmatprep.subr.bf16.mxu0 %v8165_v60  ;;  %5302 = vmatmul.mubr.bf16.gmra.mrb[104].mxu1 %v8257_v37 }
 0xd07   :  { %5305 = vmatprep.mubr.bf16.mxu1 %v8263_v33 }
 0xd09   :  { %5256 = vmatpush3.bf16.msra.mxu0 %v8165_v60 }
 0xd0a   :  { %5257 = vmatprep.subr.bf16.mxu0 %v8175_v45 }
 0xd0d   :  { %5258 = vmatpush3.bf16.msra.mxu0 %v8175_v45 }
 0xd0e   :  { %5259 = vmatprep.subr.bf16.mxu0 %v8173_v13  ;;  %5306 = vmatmul.mubr.bf16.gmra.mrb[108].mxu1 %v8273_v0 }
 0xd0f   :  { %5325 = vmatprep.mubr.bf16.mxu1 %v8279_v27 }
 0xd11   :  { %5260 = vmatpush3.bf16.msra.mxu0 %v8173_v13 }
 0xd12   :  { %5341 = vmatprep.subr.bf16.mxu0 %v8733_v36 }
 0xd14   :  { %5262 = vmatmul.mubr.bf16.vlgmr.msra.gmra.mrb[120].mxu0 %v8072_v50 }
 0xd15   :  { %5265 = vmatprep.mubr.bf16.mxu0 %v8078_v26 }
 0xd1c   :  { %5266 = vmatmul.mubr.bf16.gmra.mrb[124].mxu0 %v8084_v17 }
 0xd1d   :  { %5269 = vmatprep.mubr.bf16.mxu0 %v8090_v15  ;;  %v8854_v15 = vld [vmem:[#allocation13_spill] sm:$0xff] }
 0xd24   :  { %5270 = vmatmul.mubr.bf16.gmra.mrb[128].mxu0 %v8096_v62 }
 0xd25   :  { %5273 = vmatprep.mubr.bf16.mxu0 %v8102_v44  ;;  %v8855_v44 = vld [vmem:[#allocation14_spill] sm:$0xff] }
 0xd2c   :  { %5274 = vmatmul.mubr.bf16.gmra.mrb[132].mxu0 %v8108_v49 }
 0xd2d   :  { %5357 = vmatprep.mubr.msk.bf16.mxu0 %vm6231_vm0, %v8733_v36 }
 0xdc7   :  { %v3172_v60 = vpop.f32.mrb[116].mxu0 }
 0xdc8   :  { %v3178_v6 = vadd.f32 %v3172_v60, %v7321_v51  ;;  %v5243_v13 = vpop.f32.mrb[117].mxu0  ;;  %v8859_v60 = vld [vmem:[#allocation37_spill] sm:$0xff] }
 0xdc9   :  { %v3175_v50 = vpop.f32.mrb[118].mxu0 }
 0xdca   :  { %4128 = vst [vmem:[%s8564_s9 + $0x5] sm:$0x1] %v3178_v6  ;;  %v5244_v26 = vpop.f32.mrb[119].mxu0 }
 0xdcb   :  { %v8860_v26 = vld [vmem:[#allocation50_spill] sm:$0xff] }
 0xde7   :  { %v5263_v17 = vpop.f32.mrb[120].mxu0 }
 0xde8   :  { %v3247_v62 = vadd.f32 %v5263_v17, %v8854_v15  ;;  %v3238_v45 = vpop.f32.mrb[121].mxu0 }
 0xde9   :  { %v3239_v34 = vadd.f32 %v3238_v45, %v8855_v44  ;;  %v5264_v49 = vpop.f32.mrb[122].mxu0  ;;  %v8861_v45 = vld [vmem:[#allocation38_spill] sm:$0xff] }
 0xdea   :  { %v3303_v31 = vadd.f32 %v3247_v62, %v6728_v25  ;;  %v3250_v7 = vadd.f32 %v5264_v49, %v8856_v20  ;;  %v3241_v61 = vpop.f32.mrb[123].mxu0 }
 0xdeb   :  { %v3301_v28 = vadd.f32 %v3239_v34, %v6658_v43  ;;  %v3242_v22 = vadd.f32 %v3241_v61, %v8857_v18 }
 0xdec   :  { %6018 = vtanh.f32 %v3303_v31  ;;  %v3304_v47 = vadd.f32 %v3250_v7, %v6710_v57 }
 0xded   :  { %6020 = vtanh.f32 %v3301_v28  ;;  %v3302_v40 = vadd.f32 %v3242_v22, %v6640_v38  ;;  %v8862_v28 = vld [vmem:[#allocation73_spill] sm:$0xff] }
 0xdee   :  { %6022 = vtanh.f32 %v3304_v47 }
 0xdef   :  { %6024 = vtanh.f32 %v3302_v40  ;;  %v5267_v14 = vpop.f32.mrb[124].mxu0  ;;  %v8863_v40 = vld [vmem:[#allocation61_spill] sm:$0xff] }
 0xdf0   :  { %v3263_v55 = vadd.f32 %v5267_v14, %v8858_v10  ;;  %v3254_v30 = vpop.f32.mrb[125].mxu0 }
 0xdf1   :  { %v3255_v6 = vadd.f32 %v3254_v30, %v8859_v60  ;;  %v5268_v13 = vpop.f32.mrb[126].mxu0  ;;  %v8864_v60 = vld [vmem:[#allocation74_spill] sm:$0xff] }
 0xdf2   :  { %v3307_v50 = vadd.f32 %v3263_v55, %v6856_v52  ;;  %v3266_v17 = vadd.f32 %v5268_v13, %v8860_v26  ;;  %v3257_v15 = vpop.f32.mrb[127].mxu0 }
 0xdf3   :  { %v3305_v62 = vadd.f32 %v3255_v6, %v6792_v53  ;;  %v3258_v44 = vadd.f32 %v3257_v15, %v8861_v45 }
 0xdf4   :  { %6026 = vtanh.f32 %v3307_v50  ;;  %v3308_v34 = vadd.f32 %v3266_v17, %v6838_v41  ;;  %v8865_v17 = vld [vmem:[#allocation62_spill] sm:$0xff] }
 0xdf5   :  { %6028 = vtanh.f32 %v3305_v62  ;;  %v3306_v49 = vadd.f32 %v3258_v44, %v6774_v21 }
 0xdf6   :  { %v6019_v31 = vpop.eup %6018  ;;  %6030 = vtanh.f32 %v3308_v34 }
 0xdf7   :  { %v6021_v20 = vpop.eup %6020  ;;  %6032 = vtanh.f32 %v3306_v49  ;;  %v5271_v7 = vpop.f32.mrb[128].mxu0 }
 0xdf8   :  { %v6023_v61 = vpop.eup %6022  ;;  %v3279_v18 = vadd.f32 %v5271_v7, %v8862_v28  ;;  %v3270_v22 = vpop.f32.mrb[129].mxu0 }
 0xdf9   :  { %v6025_v47 = vpop.eup %6024  ;;  %v3271_v14 = vadd.f32 %v3270_v22, %v8863_v40  ;;  %v5272_v10 = vpop.f32.mrb[130].mxu0  ;;  %v8315_v55 = vpack.c.bf16 %v6023_v61, %v6019_v31 }
 0xdfa   :  { %v3311_v30 = vadd.f32 %v3279_v18, %v6984_v32  ;;  %v3282_v6 = vadd.f32 %v5272_v10, %v8864_v60  ;;  %v3273_v13 = vpop.f32.mrb[131].mxu0  ;;  %v8319_v50 = vpack.c.bf16 %v6025_v47, %v6021_v20  ;;  %v8866_v20 = vld [vmem:[#allocation100_spill] sm:$0xff]  ;;  %v8867_v18 = vld [vmem:[#allocation87_spill] sm:$0xff]  ;;  %v8868_v10 = vld [vmem:[#allocation101_spill] sm:$0xff] }
 0xdfb   :  { %v3309_v26 = vadd.f32 %v3271_v14, %v6920_v35  ;;  %v3274_v15 = vadd.f32 %v3273_v13, %v8865_v17 }
 0xdfc   :  { %6034 = vtanh.f32 %v3311_v30  ;;  %v3312_v62 = vadd.f32 %v3282_v6, %v6966_v48  ;;  %5309 = vmatprep.subr.bf16.mxu1 %v8319_v50 }
 0xdfd   :  { %6036 = vtanh.f32 %v3309_v26  ;;  %v3310_v45 = vadd.f32 %v3274_v15, %v6902_v19  ;;  %5310 = vmatpush3.bf16.msra.mxu1 %v8319_v50  ;;  %v8869_v26 = vld [vmem:[#allocation88_spill] sm:$0xff] }
 0xdfe   :  { %v6027_v44 = vpop.eup %6026  ;;  %6038 = vtanh.f32 %v3312_v62  ;;  %5311 = vmatprep.subr.bf16.mxu1 %v8315_v55 }
 0xdff   :  { %v6029_v34 = vpop.eup %6028  ;;  %6040 = vtanh.f32 %v3310_v45  ;;  %v5275_v49 = vpop.f32.mrb[132].mxu0 }
 0xe00   :  { %v6031_v31 = vpop.eup %6030  ;;  %v3295_v7 = vadd.f32 %v5275_v49, %v8866_v20  ;;  %v3286_v61 = vpop.f32.mrb[133].mxu0 }
 0xe01   :  { %v6033_v28 = vpop.eup %6032  ;;  %v3287_v22 = vadd.f32 %v3286_v61, %v8867_v18  ;;  %v5276_v47 = vpop.f32.mrb[134].mxu0  ;;  %5312 = vmatpush3.bf16.msra.mxu1 %v8315_v55  ;;  %v8331_v40 = vpack.c.bf16 %v6031_v31, %v6027_v44 }
 0xe02   :  { %v3315_v14 = vadd.f32 %v3295_v7, %v7104_v3  ;;  %v3298_v30 = vadd.f32 %v5276_v47, %v8868_v10  ;;  %v3289_v60 = vpop.f32.mrb[135].mxu0  ;;  %v8335_v6 = vpack.c.bf16 %v6033_v28, %v6029_v34  ;;  %v8370_v10 = vld [vmem:[%s8562_s4 + $0x10] sm:$0xff]  }
 0xe03   :  { %v3313_v13 = vadd.f32 %v3287_v22, %v7088_v56  ;;  %v3290_v17 = vadd.f32 %v3289_v60, %v8869_v26  ;;  %v8382_v60 = vld [vmem:[%s8562_s4 + $0x20] sm:$0xff]   ;;  %v8394_v26 = vld [vmem:[%s8562_s4 + $0x30] sm:$0xff]  }
 0xe04   :  { %6042 = vtanh.f32 %v3315_v14  ;;  %v3316_v15 = vadd.f32 %v3298_v30, %v7114_v39  ;;  %5313 = vmatprep.subr.bf16.mxu1 %v8335_v6  ;;  %v8364_v14 = vld [vmem:[%s8562_s4 + $0x8] sm:$0xff]   ;;  %v8376_v30 = vld [vmem:[%s8562_s4 + $0x18] sm:$0xff]   ;;  %8871 = vst [vmem:[#allocation111_spill] sm:$0xff] %v8382_v60  ;;  %8873 = vst [vmem:[#allocation121_spill] sm:$0xff] %v8394_v26 }
 0xe05   :  { %6044 = vtanh.f32 %v3313_v13  ;;  %v3314_v62 = vadd.f32 %v3290_v17, %v8737_v58  ;;  %5314 = vmatpush3.bf16.msra.mxu1 %v8335_v6  ;;  %8870 = vst [vmem:[#allocation110_spill] sm:$0xff] %v8376_v30  ;;  %v8388_v13 = vld [vmem:[%s8562_s4 + $0x28] sm:$0xff]   ;;  %v8400_v17 = vld [vmem:[%s8562_s4 + $0x38] sm:$0xff]  }
 0xe06   :  { %v6035_v45 = vpop.eup %6034  ;;  %6046 = vtanh.f32 %v3316_v15  ;;  %5315 = vmatprep.subr.bf16.mxu1 %v8331_v40  ;;  %8872 = vst [vmem:[#allocation115_spill] sm:$0xff] %v8388_v13  ;;  %8874 = vst [vmem:[#allocation119_spill] sm:$0xff] %v8400_v17 }
 0xe07   :  { %v6037_v44 = vpop.eup %6036  ;;  %6048 = vtanh.f32 %v3314_v62 }
 0xe08   :  { %v6039_v34 = vpop.eup %6038 }
 0xe09   :  { %v6041_v49 = vpop.eup %6040  ;;  %5316 = vmatpush3.bf16.msra.mxu1 %v8331_v40  ;;  %v8345_v31 = vpack.c.bf16 %v6039_v34, %v6035_v45 }
 0xe0a   :  { %v8347_v20 = vpack.c.bf16 %v6041_v49, %v6037_v44  ;;  %v8875_v44 = vld [vmem:[#allocation112_spill] sm:$0xff] }
 0xe0c   :  { %5317 = vmatprep.subr.bf16.mxu1 %v8347_v20 }
 0xe0d   :  { %5318 = vmatpush3.bf16.msra.mxu1 %v8347_v20 }
 0xe0e   :  { %v6043_v7 = vpop.eup %6042  ;;  %5319 = vmatprep.subr.bf16.mxu1 %v8345_v31 }
 0xe0f   :  { %v6045_v61 = vpop.eup %6044 }
 0xe10   :  { %v6047_v28 = vpop.eup %6046 }
 0xe11   :  { %v6049_v18 = vpop.eup %6048  ;;  %5320 = vmatpush3.bf16.msra.mxu1 %v8345_v31  ;;  %v8353_v22 = vpack.c.bf16 %v6047_v28, %v6043_v7  ;;  %v8876_v28 = vld [vmem:[#allocation113_spill] sm:$0xff] }
 0xe12   :  { %v8355_v47 = vpack.c.bf16 %v6049_v18, %v6045_v61 }
 0xe14   :  { %5321 = vmatprep.subr.bf16.mxu1 %v8355_v47 }
 0xe15   :  { %5322 = vmatpush3.bf16.msra.mxu1 %v8355_v47 }
 0xe16   :  { %5323 = vmatprep.subr.bf16.mxu1 %v8353_v22 }
 0xe19   :  { %5324 = vmatpush3.bf16.msra.mxu1 %v8353_v22 }
 0xe1c   :  { %5326 = vmatmul.mubr.bf16.vlgmr.msra.gmra.mrb[96].mxu1 %v8364_v14 }
 0xe1d   :  { %5329 = vmatprep.mubr.bf16.mxu1 %v8370_v10 }
 0xe24   :  { %5330 = vmatmul.mubr.bf16.gmra.mrb[100].mxu1 %v8376_v30 }
 0xe25   :  { %5333 = vmatprep.mubr.bf16.mxu1 %v8382_v60  ;;  %v8878_v60 = vld [vmem:[#allocation116_spill] sm:$0xff] }
 0xe2c   :  { %5334 = vmatmul.mubr.bf16.gmra.mrb[104].mxu1 %v8388_v13 }
 0xe2d   :  { %5337 = vmatprep.mubr.bf16.mxu1 %v8394_v26 }
 0xe34   :  { %5338 = vmatmul.mubr.bf16.gmra.mrb[108].mxu1 %v8400_v17  ;;  %v8877_v17 = vld [vmem:[#allocation117_spill] sm:$0xff] }
 0xe35   :  { %5409 = vmatprep.mubr.bf16.mxu1 %v8191_v24 }
 0xeef   :  { %v5327_v15 = vpop.f32.mrb[96].mxu1 }
 0xef0   :  { %v3537_v62 = vadd.f32 %v5327_v15, %v8799_v12  ;;  %v3472_v45 = vpop.f32.mrb[97].mxu1 }
 0xef1   :  { %v3535_v34 = vadd.f32 %v3472_v45, %v8875_v44  ;;  %v5328_v49 = vpop.f32.mrb[98].mxu1 }
 0xef2   :  { %6050 = vtanh.f32 %v3537_v62  ;;  %v3538_v7 = vadd.f32 %v5328_v49, %v8747_v29  ;;  %v3475_v61 = vpop.f32.mrb[99].mxu1 }
 0xef3   :  { %6052 = vtanh.f32 %v3535_v34  ;;  %v3536_v18 = vadd.f32 %v3475_v61, %v8876_v28 }
 0xef4   :  { %6054 = vtanh.f32 %v3538_v7 }
 0xef5   :  { %6056 = vtanh.f32 %v3536_v18 }
 0xef7   :  { %v5331_v26 = vpop.f32.mrb[100].mxu1 }
 0xef8   :  { %v3541_v13 = vadd.f32 %v5331_v26, %v8877_v17  ;;  %v3488_v24 = vpop.f32.mrb[101].mxu1 }
 0xef9   :  { %v3539_v30 = vadd.f32 %v3488_v24, %v8878_v60  ;;  %v5332_v15 = vpop.f32.mrb[102].mxu1 }
 0xefa   :  { %6058 = vtanh.f32 %v3541_v13  ;;  %v3542_v45 = vadd.f32 %v5332_v15, %v8778_v59  ;;  %v3491_v44 = vpop.f32.mrb[103].mxu1 }
 0xefb   :  { %6060 = vtanh.f32 %v3539_v30  ;;  %v3540_v62 = vadd.f32 %v3491_v44, %v7195_v4 }
 0xefc   :  { %v6051_v49 = vpop.eup %6050  ;;  %6062 = vtanh.f32 %v3542_v45 }
 0xefd   :  { %v6053_v34 = vpop.eup %6052  ;;  %6064 = vtanh.f32 %v3540_v62 }
 0xefe   :  { %v6055_v7 = vpop.eup %6054 }
 0xeff   :  { %v6057_v61 = vpop.eup %6056  ;;  %v5335_v18 = vpop.f32.mrb[104].mxu1  ;;  %v3568_v28 = vpack.c.bf16 %v6055_v7, %v6051_v49 }
 0xf00   :  { %v3545_v26 = vadd.f32 %v5335_v18, %v8752_v9  ;;  %v3504_v17 = vpop.f32.mrb[105].mxu1  ;;  %v3567_v24 = vpack.c.bf16 %v6057_v61, %v6053_v34 }
 0xf01   :  { %v3543_v13 = vadd.f32 %v3504_v17, %v8753_v16  ;;  %v5336_v60 = vpop.f32.mrb[106].mxu1 }
 0xf02   :  { %6066 = vtanh.f32 %v3545_v26  ;;  %v3546_v30 = vadd.f32 %v5336_v60, %v8754_v5  ;;  %v3507_v15 = vpop.f32.mrb[107].mxu1  ;;  %5342 = vmatpush3.bf16.msra.mxu0 %v3567_v24  ;;  %5393 = vmatprep.subr.bf16.mxu1 %v3567_v24 }
 0xf03   :  { %6068 = vtanh.f32 %v3543_v13  ;;  %v3544_v44 = vadd.f32 %v3507_v15, %v8755_v42  ;;  %5394 = vmatpush3.bf16.msra.mxu1 %v3567_v24  ;;  %5343 = vmatprep.subr.bf16.mxu0 %v8733_v36 }
 0xf04   :  { %v6059_v45 = vpop.eup %6058  ;;  %6070 = vtanh.f32 %v3546_v30  ;;  %5395 = vmatprep.subr.bf16.mxu1 %v3568_v28 }
 0xf05   :  { %v6061_v62 = vpop.eup %6060  ;;  %6072 = vtanh.f32 %v3544_v44 }
 0xf06   :  { %v6063_v49 = vpop.eup %6062  ;;  %5344 = vmatpush3.bf16.msra.mxu0 %v3568_v28 }
 0xf07   :  { %v6065_v17 = vpop.eup %6064  ;;  %v5339_v34 = vpop.f32.mrb[108].mxu1  ;;  %5396 = vmatpush3.bf16.msra.mxu1 %v3568_v28  ;;  %5345 = vmatprep.subr.bf16.mxu0 %v8733_v36  ;;  %v3570_v60 = vpack.c.bf16 %v6063_v49, %v6059_v45 }
 0xf08   :  { %v3549_v7 = vadd.f32 %v5339_v34, %v7226_v46  ;;  %v3520_v61 = vpop.f32.mrb[109].mxu1  ;;  %v3569_v18 = vpack.c.bf16 %v6065_v17, %v6061_v62 }
 0xf09   :  { %v3547_v26 = vadd.f32 %v3520_v61, %v7218_v1  ;;  %v5340_v24 = vpop.f32.mrb[110].mxu1 }
 0xf0a   :  { %6074 = vtanh.f32 %v3549_v7  ;;  %v3550_v13 = vadd.f32 %v5340_v24, %v7230_v54  ;;  %v3523_v30 = vpop.f32.mrb[111].mxu1  ;;  %5346 = vmatpush3.bf16.msra.mxu0 %v3569_v18  ;;  %5397 = vmatprep.subr.bf16.mxu1 %v3569_v18  ;;  %v8431_v24 = vld [vmem:[%s8563_s7] sm:$0xf] }
 0xf0b   :  { %6076 = vtanh.f32 %v3547_v26  ;;  %v3548_v15 = vadd.f32 %v3523_v30, %v7222_v23  ;;  %5398 = vmatpush3.bf16.msra.mxu1 %v3569_v18  ;;  %5347 = vmatprep.subr.bf16.mxu0 %v8733_v36  ;;  %v8880_v30 = vld [vmem:[#allocation16_spill] sm:$0xff] }
 0xf0c   :  { %v6067_v28 = vpop.eup %6066  ;;  %6078 = vtanh.f32 %v3550_v13  ;;  %5399 = vmatprep.subr.bf16.mxu1 %v3570_v60  ;;  %v6221_v13 = vld [vmem:[%s8556_s2] sm:$0xff]  }
 0xf0d   :  { %v6069_v44 = vpop.eup %6068  ;;  %6080 = vtanh.f32 %v3548_v15 }
 0xf0e   :  { %v6071_v45 = vpop.eup %6070  ;;  %5348 = vmatpush3.bf16.msra.mxu0 %v3570_v60 }
 0xf0f   :  { %v6073_v62 = vpop.eup %6072  ;;  %5400 = vmatpush3.bf16.msra.mxu1 %v3570_v60  ;;  %5349 = vmatprep.subr.bf16.mxu0 %v8733_v36  ;;  %v3572_v49 = vpack.c.bf16 %v6071_v45, %v6067_v28  ;;  %v8881_v45 = vld [vmem:[#allocation27_spill] sm:$0xff] }
 0xf10   :  { %v3571_v17 = vpack.c.bf16 %v6073_v62, %v6069_v44 }
 0xf12   :  { %5350 = vmatpush3.bf16.msra.mxu0 %v3571_v17  ;;  %5401 = vmatprep.subr.bf16.mxu1 %v3571_v17 }
 0xf13   :  { %5402 = vmatpush3.bf16.msra.mxu1 %v3571_v17  ;;  %5351 = vmatprep.subr.bf16.mxu0 %v8733_v36 }
 0xf14   :  { %v6075_v34 = vpop.eup %6074  ;;  %5403 = vmatprep.subr.bf16.mxu1 %v3572_v49 }
 0xf15   :  { %v6077_v7 = vpop.eup %6076 }
 0xf16   :  { %v6079_v61 = vpop.eup %6078  ;;  %5352 = vmatpush3.bf16.msra.mxu0 %v3572_v49 }
 0xf17   :  { %v6081_v18 = vpop.eup %6080  ;;  %5404 = vmatpush3.bf16.msra.mxu1 %v3572_v49  ;;  %5353 = vmatprep.subr.bf16.mxu0 %v8733_v36  ;;  %v3574_v26 = vpack.c.bf16 %v6079_v61, %v6075_v34  ;;  %v8882_v34 = vld [vmem:[#allocation28_spill] sm:$0xff] }
 0xf18   :  { %v3573_v60 = vpack.c.bf16 %v6081_v18, %v6077_v7 }
 0xf1a   :  { %5354 = vmatpush3.bf16.msra.mxu0 %v3573_v60  ;;  %5405 = vmatprep.subr.bf16.mxu1 %v3573_v60 }
 0xf1b   :  { %5406 = vmatpush3.bf16.msra.mxu1 %v3573_v60  ;;  %5355 = vmatprep.subr.bf16.mxu0 %v8733_v36  ;;  %v8883_v60 = vld [vmem:[#allocation51_spill] sm:$0xff] }
 0xf1c   :  { %5407 = vmatprep.subr.bf16.mxu1 %v3574_v26 }
 0xf1e   :  { %5356 = vmatpush3.bf16.msra.mxu0 %v3574_v26 }
 0xf1f   :  { %5361 = vmatprep.subr.bf16.mxu0 %v8319_v50  ;;  %5408 = vmatpush3.bf16.msra.mxu1 %v3574_v26 }
 0xf21   :  { %5358 = vmatmul.mubr.bf16.vlgmr.msra.gmra.mrb[136].mxu0 %v8431_v24 }
 0xf22   :  { %5362 = vmatpush3.bf16.msra.mxu0 %v8319_v50  ;;  %5377 = vmatprep.mubr.bf16.mxu0 %v6221_v13 }
 0xf23   :  { %5363 = vmatprep.subr.bf16.mxu0 %v8315_v55  ;;  %5410 = vmatmul.mubr.bf16.vlgmr.msra.gmra.mrb[112].mxu1 %v8225_v63  ;;  %v6222_v63 = vld [vmem:[%s8556_s2 + $0x8] sm:$0xff]  }
 0xf24   :  { %5413 = vmatprep.mubr.bf16.mxu1 %v8231_v2  ;;  %v6223_v2 = vld [vmem:[%s8556_s2 + $0x10] sm:$0xff]  }
 0xf26   :  { %5364 = vmatpush3.bf16.msra.mxu0 %v8315_v55 }
 0xf27   :  { %5365 = vmatprep.subr.bf16.mxu0 %v8335_v6 }
 0xf2a   :  { %5366 = vmatpush3.bf16.msra.mxu0 %v8335_v6 }
 0xf2b   :  { %5367 = vmatprep.subr.bf16.mxu0 %v8331_v40  ;;  %5414 = vmatmul.mubr.bf16.gmra.mrb[116].mxu1 %v8241_v11  ;;  %v6224_v11 = vld [vmem:[%s8556_s2 + $0x18] sm:$0xff]  }
 0xf2c   :  { %5417 = vmatprep.mubr.bf16.mxu1 %v8247_v8  ;;  %v6225_v8 = vld [vmem:[%s8556_s2 + $0x20] sm:$0xff]  }
 0xf2e   :  { %5368 = vmatpush3.bf16.msra.mxu0 %v8331_v40 }
 0xf2f   :  { %5369 = vmatprep.subr.bf16.mxu0 %v8347_v20 }
 0xf32   :  { %5370 = vmatpush3.bf16.msra.mxu0 %v8347_v20  ;;  %v8879_v20 = vld [vmem:[#allocation15_spill] sm:$0xff] }
 0xf33   :  { %5371 = vmatprep.subr.bf16.mxu0 %v8345_v31  ;;  %5418 = vmatmul.mubr.bf16.gmra.mrb[120].mxu1 %v8257_v37  ;;  %v6226_v37 = vld [vmem:[%s8556_s2 + $0x28] sm:$0xff]  }
 0xf34   :  { %5421 = vmatprep.mubr.bf16.mxu1 %v8263_v33  ;;  %v6227_v33 = vld [vmem:[%s8556_s2 + $0x30] sm:$0xff]  }
 0xf36   :  { %5372 = vmatpush3.bf16.msra.mxu0 %v8345_v31 }
 0xf37   :  { %5373 = vmatprep.subr.bf16.mxu0 %v8355_v47 }
 0xf3a   :  { %5374 = vmatpush3.bf16.msra.mxu0 %v8355_v47 }
 0xf3b   :  { %5375 = vmatprep.subr.bf16.mxu0 %v8353_v22  ;;  %5422 = vmatmul.mubr.bf16.gmra.mrb[124].mxu1 %v8273_v0  ;;  %v6228_v0 = vld [vmem:[%s8556_s2 + $0x38] sm:$0xff]  }
 0xf3c   :  { %5441 = vmatprep.mubr.bf16.mxu1 %v8279_v27 }
 0xf3e   :  { %5376 = vmatpush3.bf16.msra.mxu0 %v8353_v22 }
 0xf3f   :  { %5457 = vmatprep.subr.bf16.mxu0 %v8733_v36 }
 0xf41   :  { %5378 = vmatmul.mubr.bf16.vlgmr.msra.gmra.mrb[140].mxu0 %v6222_v63 }
 0xf42   :  { %5381 = vmatprep.mubr.bf16.mxu0 %v6223_v2 }
 0xf49   :  { %5382 = vmatmul.mubr.bf16.gmra.mrb[144].mxu0 %v6224_v11 }
 0xf4a   :  { %5385 = vmatprep.mubr.bf16.mxu0 %v6225_v8 }
 0xf51   :  { %5386 = vmatmul.mubr.bf16.gmra.mrb[148].mxu0 %v6226_v37 }
 0xf52   :  { %5389 = vmatprep.mubr.bf16.mxu0 %v6227_v33 }
 0xf59   :  { %5390 = vmatmul.mubr.bf16.gmra.mrb[152].mxu0 %v6228_v0 }
 0xf5a   :  { %5473 = vmatprep.mubr.msk.bf16.mxu0 %vm6231_vm0, %v8733_v36 }
 0xff4   :  { %v3609_v27 = vpop.f32.mrb[136].mxu0 }
 0xff5   :  { %v3615_v55 = vadd.f32 %v3609_v27, %v7321_v51  ;;  %v5359_v50 = vpop.f32.mrb[137].mxu0 }
 0xff6   :  { %v3612_v40 = vpop.f32.mrb[138].mxu0 }
 0xff7   :  { %4131 = vst [vmem:[%s8564_s9 + $0x6] sm:$0x1] %v3615_v55  ;;  %v5360_v6 = vpop.f32.mrb[139].mxu0 }
0x1014   :  { %v5379_v31 = vpop.f32.mrb[140].mxu0 }
0x1015   :  { %v3684_v22 = vadd.f32 %v5379_v31, %v8879_v20  ;;  %v3675_v47 = vpop.f32.mrb[141].mxu0 }
0x1016   :  { %v3676_v15 = vadd.f32 %v3675_v47, %v8880_v30  ;;  %v5380_v28 = vpop.f32.mrb[142].mxu0  ;;  %v8888_v30 = vld [vmem:[#allocation63_spill] sm:$0xff] }
0x1017   :  { %v3740_v44 = vadd.f32 %v3684_v22, %v6728_v25  ;;  %v3687_v62 = vadd.f32 %v5380_v28, %v8881_v45  ;;  %v3678_v49 = vpop.f32.mrb[143].mxu0  ;;  %v8884_v25 = vld [vmem:[#allocation39_spill] sm:$0xff] }
0x1018   :  { %v3738_v17 = vadd.f32 %v3676_v15, %v6658_v43  ;;  %v3679_v7 = vadd.f32 %v3678_v49, %v8882_v34  ;;  %v8885_v43 = vld [vmem:[#allocation52_spill] sm:$0xff] }
0x1019   :  { %6082 = vtanh.f32 %v3740_v44  ;;  %v3741_v61 = vadd.f32 %v3687_v62, %v6710_v57  ;;  %v8886_v57 = vld [vmem:[#allocation40_spill] sm:$0xff] }
0x101a   :  { %6084 = vtanh.f32 %v3738_v17  ;;  %v3739_v18 = vadd.f32 %v3679_v7, %v6640_v38  ;;  %v8890_v17 = vld [vmem:[#allocation64_spill] sm:$0xff] }
0x101b   :  { %6086 = vtanh.f32 %v3741_v61 }
0x101c   :  { %6088 = vtanh.f32 %v3739_v18  ;;  %v5383_v26 = vpop.f32.mrb[144].mxu0 }
0x101d   :  { %v3700_v13 = vadd.f32 %v5383_v26, %v8883_v60  ;;  %v3691_v63 = vpop.f32.mrb[145].mxu0 }
0x101e   :  { %v3692_v2 = vadd.f32 %v3691_v63, %v8884_v25  ;;  %v5384_v11 = vpop.f32.mrb[146].mxu0 }
0x101f   :  { %v3744_v8 = vadd.f32 %v3700_v13, %v6856_v52  ;;  %v3703_v37 = vadd.f32 %v5384_v11, %v8885_v43  ;;  %v3694_v33 = vpop.f32.mrb[147].mxu0  ;;  %v8887_v52 = vld [vmem:[#allocation75_spill] sm:$0xff]  ;;  %v8891_v13 = vld [vmem:[#allocation102_spill] sm:$0xff] }
0x1020   :  { %v3742_v0 = vadd.f32 %v3692_v2, %v6792_v53  ;;  %v3695_v27 = vadd.f32 %v3694_v33, %v8886_v57  ;;  %v8892_v2 = vld [vmem:[#allocation89_spill] sm:$0xff] }
0x1021   :  { %6090 = vtanh.f32 %v3744_v8  ;;  %v3745_v38 = vadd.f32 %v3703_v37, %v6838_v41  ;;  %v8889_v41 = vld [vmem:[#allocation76_spill] sm:$0xff] }
0x1022   :  { %6092 = vtanh.f32 %v3742_v0  ;;  %v3743_v55 = vadd.f32 %v3695_v27, %v6774_v21  ;;  %v8894_v27 = vld [vmem:[#allocation90_spill] sm:$0xff] }
0x1023   :  { %v6083_v50 = vpop.eup %6082  ;;  %6094 = vtanh.f32 %v3745_v38 }
0x1024   :  { %v6085_v40 = vpop.eup %6084  ;;  %6096 = vtanh.f32 %v3743_v55  ;;  %v5387_v6 = vpop.f32.mrb[148].mxu0 }
0x1025   :  { %v6087_v31 = vpop.eup %6086  ;;  %v3716_v20 = vadd.f32 %v5387_v6, %v8887_v52  ;;  %v3707_v22 = vpop.f32.mrb[149].mxu0 }
0x1026   :  { %v6089_v47 = vpop.eup %6088  ;;  %v3708_v53 = vadd.f32 %v3707_v22, %v8888_v30  ;;  %v5388_v15 = vpop.f32.mrb[150].mxu0  ;;  %v3771_v28 = vpack.c.bf16 %v6087_v31, %v6083_v50 }
0x1027   :  { %v3748_v44 = vadd.f32 %v3716_v20, %v6984_v32  ;;  %v3719_v45 = vadd.f32 %v5388_v15, %v8889_v41  ;;  %v3710_v62 = vpop.f32.mrb[151].mxu0  ;;  %v3770_v21 = vpack.c.bf16 %v6089_v47, %v6085_v40  ;;  %v8896_v15 = vld [vmem:[#allocation111_spill] sm:$0xff] }
0x1028   :  { %v3746_v49 = vadd.f32 %v3708_v53, %v6920_v35  ;;  %v3711_v34 = vadd.f32 %v3710_v62, %v8890_v17  ;;  %v8895_v53 = vld [vmem:[#allocation110_spill] sm:$0xff]  ;;  %v8899_v41 = vld [vmem:[#allocation119_spill] sm:$0xff] }
0x1029   :  { %6098 = vtanh.f32 %v3748_v44  ;;  %v3749_v7 = vadd.f32 %v3719_v45, %v6966_v48  ;;  %5425 = vmatprep.subr.bf16.mxu1 %v3770_v21  ;;  %v8898_v44 = vld [vmem:[#allocation121_spill] sm:$0xff] }
0x102a   :  { %6100 = vtanh.f32 %v3746_v49  ;;  %v3747_v61 = vadd.f32 %v3711_v34, %v6902_v19  ;;  %5426 = vmatpush3.bf16.msra.mxu1 %v3770_v21  ;;  %v8893_v19 = vld [vmem:[#allocation103_spill] sm:$0xff]  ;;  %v8900_v49 = vld [vmem:[#allocation112_spill] sm:$0xff] }
0x102b   :  { %v6091_v18 = vpop.eup %6090  ;;  %6102 = vtanh.f32 %v3749_v7  ;;  %5427 = vmatprep.subr.bf16.mxu1 %v3771_v28  ;;  %v8901_v7 = vld [vmem:[#allocation113_spill] sm:$0xff] }
0x102c   :  { %v6093_v32 = vpop.eup %6092  ;;  %6104 = vtanh.f32 %v3747_v61  ;;  %v5391_v26 = vpop.f32.mrb[152].mxu0 }
0x102d   :  { %v6095_v60 = vpop.eup %6094  ;;  %v3732_v63 = vadd.f32 %v5391_v26, %v8891_v13  ;;  %v3723_v35 = vpop.f32.mrb[153].mxu0  ;;  %v8903_v13 = vld [vmem:[#allocation116_spill] sm:$0xff] }
0x102e   :  { %v6097_v25 = vpop.eup %6096  ;;  %v3724_v11 = vadd.f32 %v3723_v35, %v8892_v2  ;;  %v5392_v8 = vpop.f32.mrb[154].mxu0  ;;  %5428 = vmatpush3.bf16.msra.mxu1 %v3771_v28  ;;  %v3773_v48 = vpack.c.bf16 %v6095_v60, %v6091_v18  ;;  %v8897_v28 = vld [vmem:[#allocation115_spill] sm:$0xff] }
0x102f   :  { %v3752_v43 = vadd.f32 %v3732_v63, %v7104_v3  ;;  %v3735_v37 = vadd.f32 %v5392_v8, %v8893_v19  ;;  %v3726_v33 = vpop.f32.mrb[155].mxu0  ;;  %v3772_v0 = vpack.c.bf16 %v6097_v25, %v6093_v32  ;;  %v8902_v32 = vld [vmem:[#allocation117_spill] sm:$0xff] }
0x1030   :  { %v3750_v57 = vadd.f32 %v3724_v11, %v7088_v56  ;;  %v3727_v38 = vadd.f32 %v3726_v33, %v8894_v27 }
0x1031   :  { %6106 = vtanh.f32 %v3752_v43  ;;  %v3753_v55 = vadd.f32 %v3735_v37, %v7114_v39  ;;  %5429 = vmatprep.subr.bf16.mxu1 %v3772_v0 }
0x1032   :  { %6108 = vtanh.f32 %v3750_v57  ;;  %v3751_v50 = vadd.f32 %v3727_v38, %v8737_v58  ;;  %5430 = vmatpush3.bf16.msra.mxu1 %v3772_v0 }
0x1033   :  { %v6099_v40 = vpop.eup %6098  ;;  %6110 = vtanh.f32 %v3753_v55  ;;  %5431 = vmatprep.subr.bf16.mxu1 %v3773_v48 }
0x1034   :  { %v6101_v3 = vpop.eup %6100  ;;  %6112 = vtanh.f32 %v3751_v50 }
0x1035   :  { %v6103_v6 = vpop.eup %6102 }
0x1036   :  { %v6105_v31 = vpop.eup %6104  ;;  %5432 = vmatpush3.bf16.msra.mxu1 %v3773_v48  ;;  %v3775_v52 = vpack.c.bf16 %v6103_v6, %v6099_v40 }
0x1037   :  { %v3774_v56 = vpack.c.bf16 %v6105_v31, %v6101_v3 }
0x1039   :  { %5433 = vmatprep.subr.bf16.mxu1 %v3774_v56 }
0x103a   :  { %5434 = vmatpush3.bf16.msra.mxu1 %v3774_v56 }
0x103b   :  { %v6107_v20 = vpop.eup %6106  ;;  %5435 = vmatprep.subr.bf16.mxu1 %v3775_v52 }
0x103c   :  { %v6109_v39 = vpop.eup %6108 }
0x103d   :  { %v6111_v22 = vpop.eup %6110 }
0x103e   :  { %v6113_v47 = vpop.eup %6112  ;;  %5436 = vmatpush3.bf16.msra.mxu1 %v3775_v52  ;;  %v3777_v58 = vpack.c.bf16 %v6111_v22, %v6107_v20 }
0x103f   :  { %v3776_v30 = vpack.c.bf16 %v6113_v47, %v6109_v39 }
0x1041   :  { %5437 = vmatprep.subr.bf16.mxu1 %v3776_v30 }
0x1042   :  { %5438 = vmatpush3.bf16.msra.mxu1 %v3776_v30 }
0x1043   :  { %5439 = vmatprep.subr.bf16.mxu1 %v3777_v58 }
0x1046   :  { %5440 = vmatpush3.bf16.msra.mxu1 %v3777_v58 }
0x1049   :  { %5442 = vmatmul.mubr.bf16.vlgmr.msra.gmra.mrb[112].mxu1 %v8364_v14 }
0x104a   :  { %5445 = vmatprep.mubr.bf16.mxu1 %v8370_v10 }
0x1051   :  { %5446 = vmatmul.mubr.bf16.gmra.mrb[116].mxu1 %v8895_v53 }
0x1052   :  { %5449 = vmatprep.mubr.bf16.mxu1 %v8896_v15 }
0x1059   :  { %5450 = vmatmul.mubr.bf16.gmra.mrb[120].mxu1 %v8897_v28 }
0x105a   :  { %5453 = vmatprep.mubr.bf16.mxu1 %v8898_v44 }
0x1061   :  { %5454 = vmatmul.mubr.bf16.gmra.mrb[124].mxu1 %v8899_v41 }
0x111c   :  { %v5443_v45 = vpop.f32.mrb[112].mxu1 }
0x111d   :  { %v3974_v62 = vadd.f32 %v5443_v45, %v8799_v12  ;;  %v3909_v21 = vpop.f32.mrb[113].mxu1 }
0x111e   :  { %v3972_v17 = vadd.f32 %v3909_v21, %v8900_v49  ;;  %v5444_v34 = vpop.f32.mrb[114].mxu1 }
0x111f   :  { %6114 = vtanh.f32 %v3974_v62  ;;  %v3975_v14 = vadd.f32 %v5444_v34, %v8747_v29  ;;  %v3912_v10 = vpop.f32.mrb[115].mxu1 }
0x1120   :  { %6116 = vtanh.f32 %v3972_v17  ;;  %v3973_v61 = vadd.f32 %v3912_v10, %v8901_v7 }
0x1121   :  { %6118 = vtanh.f32 %v3975_v14 }
0x1122   :  { %6120 = vtanh.f32 %v3973_v61 }
0x1124   :  { %v5447_v18 = vpop.f32.mrb[116].mxu1 }
0x1125   :  { %v3978_v26 = vadd.f32 %v5447_v18, %v8902_v32  ;;  %v3925_v60 = vpop.f32.mrb[117].mxu1 }
0x1126   :  { %v3976_v63 = vadd.f32 %v3925_v60, %v8903_v13  ;;  %v5448_v12 = vpop.f32.mrb[118].mxu1 }
0x1127   :  { %6122 = vtanh.f32 %v3978_v26  ;;  %v3979_v35 = vadd.f32 %v5448_v12, %v8778_v59  ;;  %v3928_v25 = vpop.f32.mrb[119].mxu1 }
0x1128   :  { %6124 = vtanh.f32 %v3976_v63  ;;  %v3977_v29 = vadd.f32 %v3928_v25, %v7195_v4 }
0x1129   :  { %v6115_v2 = vpop.eup %6114  ;;  %6126 = vtanh.f32 %v3979_v35 }
0x112a   :  { %v6117_v11 = vpop.eup %6116  ;;  %6128 = vtanh.f32 %v3977_v29 }
0x112b   :  { %v6119_v8 = vpop.eup %6118 }
0x112c   :  { %v6121_v48 = vpop.eup %6120  ;;  %v5451_v43 = vpop.f32.mrb[120].mxu1  ;;  %v4005_v19 = vpack.c.bf16 %v6119_v8, %v6115_v2 }
0x112d   :  { %v3982_v37 = vadd.f32 %v5451_v43, %v8752_v9  ;;  %v3941_v33 = vpop.f32.mrb[121].mxu1  ;;  %v4004_v0 = vpack.c.bf16 %v6121_v48, %v6117_v11 }
0x112e   :  { %v3980_v57 = vadd.f32 %v3941_v33, %v8753_v16  ;;  %v5452_v27 = vpop.f32.mrb[122].mxu1 }
0x112f   :  { %6130 = vtanh.f32 %v3982_v37  ;;  %v3983_v59 = vadd.f32 %v5452_v27, %v8754_v5  ;;  %v3944_v38 = vpop.f32.mrb[123].mxu1  ;;  %5458 = vmatpush3.bf16.msra.mxu0 %v4004_v0 }
0x1130   :  { %6132 = vtanh.f32 %v3980_v57  ;;  %v3981_v4 = vadd.f32 %v3944_v38, %v8755_v42  ;;  %5459 = vmatprep.subr.bf16.mxu0 %v8733_v36 }
0x1131   :  { %v6123_v55 = vpop.eup %6122  ;;  %6134 = vtanh.f32 %v3983_v59 }
0x1132   :  { %v6125_v50 = vpop.eup %6124  ;;  %6136 = vtanh.f32 %v3981_v4 }
0x1133   :  { %v6127_v9 = vpop.eup %6126  ;;  %5460 = vmatpush3.bf16.msra.mxu0 %v4005_v19 }
0x1134   :  { %v6129_v40 = vpop.eup %6128  ;;  %v5455_v3 = vpop.f32.mrb[124].mxu1  ;;  %5461 = vmatprep.subr.bf16.mxu0 %v8733_v36  ;;  %v4007_v16 = vpack.c.bf16 %v6127_v9, %v6123_v55 }
0x1135   :  { %v3986_v5 = vadd.f32 %v5455_v3, %v7226_v46  ;;  %v3957_v6 = vpop.f32.mrb[125].mxu1  ;;  %v4006_v31 = vpack.c.bf16 %v6129_v40, %v6125_v50 }
0x1136   :  { %v3984_v52 = vadd.f32 %v3957_v6, %v7218_v1  ;;  %v5456_v42 = vpop.f32.mrb[126].mxu1 }
0x1137   :  { %6138 = vtanh.f32 %v3986_v5  ;;  %v3987_v56 = vadd.f32 %v5456_v42, %v7230_v54  ;;  %v3960_v20 = vpop.f32.mrb[127].mxu1  ;;  %5462 = vmatpush3.bf16.msra.mxu0 %v4006_v31 }
0x1138   :  { %6140 = vtanh.f32 %v3984_v52  ;;  %v3985_v39 = vadd.f32 %v3960_v20, %v7222_v23  ;;  %5463 = vmatprep.subr.bf16.mxu0 %v8733_v36 }
0x1139   :  { %v6131_v22 = vpop.eup %6130  ;;  %6142 = vtanh.f32 %v3987_v56 }
0x113a   :  { %v6133_v47 = vpop.eup %6132  ;;  %6144 = vtanh.f32 %v3985_v39 }
0x113b   :  { %v6135_v46 = vpop.eup %6134  ;;  %5464 = vmatpush3.bf16.msra.mxu0 %v4007_v16 }
0x113c   :  { %v6137_v58 = vpop.eup %6136  ;;  %5465 = vmatprep.subr.bf16.mxu0 %v8733_v36  ;;  %v4009_v1 = vpack.c.bf16 %v6135_v46, %v6131_v22 }
0x113d   :  { %v4008_v30 = vpack.c.bf16 %v6137_v58, %v6133_v47 }
0x113f   :  { %5466 = vmatpush3.bf16.msra.mxu0 %v4008_v30 }
0x1140   :  { %5467 = vmatprep.subr.bf16.mxu0 %v8733_v36 }
0x1141   :  { %v6139_v54 = vpop.eup %6138 }
0x1142   :  { %v6141_v53 = vpop.eup %6140 }
0x1143   :  { %v6143_v15 = vpop.eup %6142  ;;  %5468 = vmatpush3.bf16.msra.mxu0 %v4009_v1 }
0x1144   :  { %v6145_v23 = vpop.eup %6144  ;;  %5469 = vmatprep.subr.bf16.mxu0 %v8733_v36  ;;  %v4011_v28 = vpack.c.bf16 %v6143_v15, %v6139_v54 }
0x1145   :  { %v4010_v44 = vpack.c.bf16 %v6145_v23, %v6141_v53 }
0x1147   :  { %5470 = vmatpush3.bf16.msra.mxu0 %v4010_v44 }
0x1148   :  { %5471 = vmatprep.subr.bf16.mxu0 %v8733_v36 }
0x114b   :  { %5472 = vmatpush3.bf16.msra.mxu0 %v4011_v28 }
0x114e   :  { %5474 = vmatmul.mubr.bf16.vlgmr.msra.gmra.mrb[156].mxu0 %v8431_v24 }
0x1221   :  { %v4046_v41 = vpop.f32.mrb[156].mxu0 }
0x1222   :  { %v4052_v45 = vadd.f32 %v4046_v41, %v7321_v51  ;;  %v5475_v62 = vpop.f32.mrb[157].mxu0 }
0x1223   :  { %v4049_v21 = vpop.f32.mrb[158].mxu0 }
0x1224   :  { %4134 = vst [vmem:[%s8564_s9 + $0x7] sm:$0x1] %v4052_v45  ;;  %v5476_v49 = vpop.f32.mrb[159].mxu0 }

</bundles_post_ra>
